<compile_context>
chip_gen: v6e
topology: v6e:2x2x1
jax: 0.10.0
libtpu: 0.0.40
codegen_flags: <defaults>
</compile_context>

<pallas_src>
import jax
import jax.numpy as jnp
from jax.experimental import pallas as pl
from jax.experimental.pallas import tpu as pltpu

INPUT_SIZE = 16
HIDDEN_SIZE = 32
GATE = 128                       # one 128-lane slab per GRU gate
L_SRC = 8
L_TGT = 8
MAX_ITER = 10                    # >= L_TGT => training-mode decoder runs L_TGT steps
assert MAX_ITER >= L_TGT, "training-mode kernel assumes MAX_ITER >= L_TGT"
N_DEC_STEPS = L_TGT


def encdec_kernel(src_ref, dec_in_ref, tgt_ref, h0_ref,
                  enc_wih_ref, enc_whh_ref, enc_bih_ref, enc_bhh_ref,
                  dec_wih_ref, dec_whh_ref, dec_bih_ref, dec_bhh_ref,
                  fco_w_ref, fco_b_ref, fca_w_ref, fca_b_ref,
                  y_ref, h_ref):
    G = GATE

    def gru_h(gi, h, whh, bhh):
        # gi already contains x @ W_ih^T + b_ih (hoisted, slab layout).
        # b_hh stays with gh: n = tanh(gi_n + r * (h @ W_hh_n^T + b_hh_n)).
        gh = jnp.dot(h, whh, preferred_element_type=jnp.float32) + bhh
        # Fused r/z sigmoid over one 256-lane slab (2 EUP pushes/step total).
        rz = jax.nn.sigmoid(gi[:, 0:2 * G] + gh[:, 0:2 * G])
        r = rz[:, 0:G]                      # lane offset 0 of its vreg
        z = rz[:, G:2 * G]                  # lane offset 0 of its vreg
        n = jnp.tanh(gi[:, 2 * G:3 * G] + r * gh[:, 2 * G:3 * G])
        # Padding lanes (>= HIDDEN_SIZE within each slab) stay exactly 0:
        # gi/gh pad = 0, r/z pad = 0.5, n pad = 0 => h' pad = 0.
        return n + z * (h - n)              # == (1-z)*n + z*h

    enc_whh = enc_whh_ref[...]
    enc_bhh = enc_bhh_ref[...]
    dec_whh = dec_whh_ref[...]
    dec_bhh = dec_bhh_ref[...]

    # -------- Hoisted input-gate matmuls (one per recurrence) --------
    gi_enc = (jnp.dot(src_ref[...], enc_wih_ref[...],
                      preferred_element_type=jnp.float32) + enc_bih_ref[...])
    gi_dec = (jnp.dot(dec_in_ref[...], dec_wih_ref[...],
                      preferred_element_type=jnp.float32) + dec_bih_ref[...])

    # ---------------- Encoder (fully unrolled) ----------------
    h = h0_ref[...]                          # (1, GATE), lanes [H:] == 0
    for i in range(L_SRC):
        h = gru_h(gi_enc[i:i + 1, :], h, enc_whh, enc_bhh)

    # ---------------- Decoder (teacher forcing, uniform GI) ----------------
    mem = h
    mem_rows = []
    for i in range(N_DEC_STEPS):
        mem = gru_h(gi_dec[i:i + 1, :], mem, dec_whh, dec_bhh)
        mem_rows.append(mem)                 # keep hiddens in vregs, no scratch
    h_ref[...] = mem

    mems = jnp.concatenate(mem_rows, axis=0)          # (L_TGT, GATE), pad lanes 0

    # ---------------- fc_out + softmax (batched, out of the loop) ----------
    logits = (jnp.dot(mems, fco_w_ref[...],
                      preferred_element_type=jnp.float32) + fco_b_ref[...])
    s = logits - jnp.max(logits, axis=-1, keepdims=True)
    e = jnp.exp(s)
    ys = e * pl.reciprocal(jnp.sum(e, axis=-1, keepdims=True), approx=True)

    # ---------------- Residual + fc_all_out ----------------
    y_all = ys + tgt_ref[...]
    y_ref[...] = (jnp.dot(y_all, fca_w_ref[...],
                          preferred_element_type=jnp.float32) + fca_b_ref[...])


def init_params(key):
    """Raw PyTorch-layout parameters (used by the pure-JAX reference)."""
    I, H = INPUT_SIZE, HIDDEN_SIZE
    ks = jax.random.split(key, 12)

    def u(k, shape, bound):
        return jax.random.uniform(k, shape, jnp.float32, -bound, bound)

    kg = 1.0 / float(H) ** 0.5
    ko = 1.0 / float(H) ** 0.5
    ka = 1.0 / float(I) ** 0.5
    return dict(
        enc_wih=u(ks[0], (3 * H, I), kg), enc_whh=u(ks[1], (3 * H, H), kg),
        enc_bih=u(ks[2], (3 * H,), kg),   enc_bhh=u(ks[3], (3 * H,), kg),
        dec_wih=u(ks[4], (3 * H, I), kg), dec_whh=u(ks[5], (3 * H, H), kg),
        dec_bih=u(ks[6], (3 * H,), kg),   dec_bhh=u(ks[7], (3 * H,), kg),
        fco_w=u(ks[8], (I, H), ko),       fco_b=u(ks[9], (I,), ko),
        fca_w=u(ks[10], (I, I), ka),      fca_b=u(ks[11], (I,), ka),
    )


def pack_params(p):
    """Pack GRU weights so each gate occupies its own 128-lane slab."""
    I, H, G = INPUT_SIZE, HIDDEN_SIZE, GATE

    def pack_ih(w, b):                       # w: (3H, I) -> (I, 3G); b -> (1, 3G)
        wp = jnp.zeros((I, 3 * G), jnp.float32)
        bp = jnp.zeros((1, 3 * G), jnp.float32)
        for g in range(3):
            wp = wp.at[:, g * G:g * G + H].set(w[g * H:(g + 1) * H, :].T)
            bp = bp.at[0, g * G:g * G + H].set(b[g * H:(g + 1) * H])
        return wp, bp

    def pack_hh(w, b):                       # w: (3H, H) -> (G, 3G); b -> (1, 3G)
        wp = jnp.zeros((G, 3 * G), jnp.float32)
        bp = jnp.zeros((1, 3 * G), jnp.float32)
        for g in range(3):
            wp = wp.at[0:H, g * G:g * G + H].set(w[g * H:(g + 1) * H, :].T)
            bp = bp.at[0, g * G:g * G + H].set(b[g * H:(g + 1) * H])
        return wp, bp

    enc_wih_p, enc_bih_p = pack_ih(p["enc_wih"], p["enc_bih"])
    enc_whh_p, enc_bhh_p = pack_hh(p["enc_whh"], p["enc_bhh"])
    dec_wih_p, dec_bih_p = pack_ih(p["dec_wih"], p["dec_bih"])
    dec_whh_p, dec_bhh_p = pack_hh(p["dec_whh"], p["dec_bhh"])

    fco_w_p = jnp.zeros((G, I), jnp.float32).at[0:H, :].set(p["fco_w"].T)
    return dict(
        enc_wih_p=enc_wih_p, enc_whh_p=enc_whh_p,
        enc_bih_p=enc_bih_p, enc_bhh_p=enc_bhh_p,
        dec_wih_p=dec_wih_p, dec_whh_p=dec_whh_p,
        dec_bih_p=dec_bih_p, dec_bhh_p=dec_bhh_p,
        fco_w_p=fco_w_p, fco_b_p=p["fco_b"].reshape(1, I),
        fca_w_t=p["fca_w"].T, fca_b_p=p["fca_b"].reshape(1, I),
    )


def encoder_decoder_forward(src, tgt, h0, p):
    assert MAX_ITER >= L_TGT, "kernel implements exactly L_TGT decoder steps"
    pk = pack_params(p)

    # Uniform decoder GI input: [one_hot(0); tgt[:-1]]  (teacher forcing).
    one_hot0 = jnp.zeros((1, INPUT_SIZE), jnp.float32).at[0, 0].set(1.0)
    dec_in = jnp.concatenate([one_hot0, tgt[:L_TGT - 1]], axis=0)
    h0_pad = jnp.zeros((1, GATE), jnp.float32).at[0, :HIDDEN_SIZE].set(h0)

    args = (
        src, dec_in, tgt, h0_pad,
        pk["enc_wih_p"], pk["enc_whh_p"], pk["enc_bih_p"], pk["enc_bhh_p"],
        pk["dec_wih_p"], pk["dec_whh_p"], pk["dec_bih_p"], pk["dec_bhh_p"],
        pk["fco_w_p"], pk["fco_b_p"], pk["fca_w_t"], pk["fca_b_p"],
    )
    vmem = lambda: pl.BlockSpec(memory_space=pltpu.MemorySpace.VMEM)
    y, h = pl.pallas_call(
        encdec_kernel,
        out_shape=(
            jax.ShapeDtypeStruct((L_TGT, INPUT_SIZE), jnp.float32),
            jax.ShapeDtypeStruct((1, GATE), jnp.float32),
        ),
        in_specs=[vmem() for _ in args],
        out_specs=(vmem(), vmem()),
    )(*args)
    return y, h[0, :HIDDEN_SIZE]


def reference_forward(src, tgt, h0, p):
    """Pure-JAX mirror of the PyTorch module (training mode, teacher forcing)."""
    H = HIDDEN_SIZE

    def gru(x, h, wih, whh, bih, bhh):
        gi = x @ wih.T + bih
        gh = h @ whh.T + bhh
        r = jax.nn.sigmoid(gi[:H] + gh[:H])
        z = jax.nn.sigmoid(gi[H:2 * H] + gh[H:2 * H])
        n = jnp.tanh(gi[2 * H:] + r * gh[2 * H:])
        return (1.0 - z) * n + z * h

    h = h0
    for i in range(L_SRC):
        h = gru(src[i], h, p["enc_wih"], p["enc_whh"], p["enc_bih"], p["enc_bhh"])
    memory = h

    inp = jnp.zeros((INPUT_SIZE,), jnp.float32).at[0].set(1.0)
    outs = []
    for i in range(MAX_ITER):
        memory = gru(inp, memory, p["dec_wih"], p["dec_whh"], p["dec_bih"], p["dec_bhh"])
        y = jax.nn.softmax(memory @ p["fco_w"].T + p["fco_b"], axis=-1)
        outs.append(y)
        if len(outs) >= L_TGT:
            break
        inp = tgt[i]
    y = jnp.stack(outs) + tgt
    y = y @ p["fca_w"].T + p["fca_b"]
    return y, memory


if __name__ == "__main__":
    key = jax.random.PRNGKey(0)
    kp, ks, kt = jax.random.split(key, 3)
    params = init_params(kp)
    src = jax.random.normal(ks, (L_SRC, INPUT_SIZE), jnp.float32)
    tgt = jax.random.normal(kt, (L_TGT, INPUT_SIZE), jnp.float32)
    h0 = jnp.zeros((HIDDEN_SIZE,), jnp.float32)

    y, h = encoder_decoder_forward(src, tgt, h0, params)
    jax.block_until_ready((y, h))

    y_ref, h_ref = reference_forward(src, tgt, h0, params)
    assert y.shape == (L_TGT, INPUT_SIZE) and h.shape == (HIDDEN_SIZE,)
    # approx reciprocal in the in-kernel softmax adds ~1e-4 relative error at most
    assert jnp.allclose(y, y_ref, atol=1e-3, rtol=1e-3)
    assert jnp.allclose(h, h_ref, atol=1e-3, rtol=1e-3)

    print("KERNEL_OK")
</pallas_src>

<mosaic_0001>
module attributes {stable_mosaic.version = 11 : i64} {
  func.func @encdec_kernel(%arg0: memref<8x16xf32, #tpu.memory_space<vmem>>, %arg1: memref<8x16xf32, #tpu.memory_space<vmem>>, %arg2: memref<8x16xf32, #tpu.memory_space<vmem>>, %arg3: memref<1x128xf32, #tpu.memory_space<vmem>>, %arg4: memref<16x384xf32, #tpu.memory_space<vmem>>, %arg5: memref<128x384xf32, #tpu.memory_space<vmem>>, %arg6: memref<1x384xf32, #tpu.memory_space<vmem>>, %arg7: memref<1x384xf32, #tpu.memory_space<vmem>>, %arg8: memref<16x384xf32, #tpu.memory_space<vmem>>, %arg9: memref<128x384xf32, #tpu.memory_space<vmem>>, %arg10: memref<1x384xf32, #tpu.memory_space<vmem>>, %arg11: memref<1x384xf32, #tpu.memory_space<vmem>>, %arg12: memref<128x16xf32, #tpu.memory_space<vmem>>, %arg13: memref<1x16xf32, #tpu.memory_space<vmem>>, %arg14: memref<16x16xf32, #tpu.memory_space<vmem>>, %arg15: memref<1x16xf32, #tpu.memory_space<vmem>>, %arg16: memref<8x16xf32, #tpu.memory_space<vmem>>, %arg17: memref<1x128xf32, #tpu.memory_space<vmem>>) attributes {dimension_semantics = [], scalar_prefetch = 0 : i64, scratch_operands = 0 : i64, tpu.core_type = #tpu.core_type<tc>} {
    %c0 = arith.constant 0 : index
    %c0_0 = arith.constant 0 : index
    %0 = vector.load %arg5[%c0, %c0_0] : memref<128x384xf32, #tpu.memory_space<vmem>>, vector<128x384xf32>
    %c0_1 = arith.constant 0 : index
    %c0_2 = arith.constant 0 : index
    %1 = vector.load %arg7[%c0_1, %c0_2] : memref<1x384xf32, #tpu.memory_space<vmem>>, vector<1x384xf32>
    %c0_3 = arith.constant 0 : index
    %c0_4 = arith.constant 0 : index
    %2 = vector.load %arg9[%c0_3, %c0_4] : memref<128x384xf32, #tpu.memory_space<vmem>>, vector<128x384xf32>
    %c0_5 = arith.constant 0 : index
    %c0_6 = arith.constant 0 : index
    %3 = vector.load %arg11[%c0_5, %c0_6] : memref<1x384xf32, #tpu.memory_space<vmem>>, vector<1x384xf32>
    %c0_7 = arith.constant 0 : index
    %c0_8 = arith.constant 0 : index
    %4 = vector.load %arg0[%c0_7, %c0_8] : memref<8x16xf32, #tpu.memory_space<vmem>>, vector<8x16xf32>
    %c0_9 = arith.constant 0 : index
    %c0_10 = arith.constant 0 : index
    %5 = vector.load %arg4[%c0_9, %c0_10] : memref<16x384xf32, #tpu.memory_space<vmem>>, vector<16x384xf32>
    %cst = arith.constant dense<0.000000e+00> : vector<8x384xf32>
    %6 = tpu.matmul %4, %5, %cst {dimension_numbers = #tpu.dot_dimension_numbers<[1], [0], [0], [1], [0, 0, 1, 1], [], []>} : vector<8x16xf32>, vector<16x384xf32>, vector<8x384xf32> -> vector<8x384xf32>
    %c0_11 = arith.constant 0 : index
    %c0_12 = arith.constant 0 : index
    %7 = vector.load %arg6[%c0_11, %c0_12] : memref<1x384xf32, #tpu.memory_space<vmem>>, vector<1x384xf32>
    %8 = vector.broadcast %7 : vector<1x384xf32> to vector<8x384xf32>
    %9 = arith.addf %6, %8 : vector<8x384xf32>
    %c0_13 = arith.constant 0 : index
    %c0_14 = arith.constant 0 : index
    %10 = vector.load %arg1[%c0_13, %c0_14] : memref<8x16xf32, #tpu.memory_space<vmem>>, vector<8x16xf32>
    %c0_15 = arith.constant 0 : index
    %c0_16 = arith.constant 0 : index
    %11 = vector.load %arg8[%c0_15, %c0_16] : memref<16x384xf32, #tpu.memory_space<vmem>>, vector<16x384xf32>
    %cst_17 = arith.constant dense<0.000000e+00> : vector<8x384xf32>
    %12 = tpu.matmul %10, %11, %cst_17 {dimension_numbers = #tpu.dot_dimension_numbers<[1], [0], [0], [1], [0, 0, 1, 1], [], []>} : vector<8x16xf32>, vector<16x384xf32>, vector<8x384xf32> -> vector<8x384xf32>
    %c0_18 = arith.constant 0 : index
    %c0_19 = arith.constant 0 : index
    %13 = vector.load %arg10[%c0_18, %c0_19] : memref<1x384xf32, #tpu.memory_space<vmem>>, vector<1x384xf32>
    %14 = vector.broadcast %13 : vector<1x384xf32> to vector<8x384xf32>
    %15 = arith.addf %12, %14 : vector<8x384xf32>
    %c0_20 = arith.constant 0 : index
    %c0_21 = arith.constant 0 : index
    %16 = vector.load %arg3[%c0_20, %c0_21] : memref<1x128xf32, #tpu.memory_space<vmem>>, vector<1x128xf32>
    %17 = vector.extract_strided_slice %9 {offsets = [0, 0], sizes = [1, 384], strides = [1, 1]} : vector<8x384xf32> to vector<1x384xf32>
    %cst_22 = arith.constant dense<0.000000e+00> : vector<1x384xf32>
    %18 = tpu.matmul %16, %0, %cst_22 {dimension_numbers = #tpu.dot_dimension_numbers<[1], [0], [0], [1], [0, 0, 1, 1], [], []>} : vector<1x128xf32>, vector<128x384xf32>, vector<1x384xf32> -> vector<1x384xf32>
    %19 = arith.addf %18, %1 : vector<1x384xf32>
    %20 = vector.extract_strided_slice %17 {offsets = [0, 0], sizes = [1, 256], strides = [1, 1]} : vector<1x384xf32> to vector<1x256xf32>
    %21 = vector.extract_strided_slice %19 {offsets = [0, 0], sizes = [1, 256], strides = [1, 1]} : vector<1x384xf32> to vector<1x256xf32>
    %22 = arith.addf %20, %21 : vector<1x256xf32>
    %23 = arith.negf %22 : vector<1x256xf32>
    %24 = math.exp %23 : vector<1x256xf32>
    %cst_23 = arith.constant 1.000000e+00 : f32
    %25 = vector.broadcast %cst_23 : f32 to vector<1x256xf32>
    %26 = arith.addf %25, %24 : vector<1x256xf32>
    %27 = arith.divf %25, %26 : vector<1x256xf32>
    %28 = vector.extract_strided_slice %27 {offsets = [0, 0], sizes = [1, 128], strides = [1, 1]} : vector<1x256xf32> to vector<1x128xf32>
    %29 = vector.extract_strided_slice %27 {offsets = [0, 128], sizes = [1, 128], strides = [1, 1]} : vector<1x256xf32> to vector<1x128xf32>
    %30 = vector.extract_strided_slice %17 {offsets = [0, 256], sizes = [1, 128], strides = [1, 1]} : vector<1x384xf32> to vector<1x128xf32>
    %31 = vector.extract_strided_slice %19 {offsets = [0, 256], sizes = [1, 128], strides = [1, 1]} : vector<1x384xf32> to vector<1x128xf32>
    %32 = arith.mulf %28, %31 : vector<1x128xf32>
    %33 = arith.addf %30, %32 : vector<1x128xf32>
    %34 = math.tanh %33 : vector<1x128xf32>
    %35 = arith.subf %16, %34 : vector<1x128xf32>
    %36 = arith.mulf %29, %35 : vector<1x128xf32>
    %37 = arith.addf %34, %36 : vector<1x128xf32>
    %38 = vector.extract_strided_slice %9 {offsets = [1, 0], sizes = [1, 384], strides = [1, 1]} : vector<8x384xf32> to vector<1x384xf32>
    %cst_24 = arith.constant dense<0.000000e+00> : vector<1x384xf32>
    %39 = tpu.matmul %37, %0, %cst_24 {dimension_numbers = #tpu.dot_dimension_numbers<[1], [0], [0], [1], [0, 0, 1, 1], [], []>} : vector<1x128xf32>, vector<128x384xf32>, vector<1x384xf32> -> vector<1x384xf32>
    %40 = arith.addf %39, %1 : vector<1x384xf32>
    %41 = vector.extract_strided_slice %38 {offsets = [0, 0], sizes = [1, 256], strides = [1, 1]} : vector<1x384xf32> to vector<1x256xf32>
    %42 = vector.extract_strided_slice %40 {offsets = [0, 0], sizes = [1, 256], strides = [1, 1]} : vector<1x384xf32> to vector<1x256xf32>
    %43 = arith.addf %41, %42 : vector<1x256xf32>
    %44 = arith.negf %43 : vector<1x256xf32>
    %45 = math.exp %44 : vector<1x256xf32>
    %cst_25 = arith.constant 1.000000e+00 : f32
    %46 = vector.broadcast %cst_25 : f32 to vector<1x256xf32>
    %47 = arith.addf %46, %45 : vector<1x256xf32>
    %48 = arith.divf %46, %47 : vector<1x256xf32>
    %49 = vector.extract_strided_slice %48 {offsets = [0, 0], sizes = [1, 128], strides = [1, 1]} : vector<1x256xf32> to vector<1x128xf32>
    %50 = vector.extract_strided_slice %48 {offsets = [0, 128], sizes = [1, 128], strides = [1, 1]} : vector<1x256xf32> to vector<1x128xf32>
    %51 = vector.extract_strided_slice %38 {offsets = [0, 256], sizes = [1, 128], strides = [1, 1]} : vector<1x384xf32> to vector<1x128xf32>
    %52 = vector.extract_strided_slice %40 {offsets = [0, 256], sizes = [1, 128], strides = [1, 1]} : vector<1x384xf32> to vector<1x128xf32>
    %53 = arith.mulf %49, %52 : vector<1x128xf32>
    %54 = arith.addf %51, %53 : vector<1x128xf32>
    %55 = math.tanh %54 : vector<1x128xf32>
    %56 = arith.subf %37, %55 : vector<1x128xf32>
    %57 = arith.mulf %50, %56 : vector<1x128xf32>
    %58 = arith.addf %55, %57 : vector<1x128xf32>
    %59 = vector.extract_strided_slice %9 {offsets = [2, 0], sizes = [1, 384], strides = [1, 1]} : vector<8x384xf32> to vector<1x384xf32>
    %cst_26 = arith.constant dense<0.000000e+00> : vector<1x384xf32>
    %60 = tpu.matmul %58, %0, %cst_26 {dimension_numbers = #tpu.dot_dimension_numbers<[1], [0], [0], [1], [0, 0, 1, 1], [], []>} : vector<1x128xf32>, vector<128x384xf32>, vector<1x384xf32> -> vector<1x384xf32>
    %61 = arith.addf %60, %1 : vector<1x384xf32>
    %62 = vector.extract_strided_slice %59 {offsets = [0, 0], sizes = [1, 256], strides = [1, 1]} : vector<1x384xf32> to vector<1x256xf32>
    %63 = vector.extract_strided_slice %61 {offsets = [0, 0], sizes = [1, 256], strides = [1, 1]} : vector<1x384xf32> to vector<1x256xf32>
    %64 = arith.addf %62, %63 : vector<1x256xf32>
    %65 = arith.negf %64 : vector<1x256xf32>
    %66 = math.exp %65 : vector<1x256xf32>
    %cst_27 = arith.constant 1.000000e+00 : f32
    %67 = vector.broadcast %cst_27 : f32 to vector<1x256xf32>
    %68 = arith.addf %67, %66 : vector<1x256xf32>
    %69 = arith.divf %67, %68 : vector<1x256xf32>
    %70 = vector.extract_strided_slice %69 {offsets = [0, 0], sizes = [1, 128], strides = [1, 1]} : vector<1x256xf32> to vector<1x128xf32>
    %71 = vector.extract_strided_slice %69 {offsets = [0, 128], sizes = [1, 128], strides = [1, 1]} : vector<1x256xf32> to vector<1x128xf32>
    %72 = vector.extract_strided_slice %59 {offsets = [0, 256], sizes = [1, 128], strides = [1, 1]} : vector<1x384xf32> to vector<1x128xf32>
    %73 = vector.extract_strided_slice %61 {offsets = [0, 256], sizes = [1, 128], strides = [1, 1]} : vector<1x384xf32> to vector<1x128xf32>
    %74 = arith.mulf %70, %73 : vector<1x128xf32>
    %75 = arith.addf %72, %74 : vector<1x128xf32>
    %76 = math.tanh %75 : vector<1x128xf32>
    %77 = arith.subf %58, %76 : vector<1x128xf32>
    %78 = arith.mulf %71, %77 : vector<1x128xf32>
    %79 = arith.addf %76, %78 : vector<1x128xf32>
    %80 = vector.extract_strided_slice %9 {offsets = [3, 0], sizes = [1, 384], strides = [1, 1]} : vector<8x384xf32> to vector<1x384xf32>
    %cst_28 = arith.constant dense<0.000000e+00> : vector<1x384xf32>
    %81 = tpu.matmul %79, %0, %cst_28 {dimension_numbers = #tpu.dot_dimension_numbers<[1], [0], [0], [1], [0, 0, 1, 1], [], []>} : vector<1x128xf32>, vector<128x384xf32>, vector<1x384xf32> -> vector<1x384xf32>
    %82 = arith.addf %81, %1 : vector<1x384xf32>
    %83 = vector.extract_strided_slice %80 {offsets = [0, 0], sizes = [1, 256], strides = [1, 1]} : vector<1x384xf32> to vector<1x256xf32>
    %84 = vector.extract_strided_slice %82 {offsets = [0, 0], sizes = [1, 256], strides = [1, 1]} : vector<1x384xf32> to vector<1x256xf32>
    %85 = arith.addf %83, %84 : vector<1x256xf32>
    %86 = arith.negf %85 : vector<1x256xf32>
    %87 = math.exp %86 : vector<1x256xf32>
    %cst_29 = arith.constant 1.000000e+00 : f32
    %88 = vector.broadcast %cst_29 : f32 to vector<1x256xf32>
    %89 = arith.addf %88, %87 : vector<1x256xf32>
    %90 = arith.divf %88, %89 : vector<1x256xf32>
    %91 = vector.extract_strided_slice %90 {offsets = [0, 0], sizes = [1, 128], strides = [1, 1]} : vector<1x256xf32> to vector<1x128xf32>
    %92 = vector.extract_strided_slice %90 {offsets = [0, 128], sizes = [1, 128], strides = [1, 1]} : vector<1x256xf32> to vector<1x128xf32>
    %93 = vector.extract_strided_slice %80 {offsets = [0, 256], sizes = [1, 128], strides = [1, 1]} : vector<1x384xf32> to vector<1x128xf32>
    %94 = vector.extract_strided_slice %82 {offsets = [0, 256], sizes = [1, 128], strides = [1, 1]} : vector<1x384xf32> to vector<1x128xf32>
    %95 = arith.mulf %91, %94 : vector<1x128xf32>
    %96 = arith.addf %93, %95 : vector<1x128xf32>
    %97 = math.tanh %96 : vector<1x128xf32>
    %98 = arith.subf %79, %97 : vector<1x128xf32>
    %99 = arith.mulf %92, %98 : vector<1x128xf32>
    %100 = arith.addf %97, %99 : vector<1x128xf32>
    %101 = vector.extract_strided_slice %9 {offsets = [4, 0], sizes = [1, 384], strides = [1, 1]} : vector<8x384xf32> to vector<1x384xf32>
    %cst_30 = arith.constant dense<0.000000e+00> : vector<1x384xf32>
    %102 = tpu.matmul %100, %0, %cst_30 {dimension_numbers = #tpu.dot_dimension_numbers<[1], [0], [0], [1], [0, 0, 1, 1], [], []>} : vector<1x128xf32>, vector<128x384xf32>, vector<1x384xf32> -> vector<1x384xf32>
    %103 = arith.addf %102, %1 : vector<1x384xf32>
    %104 = vector.extract_strided_slice %101 {offsets = [0, 0], sizes = [1, 256], strides = [1, 1]} : vector<1x384xf32> to vector<1x256xf32>
    %105 = vector.extract_strided_slice %103 {offsets = [0, 0], sizes = [1, 256], strides = [1, 1]} : vector<1x384xf32> to vector<1x256xf32>
    %106 = arith.addf %104, %105 : vector<1x256xf32>
    %107 = arith.negf %106 : vector<1x256xf32>
    %108 = math.exp %107 : vector<1x256xf32>
    %cst_31 = arith.constant 1.000000e+00 : f32
    %109 = vector.broadcast %cst_31 : f32 to vector<1x256xf32>
    %110 = arith.addf %109, %108 : vector<1x256xf32>
    %111 = arith.divf %109, %110 : vector<1x256xf32>
    %112 = vector.extract_strided_slice %111 {offsets = [0, 0], sizes = [1, 128], strides = [1, 1]} : vector<1x256xf32> to vector<1x128xf32>
    %113 = vector.extract_strided_slice %111 {offsets = [0, 128], sizes = [1, 128], strides = [1, 1]} : vector<1x256xf32> to vector<1x128xf32>
    %114 = vector.extract_strided_slice %101 {offsets = [0, 256], sizes = [1, 128], strides = [1, 1]} : vector<1x384xf32> to vector<1x128xf32>
    %115 = vector.extract_strided_slice %103 {offsets = [0, 256], sizes = [1, 128], strides = [1, 1]} : vector<1x384xf32> to vector<1x128xf32>
    %116 = arith.mulf %112, %115 : vector<1x128xf32>
    %117 = arith.addf %114, %116 : vector<1x128xf32>
    %118 = math.tanh %117 : vector<1x128xf32>
    %119 = arith.subf %100, %118 : vector<1x128xf32>
    %120 = arith.mulf %113, %119 : vector<1x128xf32>
    %121 = arith.addf %118, %120 : vector<1x128xf32>
    %122 = vector.extract_strided_slice %9 {offsets = [5, 0], sizes = [1, 384], strides = [1, 1]} : vector<8x384xf32> to vector<1x384xf32>
    %cst_32 = arith.constant dense<0.000000e+00> : vector<1x384xf32>
    %123 = tpu.matmul %121, %0, %cst_32 {dimension_numbers = #tpu.dot_dimension_numbers<[1], [0], [0], [1], [0, 0, 1, 1], [], []>} : vector<1x128xf32>, vector<128x384xf32>, vector<1x384xf32> -> vector<1x384xf32>
    %124 = arith.addf %123, %1 : vector<1x384xf32>
    %125 = vector.extract_strided_slice %122 {offsets = [0, 0], sizes = [1, 256], strides = [1, 1]} : vector<1x384xf32> to vector<1x256xf32>
    %126 = vector.extract_strided_slice %124 {offsets = [0, 0], sizes = [1, 256], strides = [1, 1]} : vector<1x384xf32> to vector<1x256xf32>
    %127 = arith.addf %125, %126 : vector<1x256xf32>
    %128 = arith.negf %127 : vector<1x256xf32>
    %129 = math.exp %128 : vector<1x256xf32>
    %cst_33 = arith.constant 1.000000e+00 : f32
    %130 = vector.broadcast %cst_33 : f32 to vector<1x256xf32>
    %131 = arith.addf %130, %129 : vector<1x256xf32>
    %132 = arith.divf %130, %131 : vector<1x256xf32>
    %133 = vector.extract_strided_slice %132 {offsets = [0, 0], sizes = [1, 128], strides = [1, 1]} : vector<1x256xf32> to vector<1x128xf32>
    %134 = vector.extract_strided_slice %132 {offsets = [0, 128], sizes = [1, 128], strides = [1, 1]} : vector<1x256xf32> to vector<1x128xf32>
    %135 = vector.extract_strided_slice %122 {offsets = [0, 256], sizes = [1, 128], strides = [1, 1]} : vector<1x384xf32> to vector<1x128xf32>
    %136 = vector.extract_strided_slice %124 {offsets = [0, 256], sizes = [1, 128], strides = [1, 1]} : vector<1x384xf32> to vector<1x128xf32>
    %137 = arith.mulf %133, %136 : vector<1x128xf32>
    %138 = arith.addf %135, %137 : vector<1x128xf32>
    %139 = math.tanh %138 : vector<1x128xf32>
    %140 = arith.subf %121, %139 : vector<1x128xf32>
    %141 = arith.mulf %134, %140 : vector<1x128xf32>
    %142 = arith.addf %139, %141 : vector<1x128xf32>
    %143 = vector.extract_strided_slice %9 {offsets = [6, 0], sizes = [1, 384], strides = [1, 1]} : vector<8x384xf32> to vector<1x384xf32>
    %cst_34 = arith.constant dense<0.000000e+00> : vector<1x384xf32>
    %144 = tpu.matmul %142, %0, %cst_34 {dimension_numbers = #tpu.dot_dimension_numbers<[1], [0], [0], [1], [0, 0, 1, 1], [], []>} : vector<1x128xf32>, vector<128x384xf32>, vector<1x384xf32> -> vector<1x384xf32>
    %145 = arith.addf %144, %1 : vector<1x384xf32>
    %146 = vector.extract_strided_slice %143 {offsets = [0, 0], sizes = [1, 256], strides = [1, 1]} : vector<1x384xf32> to vector<1x256xf32>
    %147 = vector.extract_strided_slice %145 {offsets = [0, 0], sizes = [1, 256], strides = [1, 1]} : vector<1x384xf32> to vector<1x256xf32>
    %148 = arith.addf %146, %147 : vector<1x256xf32>
    %149 = arith.negf %148 : vector<1x256xf32>
    %150 = math.exp %149 : vector<1x256xf32>
    %cst_35 = arith.constant 1.000000e+00 : f32
    %151 = vector.broadcast %cst_35 : f32 to vector<1x256xf32>
    %152 = arith.addf %151, %150 : vector<1x256xf32>
    %153 = arith.divf %151, %152 : vector<1x256xf32>
    %154 = vector.extract_strided_slice %153 {offsets = [0, 0], sizes = [1, 128], strides = [1, 1]} : vector<1x256xf32> to vector<1x128xf32>
    %155 = vector.extract_strided_slice %153 {offsets = [0, 128], sizes = [1, 128], strides = [1, 1]} : vector<1x256xf32> to vector<1x128xf32>
    %156 = vector.extract_strided_slice %143 {offsets = [0, 256], sizes = [1, 128], strides = [1, 1]} : vector<1x384xf32> to vector<1x128xf32>
    %157 = vector.extract_strided_slice %145 {offsets = [0, 256], sizes = [1, 128], strides = [1, 1]} : vector<1x384xf32> to vector<1x128xf32>
    %158 = arith.mulf %154, %157 : vector<1x128xf32>
    %159 = arith.addf %156, %158 : vector<1x128xf32>
    %160 = math.tanh %159 : vector<1x128xf32>
    %161 = arith.subf %142, %160 : vector<1x128xf32>
    %162 = arith.mulf %155, %161 : vector<1x128xf32>
    %163 = arith.addf %160, %162 : vector<1x128xf32>
    %164 = vector.extract_strided_slice %9 {offsets = [7, 0], sizes = [1, 384], strides = [1, 1]} : vector<8x384xf32> to vector<1x384xf32>
    %cst_36 = arith.constant dense<0.000000e+00> : vector<1x384xf32>
    %165 = tpu.matmul %163, %0, %cst_36 {dimension_numbers = #tpu.dot_dimension_numbers<[1], [0], [0], [1], [0, 0, 1, 1], [], []>} : vector<1x128xf32>, vector<128x384xf32>, vector<1x384xf32> -> vector<1x384xf32>
    %166 = arith.addf %165, %1 : vector<1x384xf32>
    %167 = vector.extract_strided_slice %164 {offsets = [0, 0], sizes = [1, 256], strides = [1, 1]} : vector<1x384xf32> to vector<1x256xf32>
    %168 = vector.extract_strided_slice %166 {offsets = [0, 0], sizes = [1, 256], strides = [1, 1]} : vector<1x384xf32> to vector<1x256xf32>
    %169 = arith.addf %167, %168 : vector<1x256xf32>
    %170 = arith.negf %169 : vector<1x256xf32>
    %171 = math.exp %170 : vector<1x256xf32>
    %cst_37 = arith.constant 1.000000e+00 : f32
    %172 = vector.broadcast %cst_37 : f32 to vector<1x256xf32>
    %173 = arith.addf %172, %171 : vector<1x256xf32>
    %174 = arith.divf %172, %173 : vector<1x256xf32>
    %175 = vector.extract_strided_slice %174 {offsets = [0, 0], sizes = [1, 128], strides = [1, 1]} : vector<1x256xf32> to vector<1x128xf32>
    %176 = vector.extract_strided_slice %174 {offsets = [0, 128], sizes = [1, 128], strides = [1, 1]} : vector<1x256xf32> to vector<1x128xf32>
    %177 = vector.extract_strided_slice %164 {offsets = [0, 256], sizes = [1, 128], strides = [1, 1]} : vector<1x384xf32> to vector<1x128xf32>
    %178 = vector.extract_strided_slice %166 {offsets = [0, 256], sizes = [1, 128], strides = [1, 1]} : vector<1x384xf32> to vector<1x128xf32>
    %179 = arith.mulf %175, %178 : vector<1x128xf32>
    %180 = arith.addf %177, %179 : vector<1x128xf32>
    %181 = math.tanh %180 : vector<1x128xf32>
    %182 = arith.subf %163, %181 : vector<1x128xf32>
    %183 = arith.mulf %176, %182 : vector<1x128xf32>
    %184 = arith.addf %181, %183 : vector<1x128xf32>
    %185 = vector.extract_strided_slice %15 {offsets = [0, 0], sizes = [1, 384], strides = [1, 1]} : vector<8x384xf32> to vector<1x384xf32>
    %cst_38 = arith.constant dense<0.000000e+00> : vector<1x384xf32>
    %186 = tpu.matmul %184, %2, %cst_38 {dimension_numbers = #tpu.dot_dimension_numbers<[1], [0], [0], [1], [0, 0, 1, 1], [], []>} : vector<1x128xf32>, vector<128x384xf32>, vector<1x384xf32> -> vector<1x384xf32>
    %187 = arith.addf %186, %3 : vector<1x384xf32>
    %188 = vector.extract_strided_slice %185 {offsets = [0, 0], sizes = [1, 256], strides = [1, 1]} : vector<1x384xf32> to vector<1x256xf32>
    %189 = vector.extract_strided_slice %187 {offsets = [0, 0], sizes = [1, 256], strides = [1, 1]} : vector<1x384xf32> to vector<1x256xf32>
    %190 = arith.addf %188, %189 : vector<1x256xf32>
    %191 = arith.negf %190 : vector<1x256xf32>
    %192 = math.exp %191 : vector<1x256xf32>
    %cst_39 = arith.constant 1.000000e+00 : f32
    %193 = vector.broadcast %cst_39 : f32 to vector<1x256xf32>
    %194 = arith.addf %193, %192 : vector<1x256xf32>
    %195 = arith.divf %193, %194 : vector<1x256xf32>
    %196 = vector.extract_strided_slice %195 {offsets = [0, 0], sizes = [1, 128], strides = [1, 1]} : vector<1x256xf32> to vector<1x128xf32>
    %197 = vector.extract_strided_slice %195 {offsets = [0, 128], sizes = [1, 128], strides = [1, 1]} : vector<1x256xf32> to vector<1x128xf32>
    %198 = vector.extract_strided_slice %185 {offsets = [0, 256], sizes = [1, 128], strides = [1, 1]} : vector<1x384xf32> to vector<1x128xf32>
    %199 = vector.extract_strided_slice %187 {offsets = [0, 256], sizes = [1, 128], strides = [1, 1]} : vector<1x384xf32> to vector<1x128xf32>
    %200 = arith.mulf %196, %199 : vector<1x128xf32>
    %201 = arith.addf %198, %200 : vector<1x128xf32>
    %202 = math.tanh %201 : vector<1x128xf32>
    %203 = arith.subf %184, %202 : vector<1x128xf32>
    %204 = arith.mulf %197, %203 : vector<1x128xf32>
    %205 = arith.addf %202, %204 : vector<1x128xf32>
    %206 = vector.extract_strided_slice %15 {offsets = [1, 0], sizes = [1, 384], strides = [1, 1]} : vector<8x384xf32> to vector<1x384xf32>
    %cst_40 = arith.constant dense<0.000000e+00> : vector<1x384xf32>
    %207 = tpu.matmul %205, %2, %cst_40 {dimension_numbers = #tpu.dot_dimension_numbers<[1], [0], [0], [1], [0, 0, 1, 1], [], []>} : vector<1x128xf32>, vector<128x384xf32>, vector<1x384xf32> -> vector<1x384xf32>
    %208 = arith.addf %207, %3 : vector<1x384xf32>
    %209 = vector.extract_strided_slice %206 {offsets = [0, 0], sizes = [1, 256], strides = [1, 1]} : vector<1x384xf32> to vector<1x256xf32>
    %210 = vector.extract_strided_slice %208 {offsets = [0, 0], sizes = [1, 256], strides = [1, 1]} : vector<1x384xf32> to vector<1x256xf32>
    %211 = arith.addf %209, %210 : vector<1x256xf32>
    %212 = arith.negf %211 : vector<1x256xf32>
    %213 = math.exp %212 : vector<1x256xf32>
    %cst_41 = arith.constant 1.000000e+00 : f32
    %214 = vector.broadcast %cst_41 : f32 to vector<1x256xf32>
    %215 = arith.addf %214, %213 : vector<1x256xf32>
    %216 = arith.divf %214, %215 : vector<1x256xf32>
    %217 = vector.extract_strided_slice %216 {offsets = [0, 0], sizes = [1, 128], strides = [1, 1]} : vector<1x256xf32> to vector<1x128xf32>
    %218 = vector.extract_strided_slice %216 {offsets = [0, 128], sizes = [1, 128], strides = [1, 1]} : vector<1x256xf32> to vector<1x128xf32>
    %219 = vector.extract_strided_slice %206 {offsets = [0, 256], sizes = [1, 128], strides = [1, 1]} : vector<1x384xf32> to vector<1x128xf32>
    %220 = vector.extract_strided_slice %208 {offsets = [0, 256], sizes = [1, 128], strides = [1, 1]} : vector<1x384xf32> to vector<1x128xf32>
    %221 = arith.mulf %217, %220 : vector<1x128xf32>
    %222 = arith.addf %219, %221 : vector<1x128xf32>
    %223 = math.tanh %222 : vector<1x128xf32>
    %224 = arith.subf %205, %223 : vector<1x128xf32>
    %225 = arith.mulf %218, %224 : vector<1x128xf32>
    %226 = arith.addf %223, %225 : vector<1x128xf32>
    %227 = vector.extract_strided_slice %15 {offsets = [2, 0], sizes = [1, 384], strides = [1, 1]} : vector<8x384xf32> to vector<1x384xf32>
    %cst_42 = arith.constant dense<0.000000e+00> : vector<1x384xf32>
    %228 = tpu.matmul %226, %2, %cst_42 {dimension_numbers = #tpu.dot_dimension_numbers<[1], [0], [0], [1], [0, 0, 1, 1], [], []>} : vector<1x128xf32>, vector<128x384xf32>, vector<1x384xf32> -> vector<1x384xf32>
    %229 = arith.addf %228, %3 : vector<1x384xf32>
    %230 = vector.extract_strided_slice %227 {offsets = [0, 0], sizes = [1, 256], strides = [1, 1]} : vector<1x384xf32> to vector<1x256xf32>
    %231 = vector.extract_strided_slice %229 {offsets = [0, 0], sizes = [1, 256], strides = [1, 1]} : vector<1x384xf32> to vector<1x256xf32>
    %232 = arith.addf %230, %231 : vector<1x256xf32>
    %233 = arith.negf %232 : vector<1x256xf32>
    %234 = math.exp %233 : vector<1x256xf32>
    %cst_43 = arith.constant 1.000000e+00 : f32
    %235 = vector.broadcast %cst_43 : f32 to vector<1x256xf32>
    %236 = arith.addf %235, %234 : vector<1x256xf32>
    %237 = arith.divf %235, %236 : vector<1x256xf32>
    %238 = vector.extract_strided_slice %237 {offsets = [0, 0], sizes = [1, 128], strides = [1, 1]} : vector<1x256xf32> to vector<1x128xf32>
    %239 = vector.extract_strided_slice %237 {offsets = [0, 128], sizes = [1, 128], strides = [1, 1]} : vector<1x256xf32> to vector<1x128xf32>
    %240 = vector.extract_strided_slice %227 {offsets = [0, 256], sizes = [1, 128], strides = [1, 1]} : vector<1x384xf32> to vector<1x128xf32>
    %241 = vector.extract_strided_slice %229 {offsets = [0, 256], sizes = [1, 128], strides = [1, 1]} : vector<1x384xf32> to vector<1x128xf32>
    %242 = arith.mulf %238, %241 : vector<1x128xf32>
    %243 = arith.addf %240, %242 : vector<1x128xf32>
    %244 = math.tanh %243 : vector<1x128xf32>
    %245 = arith.subf %226, %244 : vector<1x128xf32>
    %246 = arith.mulf %239, %245 : vector<1x128xf32>
    %247 = arith.addf %244, %246 : vector<1x128xf32>
    %248 = vector.extract_strided_slice %15 {offsets = [3, 0], sizes = [1, 384], strides = [1, 1]} : vector<8x384xf32> to vector<1x384xf32>
    %cst_44 = arith.constant dense<0.000000e+00> : vector<1x384xf32>
    %249 = tpu.matmul %247, %2, %cst_44 {dimension_numbers = #tpu.dot_dimension_numbers<[1], [0], [0], [1], [0, 0, 1, 1], [], []>} : vector<1x128xf32>, vector<128x384xf32>, vector<1x384xf32> -> vector<1x384xf32>
    %250 = arith.addf %249, %3 : vector<1x384xf32>
    %251 = vector.extract_strided_slice %248 {offsets = [0, 0], sizes = [1, 256], strides = [1, 1]} : vector<1x384xf32> to vector<1x256xf32>
    %252 = vector.extract_strided_slice %250 {offsets = [0, 0], sizes = [1, 256], strides = [1, 1]} : vector<1x384xf32> to vector<1x256xf32>
    %253 = arith.addf %251, %252 : vector<1x256xf32>
    %254 = arith.negf %253 : vector<1x256xf32>
    %255 = math.exp %254 : vector<1x256xf32>
    %cst_45 = arith.constant 1.000000e+00 : f32
    %256 = vector.broadcast %cst_45 : f32 to vector<1x256xf32>
    %257 = arith.addf %256, %255 : vector<1x256xf32>
    %258 = arith.divf %256, %257 : vector<1x256xf32>
    %259 = vector.extract_strided_slice %258 {offsets = [0, 0], sizes = [1, 128], strides = [1, 1]} : vector<1x256xf32> to vector<1x128xf32>
    %260 = vector.extract_strided_slice %258 {offsets = [0, 128], sizes = [1, 128], strides = [1, 1]} : vector<1x256xf32> to vector<1x128xf32>
    %261 = vector.extract_strided_slice %248 {offsets = [0, 256], sizes = [1, 128], strides = [1, 1]} : vector<1x384xf32> to vector<1x128xf32>
    %262 = vector.extract_strided_slice %250 {offsets = [0, 256], sizes = [1, 128], strides = [1, 1]} : vector<1x384xf32> to vector<1x128xf32>
    %263 = arith.mulf %259, %262 : vector<1x128xf32>
    %264 = arith.addf %261, %263 : vector<1x128xf32>
    %265 = math.tanh %264 : vector<1x128xf32>
    %266 = arith.subf %247, %265 : vector<1x128xf32>
    %267 = arith.mulf %260, %266 : vector<1x128xf32>
    %268 = arith.addf %265, %267 : vector<1x128xf32>
    %269 = vector.extract_strided_slice %15 {offsets = [4, 0], sizes = [1, 384], strides = [1, 1]} : vector<8x384xf32> to vector<1x384xf32>
    %cst_46 = arith.constant dense<0.000000e+00> : vector<1x384xf32>
    %270 = tpu.matmul %268, %2, %cst_46 {dimension_numbers = #tpu.dot_dimension_numbers<[1], [0], [0], [1], [0, 0, 1, 1], [], []>} : vector<1x128xf32>, vector<128x384xf32>, vector<1x384xf32> -> vector<1x384xf32>
    %271 = arith.addf %270, %3 : vector<1x384xf32>
    %272 = vector.extract_strided_slice %269 {offsets = [0, 0], sizes = [1, 256], strides = [1, 1]} : vector<1x384xf32> to vector<1x256xf32>
    %273 = vector.extract_strided_slice %271 {offsets = [0, 0], sizes = [1, 256], strides = [1, 1]} : vector<1x384xf32> to vector<1x256xf32>
    %274 = arith.addf %272, %273 : vector<1x256xf32>
    %275 = arith.negf %274 : vector<1x256xf32>
    %276 = math.exp %275 : vector<1x256xf32>
    %cst_47 = arith.constant 1.000000e+00 : f32
    %277 = vector.broadcast %cst_47 : f32 to vector<1x256xf32>
    %278 = arith.addf %277, %276 : vector<1x256xf32>
    %279 = arith.divf %277, %278 : vector<1x256xf32>
    %280 = vector.extract_strided_slice %279 {offsets = [0, 0], sizes = [1, 128], strides = [1, 1]} : vector<1x256xf32> to vector<1x128xf32>
    %281 = vector.extract_strided_slice %279 {offsets = [0, 128], sizes = [1, 128], strides = [1, 1]} : vector<1x256xf32> to vector<1x128xf32>
    %282 = vector.extract_strided_slice %269 {offsets = [0, 256], sizes = [1, 128], strides = [1, 1]} : vector<1x384xf32> to vector<1x128xf32>
    %283 = vector.extract_strided_slice %271 {offsets = [0, 256], sizes = [1, 128], strides = [1, 1]} : vector<1x384xf32> to vector<1x128xf32>
    %284 = arith.mulf %280, %283 : vector<1x128xf32>
    %285 = arith.addf %282, %284 : vector<1x128xf32>
    %286 = math.tanh %285 : vector<1x128xf32>
    %287 = arith.subf %268, %286 : vector<1x128xf32>
    %288 = arith.mulf %281, %287 : vector<1x128xf32>
    %289 = arith.addf %286, %288 : vector<1x128xf32>
    %290 = vector.extract_strided_slice %15 {offsets = [5, 0], sizes = [1, 384], strides = [1, 1]} : vector<8x384xf32> to vector<1x384xf32>
    %cst_48 = arith.constant dense<0.000000e+00> : vector<1x384xf32>
    %291 = tpu.matmul %289, %2, %cst_48 {dimension_numbers = #tpu.dot_dimension_numbers<[1], [0], [0], [1], [0, 0, 1, 1], [], []>} : vector<1x128xf32>, vector<128x384xf32>, vector<1x384xf32> -> vector<1x384xf32>
    %292 = arith.addf %291, %3 : vector<1x384xf32>
    %293 = vector.extract_strided_slice %290 {offsets = [0, 0], sizes = [1, 256], strides = [1, 1]} : vector<1x384xf32> to vector<1x256xf32>
    %294 = vector.extract_strided_slice %292 {offsets = [0, 0], sizes = [1, 256], strides = [1, 1]} : vector<1x384xf32> to vector<1x256xf32>
    %295 = arith.addf %293, %294 : vector<1x256xf32>
    %296 = arith.negf %295 : vector<1x256xf32>
    %297 = math.exp %296 : vector<1x256xf32>
    %cst_49 = arith.constant 1.000000e+00 : f32
    %298 = vector.broadcast %cst_49 : f32 to vector<1x256xf32>
    %299 = arith.addf %298, %297 : vector<1x256xf32>
    %300 = arith.divf %298, %299 : vector<1x256xf32>
    %301 = vector.extract_strided_slice %300 {offsets = [0, 0], sizes = [1, 128], strides = [1, 1]} : vector<1x256xf32> to vector<1x128xf32>
    %302 = vector.extract_strided_slice %300 {offsets = [0, 128], sizes = [1, 128], strides = [1, 1]} : vector<1x256xf32> to vector<1x128xf32>
    %303 = vector.extract_strided_slice %290 {offsets = [0, 256], sizes = [1, 128], strides = [1, 1]} : vector<1x384xf32> to vector<1x128xf32>
    %304 = vector.extract_strided_slice %292 {offsets = [0, 256], sizes = [1, 128], strides = [1, 1]} : vector<1x384xf32> to vector<1x128xf32>
    %305 = arith.mulf %301, %304 : vector<1x128xf32>
    %306 = arith.addf %303, %305 : vector<1x128xf32>
    %307 = math.tanh %306 : vector<1x128xf32>
    %308 = arith.subf %289, %307 : vector<1x128xf32>
    %309 = arith.mulf %302, %308 : vector<1x128xf32>
    %310 = arith.addf %307, %309 : vector<1x128xf32>
    %311 = vector.extract_strided_slice %15 {offsets = [6, 0], sizes = [1, 384], strides = [1, 1]} : vector<8x384xf32> to vector<1x384xf32>
    %cst_50 = arith.constant dense<0.000000e+00> : vector<1x384xf32>
    %312 = tpu.matmul %310, %2, %cst_50 {dimension_numbers = #tpu.dot_dimension_numbers<[1], [0], [0], [1], [0, 0, 1, 1], [], []>} : vector<1x128xf32>, vector<128x384xf32>, vector<1x384xf32> -> vector<1x384xf32>
    %313 = arith.addf %312, %3 : vector<1x384xf32>
    %314 = vector.extract_strided_slice %311 {offsets = [0, 0], sizes = [1, 256], strides = [1, 1]} : vector<1x384xf32> to vector<1x256xf32>
    %315 = vector.extract_strided_slice %313 {offsets = [0, 0], sizes = [1, 256], strides = [1, 1]} : vector<1x384xf32> to vector<1x256xf32>
    %316 = arith.addf %314, %315 : vector<1x256xf32>
    %317 = arith.negf %316 : vector<1x256xf32>
    %318 = math.exp %317 : vector<1x256xf32>
    %cst_51 = arith.constant 1.000000e+00 : f32
    %319 = vector.broadcast %cst_51 : f32 to vector<1x256xf32>
    %320 = arith.addf %319, %318 : vector<1x256xf32>
    %321 = arith.divf %319, %320 : vector<1x256xf32>
    %322 = vector.extract_strided_slice %321 {offsets = [0, 0], sizes = [1, 128], strides = [1, 1]} : vector<1x256xf32> to vector<1x128xf32>
    %323 = vector.extract_strided_slice %321 {offsets = [0, 128], sizes = [1, 128], strides = [1, 1]} : vector<1x256xf32> to vector<1x128xf32>
    %324 = vector.extract_strided_slice %311 {offsets = [0, 256], sizes = [1, 128], strides = [1, 1]} : vector<1x384xf32> to vector<1x128xf32>
    %325 = vector.extract_strided_slice %313 {offsets = [0, 256], sizes = [1, 128], strides = [1, 1]} : vector<1x384xf32> to vector<1x128xf32>
    %326 = arith.mulf %322, %325 : vector<1x128xf32>
    %327 = arith.addf %324, %326 : vector<1x128xf32>
    %328 = math.tanh %327 : vector<1x128xf32>
    %329 = arith.subf %310, %328 : vector<1x128xf32>
    %330 = arith.mulf %323, %329 : vector<1x128xf32>
    %331 = arith.addf %328, %330 : vector<1x128xf32>
    %332 = vector.extract_strided_slice %15 {offsets = [7, 0], sizes = [1, 384], strides = [1, 1]} : vector<8x384xf32> to vector<1x384xf32>
    %cst_52 = arith.constant dense<0.000000e+00> : vector<1x384xf32>
    %333 = tpu.matmul %331, %2, %cst_52 {dimension_numbers = #tpu.dot_dimension_numbers<[1], [0], [0], [1], [0, 0, 1, 1], [], []>} : vector<1x128xf32>, vector<128x384xf32>, vector<1x384xf32> -> vector<1x384xf32>
    %334 = arith.addf %333, %3 : vector<1x384xf32>
    %335 = vector.extract_strided_slice %332 {offsets = [0, 0], sizes = [1, 256], strides = [1, 1]} : vector<1x384xf32> to vector<1x256xf32>
    %336 = vector.extract_strided_slice %334 {offsets = [0, 0], sizes = [1, 256], strides = [1, 1]} : vector<1x384xf32> to vector<1x256xf32>
    %337 = arith.addf %335, %336 : vector<1x256xf32>
    %338 = arith.negf %337 : vector<1x256xf32>
    %339 = math.exp %338 : vector<1x256xf32>
    %cst_53 = arith.constant 1.000000e+00 : f32
    %340 = vector.broadcast %cst_53 : f32 to vector<1x256xf32>
    %341 = arith.addf %340, %339 : vector<1x256xf32>
    %342 = arith.divf %340, %341 : vector<1x256xf32>
    %343 = vector.extract_strided_slice %342 {offsets = [0, 0], sizes = [1, 128], strides = [1, 1]} : vector<1x256xf32> to vector<1x128xf32>
    %344 = vector.extract_strided_slice %342 {offsets = [0, 128], sizes = [1, 128], strides = [1, 1]} : vector<1x256xf32> to vector<1x128xf32>
    %345 = vector.extract_strided_slice %332 {offsets = [0, 256], sizes = [1, 128], strides = [1, 1]} : vector<1x384xf32> to vector<1x128xf32>
    %346 = vector.extract_strided_slice %334 {offsets = [0, 256], sizes = [1, 128], strides = [1, 1]} : vector<1x384xf32> to vector<1x128xf32>
    %347 = arith.mulf %343, %346 : vector<1x128xf32>
    %348 = arith.addf %345, %347 : vector<1x128xf32>
    %349 = math.tanh %348 : vector<1x128xf32>
    %350 = arith.subf %331, %349 : vector<1x128xf32>
    %351 = arith.mulf %344, %350 : vector<1x128xf32>
    %352 = arith.addf %349, %351 : vector<1x128xf32>
    %c0_54 = arith.constant 0 : index
    %c0_55 = arith.constant 0 : index
    %353 = vector.load %arg17[%c0_54, %c0_55] : memref<1x128xf32, #tpu.memory_space<vmem>>, vector<1x128xf32>
    tpu.vector_store %arg17[%c0_54, %c0_55], %352 {strides = array<i32>} : memref<1x128xf32, #tpu.memory_space<vmem>>, vector<1x128xf32>,
    %354 = tpu.concatenate %205, %226, %247, %268, %289, %310, %331, %352 in 0 : vector<1x128xf32>, vector<1x128xf32>, vector<1x128xf32>, vector<1x128xf32>, vector<1x128xf32>, vector<1x128xf32>, vector<1x128xf32>, vector<1x128xf32> -> vector<8x128xf32>
    %c0_56 = arith.constant 0 : index
    %c0_57 = arith.constant 0 : index
    %355 = vector.load %arg12[%c0_56, %c0_57] : memref<128x16xf32, #tpu.memory_space<vmem>>, vector<128x16xf32>
    %cst_58 = arith.constant dense<0.000000e+00> : vector<8x16xf32>
    %356 = tpu.matmul %354, %355, %cst_58 {dimension_numbers = #tpu.dot_dimension_numbers<[1], [0], [0], [1], [0, 0, 1, 1], [], []>} : vector<8x128xf32>, vector<128x16xf32>, vector<8x16xf32> -> vector<8x16xf32>
    %c0_59 = arith.constant 0 : index
    %c0_60 = arith.constant 0 : index
    %357 = vector.load %arg13[%c0_59, %c0_60] : memref<1x16xf32, #tpu.memory_space<vmem>>, vector<1x16xf32>
    %358 = vector.broadcast %357 : vector<1x16xf32> to vector<8x16xf32>
    %359 = arith.addf %356, %358 : vector<8x16xf32>
    %cst_61 = arith.constant dense<0xFF800000> : vector<8xf32>
    %360 = vector.multi_reduction <maximumf>, %359, %cst_61 [1] : vector<8x16xf32> to vector<8xf32>
    %361 = vector.shape_cast %360 : vector<8xf32> to vector<8x1xf32>
    %362 = vector.broadcast %361 : vector<8x1xf32> to vector<8x16xf32>
    %363 = arith.subf %359, %362 : vector<8x16xf32>
    %364 = math.exp %363 : vector<8x16xf32>
    %cst_62 = arith.constant dense<0.000000e+00> : vector<8xf32>
    %365 = vector.multi_reduction <add>, %364, %cst_62 [1] : vector<8x16xf32> to vector<8xf32>
    %366 = vector.shape_cast %365 : vector<8xf32> to vector<8x1xf32>
    %367 = tpu.reciprocal %366 {approx = true} : vector<8x1xf32> -> vector<8x1xf32>
    %368 = vector.broadcast %367 : vector<8x1xf32> to vector<8x16xf32>
    %369 = arith.mulf %364, %368 : vector<8x16xf32>
    %c0_63 = arith.constant 0 : index
    %c0_64 = arith.constant 0 : index
    %370 = vector.load %arg2[%c0_63, %c0_64] : memref<8x16xf32, #tpu.memory_space<vmem>>, vector<8x16xf32>
    %371 = arith.addf %369, %370 : vector<8x16xf32>
    %c0_65 = arith.constant 0 : index
    %c0_66 = arith.constant 0 : index
    %372 = vector.load %arg14[%c0_65, %c0_66] : memref<16x16xf32, #tpu.memory_space<vmem>>, vector<16x16xf32>
    %cst_67 = arith.constant dense<0.000000e+00> : vector<8x16xf32>
    %373 = tpu.matmul %371, %372, %cst_67 {dimension_numbers = #tpu.dot_dimension_numbers<[1], [0], [0], [1], [0, 0, 1, 1], [], []>} : vector<8x16xf32>, vector<16x16xf32>, vector<8x16xf32> -> vector<8x16xf32>
    %c0_68 = arith.constant 0 : index
    %c0_69 = arith.constant 0 : index
    %374 = vector.load %arg15[%c0_68, %c0_69] : memref<1x16xf32, #tpu.memory_space<vmem>>, vector<1x16xf32>
    %375 = vector.broadcast %374 : vector<1x16xf32> to vector<8x16xf32>
    %376 = arith.addf %373, %375 : vector<8x16xf32>
    %c0_70 = arith.constant 0 : index
    %c0_71 = arith.constant 0 : index
    %377 = vector.load %arg16[%c0_70, %c0_71] : memref<8x16xf32, #tpu.memory_space<vmem>>, vector<8x16xf32>
    tpu.vector_store %arg16[%c0_70, %c0_71], %376 {strides = array<i32>} : memref<8x16xf32, #tpu.memory_space<vmem>>, vector<8x16xf32>,
    return
  }
}

</mosaic_0001>

<bundles_post_ra>
// kernel: tpu_custom_call.1
= control target key start
LH: loop header
LB: loop body
LE: loop exit
PB: predicated region body
PF: predicated region fallthrough
CT: control target
= control target key end

     0   :  { %s6865_s0 = inlined_call_operand.vmem [shape: f32[8,16], index: 0, kind: input, shape index: {}]   ;;  %s6866_s1 = inlined_call_operand.vmem [shape: f32[8,16], index: 1, kind: input, shape index: {}]   ;;  %s6867_s2 = inlined_call_operand.vmem [shape: f32[8,16], index: 2, kind: input, shape index: {}]   ;;  %s6868_s3 = inlined_call_operand.vmem [shape: f32[1,128], index: 3, kind: input, shape index: {}]   ;;  %s6869_s4 = inlined_call_operand.vmem [shape: f32[16,384], index: 4, kind: input, shape index: {}]   ;;  %s6870_s5 = inlined_call_operand.hbm [shape: f32[128,384], index: 5, kind: input, shape index: {}]   ;;  %s6871_s6 = inlined_call_operand.vmem [shape: f32[1,384], index: 6, kind: input, shape index: {}]   ;;  %s6872_s7 = inlined_call_operand.vmem [shape: f32[1,384], index: 7, kind: input, shape index: {}]   ;;  %s6873_s8 = inlined_call_operand.vmem [shape: f32[16,384], index: 8, kind: input, shape index: {}]   ;;  %s6874_s9 = inlined_call_operand.hbm [shape: f32[128,384], index: 9, kind: input, shape index: {}]   ;;  %s6875_s10 = inlined_call_operand.vmem [shape: f32[1,384], index: 10, kind: input, shape index: {}]   ;;  %s6876_s11 = inlined_call_operand.vmem [shape: f32[1,384], index: 11, kind: input, shape index: {}]   ;;  %s6877_s12 = inlined_call_operand.vmem [shape: f32[128,16], index: 12, kind: input, shape index: {}]   ;;  %s6878_s13 = inlined_call_operand.vmem [shape: f32[1,16], index: 13, kind: input, shape index: {}]   ;;  %s6879_s14 = inlined_call_operand.vmem [shape: f32[16,16], index: 14, kind: input, shape index: {}]   ;;  %s6880_s15 = inlined_call_operand.vmem [shape: f32[1,16], index: 15, kind: input, shape index: {}]   ;;  %s6881_s16 = inlined_call_operand.hbm [shape: f32[8,16], index: 16, kind: output, shape index: {0}]   ;;  %s6882_s17 = inlined_call_operand.hbm [shape: f32[1,128], index: 17, kind: output, shape index: {1}]  }
   0x1   :  { %6950 = sst [smem:[#allocation28_spill]] %s6865_s0 }
   0x2   :  { %6951 = sst [smem:[#allocation29_spill]] %s6866_s1 }
   0x3   :  { %23 = vsyncpa [#allocation3], 0 }
   0x4   :  { %24 = vsyncpa [#allocation6], 0 }
   0x5   :  { %25 = vsyncpa [#allocation4], 0 }
   0x6   :  { %26 = vsyncpa [#allocation9], 0  ;;  %s4927_s24 = smov [#allocation2]  }
   0x7   :  { %s42_s25 = sshll.u32 %s4927_s24, 4  ;;  %s43_s25 = int_to_ptr.vmem [resolvable:$true] %s42_s25 }
   0x8   :  { %s4847_s26 = scalar_lea.vmem %s43_s25, 6144  ;;  %p4852_p1 = scmp.lt.s32.totalorder %s43_s25, %s43_s25 }
   0x9   :  { %p4848_p0 = scmp.ne.s32.totalorder %s43_s25, %s4847_s26  ;;  %p4853_p2 = scmp.lt.s32.totalorder %s4847_s26, %s4847_s26 }
   0xb   :  { %p4854_p3 = por %p4853_p2, %p4852_p1 }
   0xd   :  { %p4855_p4 = pnand %p4854_p3, %p4848_p0 }
   0xf   :  { %4858 = shalt.err (!%p4855_p4)
}
  0x10   :  { %s4928_s27 = smov 384   ;;  %s4929_s28 = smov 24  }
  0x11   :  { %48 = dma.hbm_to_vmem [thread:$0]  %s6870_s5, 6144, %s43_s25, [#allocation3], %s4928_s27, %s4928_s27, %s4929_s28  }
  0x12   :  { %s4930_s30 = smov [#allocation5]  }
  0x13   :  { %s60_s18 = sshll.u32 %s4930_s30, 4  ;;  %s61_s18 = int_to_ptr.vmem [resolvable:$true] %s60_s18 }
  0x14   :  { %s4867_s19 = scalar_lea.vmem %s61_s18, 6144  ;;  %p4872_p6 = scmp.lt.s32.totalorder %s61_s18, %s61_s18 }
  0x15   :  { %p4868_p5 = scmp.ne.s32.totalorder %s61_s18, %s4867_s19  ;;  %p4873_p7 = scmp.lt.s32.totalorder %s4867_s19, %s4867_s19 }
  0x17   :  { %p4874_p8 = por %p4873_p7, %p4872_p6 }
  0x19   :  { %p4875_p9 = pnand %p4874_p8, %p4868_p5 }
  0x1b   :  { %4878 = shalt.err (!%p4875_p9)
}
  0x1c   :  { %66 = dma.hbm_to_vmem [thread:$0]  %s6874_s9, 6144, %s61_s18, [#allocation6], %s4928_s27, %s4928_s27, %s4929_s28  }
  0x1d   :  { %4919 = dma.done.wait [#allocation3], 6144  }
  0x1e   :  { %4920 = vsyncadd [#allocation3], 4294961152 }
  0x1f   :  { %4921 = dma.done.wait [#allocation6], 6144  }
  0x20   :  { %4922 = vsyncadd [#allocation6], 4294961152  ;;  %v6883_v0 = vmov 0.0   ;;  %v5033_v1 = vld [vmem:[#allocation2 + $0x170] sm:$0xff]  ;;  %v5035_v2 = vld [vmem:[#allocation2 + $0x168] sm:$0xff]  ;;  %s6953_s29 = sld [smem:[#allocation28_spill]] }
  0x21   :  { %275 = vmatprep.mubr.f32.mxu1 %v6883_v0  ;;  %601 = vmatprep.mubr.f32.mxu0 %v6883_v0  ;;  %6952 = vst [vmem:[#allocation14_spill] sm:$0xff] %v5033_v1  ;;  %v5037_v3 = vld [vmem:[#allocation2 + $0x158] sm:$0xff]  ;;  %v5040_v4 = vld [vmem:[#allocation2 + $0x150] sm:$0xff]  ;;  %v5043_v5 = vld [vmem:[#allocation2 + $0x140] sm:$0xff]  ;;  %vm207_vm0 = vcmask 130048   ;;  %vm4932_vm1 = vmmov 0  }
  0x22   :  { %537 = vmatprep.subr.mxu0 %v5033_v1  ;;  %v5046_v6 = vld [vmem:[#allocation2 + $0x138] sm:$0xff]  ;;  %v5049_v7 = vld [vmem:[#allocation2 + $0x128] sm:$0xff]  ;;  %v5052_v8 = vld [vmem:[#allocation2 + $0x120] sm:$0xff]  ;;  %s6954_s26 = sld [smem:[#allocation29_spill]]  ;;  %vm3385_vm2 = vcmask 1040384   ;;  %vm3387_vm3 = vcmask 1041408  }
  0x23   :  { %538 = vmatpush1.msra.mxu0 %v5035_v2  ;;  %v188_v9 = vld [vmem:[%s6869_s4 + $0x20] sm:$0xff]  ;;  %v5058_v10 = vld [vmem:[#allocation2 + $0x110] sm:$0xff]  ;;  %v187_v11 = vld [vmem:[%s6869_s4 + $0x18] sm:$0xff]  ;;  %vm3389_vm4 = vcmask 1042432   ;;  %vm3391_vm5 = vcmask 1043456   ;;  %vm3393_vm6 = vcmask 1044480  }
  0x24   :  { %539 = vmatprep.subr.mxu0 %v5037_v3  ;;  %239 = vmatprep.subr.mxu1 %v188_v9  ;;  %v185_v12 = vld [vmem:[%s6869_s4 + $0x8] sm:$0xff]  ;;  %v184_v14 = vld [vmem:[%s6869_s4] sm:$0xff]  ;;  %v5073_v15 = vld [vmem:[#allocation2 + $0xf8] sm:$0xff]  ;;  %v192_v9 = vlaneseq  ;;  %vm3395_vm7 = vcmask 1045504   ;;  %vm3397_vm8 = vcmask 1046528  }
  0x25   :  { %540 = vmatpush1.msra.mxu0 %v5040_v4  ;;  %v5067_v13 = vld [vmem:[#allocation2 + $0x108] sm:$0xff]  ;;  %240 = vmatpush1.msra.mxu1 %v187_v11  ;;  %v5079_v17 = vld [vmem:[#allocation2 + $0xf0] sm:$0xff]  ;;  %v5085_v19 = vld [vmem:[#allocation2 + $0xe0] sm:$0xff] }
  0x26   :  { %541 = vmatprep.subr.mxu0 %v5043_v5  ;;  %241 = vmatprep.subr.mxu1 %v185_v12  ;;  %v183_v16 = vld [vmem:[%s6953_s29] sm:$0xff]  ;;  %v189_v18 = vld [vmem:[%s6869_s4 + $0x28] sm:$0xff]  ;;  %v5089_v20 = vld [vmem:[#allocation2 + $0xd8] sm:$0xff] }
  0x27   :  { %542 = vmatpush1.msra.mxu0 %v5046_v6  ;;  %242 = vmatpush1.msra.mxu1 %v184_v14  ;;  %v186_v21 = vld [vmem:[%s6869_s4 + $0x10] sm:$0xff]  ;;  %v5096_v22 = vld [vmem:[#allocation2 + $0xc8] sm:$0xff]  ;;  %v5099_v23 = vld [vmem:[#allocation2 + $0xc0] sm:$0xff]  ;;  %v193_v14 = vshrl.u32 %v192_v9, 7 }
  0x28   :  { %543 = vmatprep.subr.mxu0 %v5049_v7  ;;  %3955 = vmatprep.subr.mxu1 %v6883_v0  ;;  %v357_v24 = vld [vmem:[%s6873_s8 + $0x20] sm:$0xff]  ;;  %v5106_v25 = vld [vmem:[#allocation2 + $0xb0] sm:$0xff]  ;;  %v5109_v26 = vld [vmem:[#allocation2 + $0xa8] sm:$0xff] }
  0x29   :  { %544 = vmatpush1.msra.mxu0 %v5052_v8  ;;  %3618 = vmatmul.mubr.msk.f32.vlgmr.msra.gmra.mxu1 %vm207_vm0, %v183_v16  ;;  %v356_v27 = vld [vmem:[%s6873_s8 + $0x18] sm:$0xff]  ;;  %v354_v29 = vld [vmem:[%s6873_s8 + $0x8] sm:$0xff]  ;;  %v5123_v30 = vld [vmem:[#allocation2 + $0x90] sm:$0xff] }
  0x2a   :  { %545 = vmatprep.subr.mxu0 %v5058_v10  ;;  %3956 = vmatpush3.msra.mxu1 %v189_v18  ;;  %v5117_v28 = vld [vmem:[#allocation2 + $0x98] sm:$0xff]  ;;  %v353_v31 = vld [vmem:[%s6873_s8] sm:$0xff]  ;;  %v5136_v34 = vld [vmem:[#allocation2 + $0x68] sm:$0xff] }
  0x2b   :  { %546 = vmatpush1.msra.mxu0 %v5067_v13  ;;  %3957 = vmatprep.subr.mxu1 %v6883_v0  ;;  %v5130_v32 = vld [vmem:[#allocation2 + $0x80] sm:$0xff]  ;;  %v5133_v33 = vld [vmem:[#allocation2 + $0x78] sm:$0xff]  ;;  %v358_v37 = vld [vmem:[%s6873_s8 + $0x28] sm:$0xff] }
  0x2c   :  { %547 = vmatprep.subr.mxu0 %v5073_v15  ;;  %3958 = vmatpush3.msra.mxu1 %v186_v21  ;;  %v352_v35 = vld [vmem:[%s6954_s26] sm:$0xff]  ;;  %v5149_v38 = vld [vmem:[#allocation2 + $0x50] sm:$0xff]  ;;  %v5153_v39 = vld [vmem:[#allocation2 + $0x48] sm:$0xff]  ;;  %v5329_v21 = vsub.s32 0, %v193_v14 }
  0x2d   :  { %548 = vmatpush1.msra.mxu0 %v5079_v17  ;;  %3959 = vmatprep.mubr.msk.f32.mxu1 %vm4932_vm1, %v6883_v0  ;;  %v5142_v36 = vld [vmem:[#allocation2 + $0x60] sm:$0xff]  ;;  %v355_v40 = vld [vmem:[%s6873_s8 + $0x10] sm:$0xff]  ;;  %v5160_v41 = vld [vmem:[#allocation2 + $0x38] sm:$0xff]  ;;  %s4933_s8 = smov [#allocation8]  }
  0x2e   :  { %549 = vmatprep.subr.mxu0 %v5085_v19  ;;  %407 = vmatprep.subr.mxu1 %v357_v24  ;;  %v5163_v42 = vld [vmem:[#allocation2 + $0x30] sm:$0xff]  ;;  %v5167_v43 = vld [vmem:[#allocation2 + $0x20] sm:$0xff]  ;;  %v5170_v44 = vld [vmem:[#allocation2 + $0x18] sm:$0xff]  ;;  %6961 = vst [vmem:[#allocation21_spill] sm:$0xff] %v5329_v21  ;;  %s3604_s30 = sshll.u32 %s4933_s8, 4  ;;  %s3605_s30 = int_to_ptr.vmem [resolvable:$true] %s3604_s30 }
  0x2f   :  { %550 = vmatpush1.msra.mxu0 %v5089_v20  ;;  %3960 = vmatmul.mubr.msk.f32.vlgmr.msra.gmra.mxu1 %vm207_vm0, %v183_v16  ;;  %6955 = vst [vmem:[#allocation15_spill] sm:$0xff] %v5167_v43  ;;  %6956 = vst [vmem:[#allocation16_spill] sm:$0xff] %v5170_v44  ;;  %v5174_v45 = vld [vmem:[#allocation2 + $0x178] sm:$0xff]  ;;  %v5177_v46 = vld [vmem:[#allocation2 + $0x8] sm:$0xff]  ;;  %p4884_p11 = scmp.lt.s32.totalorder %s3605_s30, %s3605_s30 }
  0x30   :  { %551 = vmatprep.subr.mxu0 %v5096_v22  ;;  %408 = vmatpush1.msra.mxu1 %v356_v27  ;;  %6957 = vst [vmem:[#allocation17_spill] sm:$0xff] %v5177_v46  ;;  %v5181_v47 = vld [vmem:[#allocation2] sm:$0xff]  ;;  %v5195_v50 = vld [vmem:[#allocation2 + $0x148] sm:$0xff]  ;;  %v5201_v51 = vld [vmem:[#allocation2 + $0x130] sm:$0xff]  ;;  %v5331_v27 = vsub.s32 1, %v193_v14 }
  0x31   :  { %552 = vmatpush1.msra.mxu0 %v5099_v23  ;;  %409 = vmatprep.subr.mxu1 %v354_v29  ;;  %6958 = vst [vmem:[#allocation18_spill] sm:$0xff] %v5181_v47  ;;  %v5184_v48 = vld [vmem:[#allocation2 + $0x160] sm:$0xff]  ;;  %v5207_v52 = vld [vmem:[#allocation2 + $0x118] sm:$0xff]  ;;  %v5219_v54 = vld [vmem:[#allocation2 + $0xe8] sm:$0xff] }
  0x32   :  { %553 = vmatprep.subr.mxu0 %v5106_v25  ;;  %410 = vmatpush1.msra.mxu1 %v353_v31  ;;  %v5190_v49 = vld [vmem:[%s6868_s3] sm:$0x1]  ;;  %v5225_v55 = vld [vmem:[#allocation2 + $0xd0] sm:$0xff]  ;;  %v5231_v56 = vld [vmem:[#allocation2 + $0xb8] sm:$0xff]  ;;  %6962 = vst [vmem:[#allocation22_spill] sm:$0xff] %v5331_v27  ;;  %s4879_s3 = scalar_lea.vmem %s3605_s30, 16 }
  0x33   :  { %554 = vmatpush1.msra.mxu0 %v5109_v26  ;;  %443 = vmatprep.mubr.f32.mxu1 %v6883_v0  ;;  %v5213_v53 = vld [vmem:[#allocation2 + $0x100] sm:$0xff]  ;;  %v5243_v58 = vld [vmem:[#allocation2 + $0x88] sm:$0xff]  ;;  %v5249_v59 = vld [vmem:[#allocation2 + $0x70] sm:$0xff]  ;;  %p4880_p10 = scmp.ne.s32.totalorder %s3605_s30, %s4879_s3 }
  0x34   :  { %555 = vmatprep.subr.mxu0 %v5117_v28  ;;  %3962 = vmatprep.subr.mxu1 %v6883_v0  ;;  %v5237_v57 = vld [vmem:[#allocation2 + $0xa0] sm:$0xff]  ;;  %v5255_v60 = vld [vmem:[#allocation2 + $0x58] sm:$0xff]  ;;  %v5267_v62 = vld [vmem:[#allocation2 + $0x28] sm:$0xff] }
  0x35   :  { %556 = vmatpush1.msra.mxu0 %v5123_v30  ;;  %3620 = vmatmul.mubr.msk.f32.vlgmr.msra.gmra.mxu1 %vm207_vm0, %v352_v35  ;;  %v5261_v61 = vld [vmem:[#allocation2 + $0x40] sm:$0xff]  ;;  %6959 = vst [vmem:[#allocation19_spill] sm:$0xff] %v5267_v62  ;;  %v5273_v63 = vld [vmem:[#allocation2 + $0x10] sm:$0xff] }
  0x36   :  { %557 = vmatprep.subr.mxu0 %v5130_v32  ;;  %3963 = vmatpush3.msra.mxu1 %v358_v37  ;;  %6960 = vst [vmem:[#allocation20_spill] sm:$0xff] %v5273_v63  ;;  %v359_v18 = vld [vmem:[%s6875_s10] sm:$0x7]  ;;  %v5335_v37 = vsub.s32 2, %v193_v14 }
  0x37   :  { %558 = vmatpush1.msra.mxu0 %v5133_v33  ;;  %3964 = vmatprep.subr.mxu1 %v6883_v0  ;;  %v364_v29 = vrot.slane %v359_v18, %v5329_v21  ;;  %v368_v31 = vrot.slane %v359_v18, %v5331_v27 }
  0x38   :  { %559 = vmatprep.subr.mxu0 %v5136_v34  ;;  %3965 = vmatpush3.msra.mxu1 %v355_v40  ;;  %6963 = vst [vmem:[#allocation23_spill] sm:$0xff] %v5335_v37 }
  0x39   :  { %560 = vmatpush1.msra.mxu0 %v5142_v36  ;;  %3966 = vmatprep.mubr.msk.f32.mxu1 %vm4932_vm1, %v6883_v0 }
  0x3a   :  { %561 = vmatprep.subr.mxu0 %v5149_v38  ;;  %3969 = vmatprep.subr.mxu1 %v6883_v0 }
  0x3b   :  { %562 = vmatpush1.msra.mxu0 %v5153_v39  ;;  %3967 = vmatmul.mubr.msk.f32.vlgmr.msra.gmra.mxu1 %vm207_vm0, %v352_v35 }
  0x3c   :  { %563 = vmatprep.subr.mxu0 %v5160_v41  ;;  %3970 = vmatpush3.msra.mxu1 %v5174_v45 }
  0x3d   :  { %564 = vmatpush1.msra.mxu0 %v5163_v42  ;;  %3971 = vmatprep.subr.mxu1 %v6883_v0 }
  0x3e   :  { %565 = vmatprep.subr.mxu0 %v5167_v43  ;;  %3972 = vmatpush3.msra.mxu1 %v5184_v48 }
  0x3f   :  { %566 = vmatpush1.msra.mxu0 %v5170_v44  ;;  %3973 = vmatprep.subr.mxu1 %v6883_v0 }
  0x40   :  { %567 = vmatprep.subr.mxu0 %v5177_v46  ;;  %3974 = vmatpush3.msra.mxu1 %v5195_v50 }
  0x41   :  { %568 = vmatpush1.msra.mxu0 %v5181_v47  ;;  %4001 = vmatprep.mubr.msk.f32.mxu1 %vm4932_vm1, %v6883_v0 }
  0x42   :  { %602 = vmatmul.mubr.f32.vlgmr.msra.gmra.mxu0 %v5190_v49  ;;  %3975 = vmatprep.subr.mxu1 %v6883_v0 }
  0x43   :  { %698 = vmatprep.subr.mxu0 %v5033_v1  ;;  %3976 = vmatpush3.msra.mxu1 %v5201_v51 }
  0x44   :  { %699 = vmatpush1.msra.mxu0 %v5035_v2  ;;  %3977 = vmatprep.subr.mxu1 %v6883_v0 }
  0x45   :  { %700 = vmatprep.subr.mxu0 %v5037_v3  ;;  %3978 = vmatpush3.msra.mxu1 %v5207_v52 }
  0x46   :  { %701 = vmatpush1.msra.mxu0 %v5040_v4  ;;  %3979 = vmatprep.subr.mxu1 %v6883_v0 }
  0x47   :  { %702 = vmatprep.subr.mxu0 %v5043_v5  ;;  %3980 = vmatpush3.msra.mxu1 %v5213_v53 }
  0x48   :  { %703 = vmatpush1.msra.mxu0 %v5046_v6  ;;  %3981 = vmatprep.subr.mxu1 %v6883_v0 }
  0x49   :  { %704 = vmatprep.subr.mxu0 %v5049_v7  ;;  %3982 = vmatpush3.msra.mxu1 %v5219_v54 }
  0x4a   :  { %705 = vmatpush1.msra.mxu0 %v5052_v8  ;;  %3983 = vmatprep.subr.mxu1 %v6883_v0 }
  0x4b   :  { %706 = vmatprep.subr.mxu0 %v5058_v10  ;;  %3984 = vmatpush3.msra.mxu1 %v5225_v55 }
  0x4c   :  { %707 = vmatpush1.msra.mxu0 %v5067_v13  ;;  %3985 = vmatprep.subr.mxu1 %v6883_v0 }
  0x4d   :  { %708 = vmatprep.subr.mxu0 %v5073_v15  ;;  %3986 = vmatpush3.msra.mxu1 %v5231_v56 }
  0x4e   :  { %709 = vmatpush1.msra.mxu0 %v5079_v17  ;;  %3987 = vmatprep.subr.mxu1 %v6883_v0 }
  0x4f   :  { %710 = vmatprep.subr.mxu0 %v5085_v19  ;;  %3988 = vmatpush3.msra.mxu1 %v5237_v57 }
  0x50   :  { %711 = vmatpush1.msra.mxu0 %v5089_v20  ;;  %3989 = vmatprep.subr.mxu1 %v6883_v0 }
  0x51   :  { %712 = vmatprep.subr.mxu0 %v5096_v22  ;;  %3990 = vmatpush3.msra.mxu1 %v5243_v58 }
  0x52   :  { %713 = vmatpush1.msra.mxu0 %v5099_v23  ;;  %3991 = vmatprep.subr.mxu1 %v6883_v0 }
  0x53   :  { %714 = vmatprep.subr.mxu0 %v5106_v25  ;;  %3992 = vmatpush3.msra.mxu1 %v5249_v59 }
  0x54   :  { %715 = vmatpush1.msra.mxu0 %v5109_v26  ;;  %3993 = vmatprep.subr.mxu1 %v6883_v0 }
  0x55   :  { %716 = vmatprep.subr.mxu0 %v5117_v28  ;;  %3994 = vmatpush3.msra.mxu1 %v5255_v60 }
  0x56   :  { %717 = vmatpush1.msra.mxu0 %v5123_v30  ;;  %3995 = vmatprep.subr.mxu1 %v6883_v0 }
  0x57   :  { %718 = vmatprep.subr.mxu0 %v5130_v32  ;;  %3996 = vmatpush3.msra.mxu1 %v5261_v61 }
  0x58   :  { %719 = vmatpush1.msra.mxu0 %v5133_v33  ;;  %3997 = vmatprep.subr.mxu1 %v6883_v0 }
  0x59   :  { %720 = vmatprep.subr.mxu0 %v5136_v34  ;;  %3998 = vmatpush3.msra.mxu1 %v5267_v62 }
  0x5a   :  { %721 = vmatpush1.msra.mxu0 %v5142_v36  ;;  %3999 = vmatprep.subr.mxu1 %v6883_v0 }
  0x5b   :  { %722 = vmatprep.subr.mxu0 %v5149_v38  ;;  %4000 = vmatpush3.msra.mxu1 %v5273_v63 }
  0x5c   :  { %723 = vmatpush1.msra.mxu0 %v5153_v39  ;;  %4002 = vmatmul.mubr.f32.vlgmr.msra.gmra.mxu1 %v5190_v49 }
  0x5d   :  { %4004 = vmatprep.subr.mxu1 %v6883_v0  ;;  %724 = vmatprep.subr.mxu0 %v5160_v41 }
  0x5e   :  { %4005 = vmatpush3.msra.mxu1 %v5174_v45  ;;  %725 = vmatpush1.msra.mxu0 %v5163_v42 }
  0x5f   :  { %4006 = vmatprep.subr.mxu1 %v6883_v0  ;;  %726 = vmatprep.subr.mxu0 %v5167_v43 }
  0x60   :  { %4007 = vmatpush3.msra.mxu1 %v5184_v48  ;;  %727 = vmatpush1.msra.mxu0 %v5170_v44 }
  0x61   :  { %4008 = vmatprep.subr.mxu1 %v6883_v0  ;;  %728 = vmatprep.subr.mxu0 %v5177_v46 }
  0x62   :  { %4009 = vmatpush3.msra.mxu1 %v5195_v50  ;;  %729 = vmatpush1.msra.mxu0 %v5181_v47 }
  0x63   :  { %4010 = vmatprep.subr.mxu1 %v6883_v0  ;;  %762 = vmatprep.mubr.f32.mxu0 %v6883_v0 }
  0x64   :  { %4011 = vmatpush3.msra.mxu1 %v5201_v51  ;;  %4036 = vmatprep.mubr.msk.f32.mxu1 %vm4932_vm1, %v6883_v0 }
  0x65   :  { %4012 = vmatprep.subr.mxu1 %v6883_v0  ;;  %877 = vmatprep.subr.mxu0 %v5033_v1  ;;  %v372_v1 = vrot.slane %v359_v18, %v5335_v37 }
  0x66   :  { %4013 = vmatpush3.msra.mxu1 %v5207_v52 }
  0x67   :  { %4014 = vmatprep.subr.mxu1 %v6883_v0 }
  0x68   :  { %4015 = vmatpush3.msra.mxu1 %v5213_v53 }
  0x69   :  { %4016 = vmatprep.subr.mxu1 %v6883_v0 }
  0x6a   :  { %4017 = vmatpush3.msra.mxu1 %v5219_v54 }
  0x6b   :  { %4018 = vmatprep.subr.mxu1 %v6883_v0 }
  0x6c   :  { %4019 = vmatpush3.msra.mxu1 %v5225_v55 }
  0x6d   :  { %4020 = vmatprep.subr.mxu1 %v6883_v0 }
  0x6e   :  { %4021 = vmatpush3.msra.mxu1 %v5231_v56 }
  0x6f   :  { %4022 = vmatprep.subr.mxu1 %v6883_v0 }
  0x70   :  { %4023 = vmatpush3.msra.mxu1 %v5237_v57 }
  0x71   :  { %4024 = vmatprep.subr.mxu1 %v6883_v0 }
  0x72   :  { %4025 = vmatpush3.msra.mxu1 %v5243_v58 }
  0x73   :  { %4026 = vmatprep.subr.mxu1 %v6883_v0 }
  0x74   :  { %4027 = vmatpush3.msra.mxu1 %v5249_v59 }
  0x75   :  { %4028 = vmatprep.subr.mxu1 %v6883_v0 }
  0x76   :  { %4029 = vmatpush3.msra.mxu1 %v5255_v60 }
  0x77   :  { %4030 = vmatprep.subr.mxu1 %v6883_v0 }
  0x78   :  { %4031 = vmatpush3.msra.mxu1 %v5261_v61 }
  0x79   :  { %4032 = vmatprep.subr.mxu1 %v6883_v0 }
  0x7a   :  { %4033 = vmatpush3.msra.mxu1 %v5267_v62 }
  0x7b   :  { %4034 = vmatprep.subr.mxu1 %v6883_v0 }
  0x7c   :  { %4035 = vmatpush3.msra.mxu1 %v5273_v63  ;;  %v190_v63 = vld [vmem:[%s6871_s6] sm:$0x7] }
  0x7d   :  { %4039 = vmatprep.subr.mxu1 %v6883_v0  ;;  %v195_v46 = vrot.slane %v190_v63, %v5329_v21  ;;  %v199_v43 = vrot.slane %v190_v63, %v5331_v27 }
  0xe9   :  { %v277_v11 = vpop.f32.mrf.mxu1 }
  0xeb   :  { %v279_v12 = vpop.f32.mrf.mxu1 }
  0xef   :  { %v348_v16 = vpop.f32.mrf.mxu1 }
  0xf1   :  { %v3961_v24 = vpop.f32.mrf.mxu1 }
  0xf2   :  { %v133_v24 = vld [vmem:[%s6872_s7] sm:$0x7] }
  0xf3   :  { %v5350_v14 = vrot.slane %v133_v24, %v5329_v21  ;;  %v5359_v62 = vrot.slane %v133_v24, %v5331_v27 }
  0xf5   :  { %v445_v35 = vpop.f32.mrf.mxu1 }
  0xf6   :  { %v5337_v40 = vadd.f32 %v445_v35, %v364_v29 }
  0xf7   :  { %v447_v9 = vpop.f32.mrf.mxu1 }
  0xf8   :  { %6964 = vst [vmem:[#allocation24_spill] sm:$0xff] %v5337_v40  ;;  %v5339_v0 = vadd.f32 %v447_v9, %v368_v31  ;;  %v5354_v9 = vadd.f32 %v277_v11, %v195_v46 }
  0xfa   :  { %6965 = vst [vmem:[#allocation25_spill] sm:$0xff] %v5339_v0 }
  0xfb   :  { %v516_v47 = vpop.f32.mrf.mxu1 }
  0xfc   :  { %v5352_v29 = vadd.f32 %v516_v47, %v372_v1  ;;  %v5363_v1 = vadd.f32 %v279_v12, %v199_v43 }
  0xfd   :  { %v3968_v31 = vpop.f32.mrf.mxu1 }
  0xfe   :  { %6966 = vst [vmem:[#allocation26_spill] sm:$0xff] %v5352_v29  ;;  %6967 = vst [vmem:[#allocation27_spill] sm:$0xff] %v5363_v1 }
 0x102   :  { %v603_v35 = vpop.f32.mrf.mxu0 }
 0x103   :  { %v604_v18 = vadd.f32 %v603_v35, %v5350_v14 }
 0x104   :  { %v605_v44 = vpop.f32.mrf.mxu0 }
 0x105   :  { %v678_v0 = vadd.f32 %v604_v18, %v5354_v9  ;;  %v606_v21 = vadd.f32 %v605_v44, %v5359_v62 }
 0x107   :  { %v3622_v40 = vmul.f32 -1.442695, %v678_v0  ;;  %v679_v47 = vadd.f32 %v606_v21, %v5363_v1  ;;  %v5367_v0 = vrot.slane %v133_v24, %v5335_v37 }
 0x109   :  { %4579 = vpow2.f32 %v3622_v40  ;;  %v3623_v46 = vmul.f32 -1.442695, %v679_v47  ;;  %v203_v40 = vrot.slane %v190_v63, %v5335_v37  ;;  %v6968_v63 = vmov 0.0  }
 0x10b   :  { %4581 = vpow2.f32 %v3623_v46  ;;  %v5371_v43 = vadd.f32 %v348_v16, %v203_v40  ;;  %v6970_v16 = vld [vmem:[#allocation16_spill] sm:$0xff] }
 0x10c   :  { %v6974_v40 = vld [vmem:[#allocation20_spill] sm:$0xff] }
 0x116   :  { %v4580_v11 = vpop.eup %4579 }
 0x117   :  { %v686_v31 = vadd.f32 1.0, %v4580_v11 }
 0x118   :  { %v4582_v27 = vpop.eup %4581 }
 0x119   :  { %4583 = vrcp.f32 %v686_v31  ;;  %v687_v21 = vadd.f32 1.0, %v4582_v27  ;;  %v6971_v27 = vld [vmem:[#allocation19_spill] sm:$0xff] }
 0x11c   :  { %v674_v35 = vpop.f32.mrf.mxu1 }
 0x11d   :  { %v675_v29 = vadd.f32 %v674_v35, %v5367_v0  ;;  %v6973_v35 = vld [vmem:[#allocation18_spill] sm:$0xff] }
 0x11e   :  { %v4003_v18 = vpop.f32.mrf.mxu1 }
 0x126   :  { %v4584_v44 = vpop.eup %4583 }
 0x127   :  { %v692_v12 = vmul.f32 %v4584_v44, %v675_v29  ;;  %v6972_v29 = vld [vmem:[#allocation17_spill] sm:$0xff]  ;;  %v6975_v44 = vld [vmem:[#allocation14_spill] sm:$0xff] }
 0x129   :  { %v693_v47 = vadd.f32 %v692_v12, %v5371_v43 }
 0x12b   :  { %4585 = vtanh.f32 %v693_v47 }
 0x12c   :  { %4587 = vrcp.f32 %v687_v21 }
 0x138   :  { %v4586_v46 = vpop.eup %4585 }
 0x139   :  { %v695_v11 = vsub.f32 %v5190_v49, %v4586_v46  ;;  %v4588_v24 = vpop.eup %4587  ;;  %v6969_v49 = vld [vmem:[#allocation15_spill] sm:$0xff] }
 0x13b   :  { %v696_v31 = vmul.f32 %v4588_v24, %v695_v11 }
 0x13d   :  { %v5375_v18 = vadd.f32 %v4586_v46, %v696_v31 }
 0x13f   :  { %763 = vmatmul.mubr.f32.vlgmr.msra.gmra.mxu0 %v5375_v18  ;;  %4037 = vmatmul.mubr.f32.vlgmr.msra.gmra.mxu1 %v5375_v18 }
 0x140   :  { %878 = vmatpush1.msra.mxu0 %v5035_v2  ;;  %4040 = vmatpush3.msra.mxu1 %v5174_v45 }
 0x141   :  { %879 = vmatprep.subr.mxu0 %v5037_v3  ;;  %4041 = vmatprep.subr.mxu1 %v6968_v63 }
 0x142   :  { %880 = vmatpush1.msra.mxu0 %v5040_v4  ;;  %4042 = vmatpush3.msra.mxu1 %v5184_v48 }
 0x143   :  { %881 = vmatprep.subr.mxu0 %v5043_v5  ;;  %4043 = vmatprep.subr.mxu1 %v6968_v63 }
 0x144   :  { %882 = vmatpush1.msra.mxu0 %v5046_v6  ;;  %4044 = vmatpush3.msra.mxu1 %v5195_v50 }
 0x145   :  { %883 = vmatprep.subr.mxu0 %v5049_v7  ;;  %4045 = vmatprep.subr.mxu1 %v6968_v63 }
 0x146   :  { %884 = vmatpush1.msra.mxu0 %v5052_v8  ;;  %4046 = vmatpush3.msra.mxu1 %v5201_v51 }
 0x147   :  { %885 = vmatprep.subr.mxu0 %v5058_v10  ;;  %4047 = vmatprep.subr.mxu1 %v6968_v63 }
 0x148   :  { %886 = vmatpush1.msra.mxu0 %v5067_v13  ;;  %4048 = vmatpush3.msra.mxu1 %v5207_v52 }
 0x149   :  { %887 = vmatprep.subr.mxu0 %v5073_v15  ;;  %4049 = vmatprep.subr.mxu1 %v6968_v63 }
 0x14a   :  { %888 = vmatpush1.msra.mxu0 %v5079_v17  ;;  %4050 = vmatpush3.msra.mxu1 %v5213_v53 }
 0x14b   :  { %889 = vmatprep.subr.mxu0 %v5085_v19  ;;  %4051 = vmatprep.subr.mxu1 %v6968_v63 }
 0x14c   :  { %890 = vmatpush1.msra.mxu0 %v5089_v20  ;;  %4052 = vmatpush3.msra.mxu1 %v5219_v54 }
 0x14d   :  { %891 = vmatprep.subr.mxu0 %v5096_v22  ;;  %4053 = vmatprep.subr.mxu1 %v6968_v63 }
 0x14e   :  { %892 = vmatpush1.msra.mxu0 %v5099_v23  ;;  %4054 = vmatpush3.msra.mxu1 %v5225_v55 }
 0x14f   :  { %893 = vmatprep.subr.mxu0 %v5106_v25  ;;  %4055 = vmatprep.subr.mxu1 %v6968_v63 }
 0x150   :  { %894 = vmatpush1.msra.mxu0 %v5109_v26  ;;  %4056 = vmatpush3.msra.mxu1 %v5231_v56 }
 0x151   :  { %895 = vmatprep.subr.mxu0 %v5117_v28  ;;  %4057 = vmatprep.subr.mxu1 %v6968_v63 }
 0x152   :  { %896 = vmatpush1.msra.mxu0 %v5123_v30  ;;  %4058 = vmatpush3.msra.mxu1 %v5237_v57 }
 0x153   :  { %897 = vmatprep.subr.mxu0 %v5130_v32  ;;  %4059 = vmatprep.subr.mxu1 %v6968_v63 }
 0x154   :  { %898 = vmatpush1.msra.mxu0 %v5133_v33  ;;  %4060 = vmatpush3.msra.mxu1 %v5243_v58 }
 0x155   :  { %899 = vmatprep.subr.mxu0 %v5136_v34  ;;  %4061 = vmatprep.subr.mxu1 %v6968_v63 }
 0x156   :  { %900 = vmatpush1.msra.mxu0 %v5142_v36  ;;  %4062 = vmatpush3.msra.mxu1 %v5249_v59 }
 0x157   :  { %901 = vmatprep.subr.mxu0 %v5149_v38  ;;  %4063 = vmatprep.subr.mxu1 %v6968_v63 }
 0x158   :  { %902 = vmatpush1.msra.mxu0 %v5153_v39  ;;  %4064 = vmatpush3.msra.mxu1 %v5255_v60 }
 0x159   :  { %903 = vmatprep.subr.mxu0 %v5160_v41  ;;  %4065 = vmatprep.subr.mxu1 %v6968_v63 }
 0x15a   :  { %904 = vmatpush1.msra.mxu0 %v5163_v42  ;;  %4066 = vmatpush3.msra.mxu1 %v5261_v61 }
 0x15b   :  { %905 = vmatprep.subr.mxu0 %v6969_v49  ;;  %4067 = vmatprep.subr.mxu1 %v6968_v63 }
 0x15c   :  { %906 = vmatpush1.msra.mxu0 %v6970_v16  ;;  %4068 = vmatpush3.msra.mxu1 %v6971_v27 }
 0x15d   :  { %907 = vmatprep.subr.mxu0 %v6972_v29  ;;  %4069 = vmatprep.subr.mxu1 %v6968_v63 }
 0x15e   :  { %908 = vmatpush1.msra.mxu0 %v6973_v35  ;;  %941 = vmatprep.mubr.f32.mxu0 %v6968_v63 }
 0x15f   :  { %4070 = vmatpush3.msra.mxu1 %v6974_v40  ;;  %4071 = vmatprep.mubr.msk.f32.mxu1 %vm4932_vm1, %v6968_v63 }
 0x160   :  { %1056 = vmatprep.subr.mxu0 %v6975_v44  ;;  %4074 = vmatprep.subr.mxu1 %v6968_v63 }
 0x1ff   :  { %v764_v12 = vpop.f32.mrf.mxu0  ;;  %v835_v21 = vpop.f32.mrf.mxu1 }
 0x200   :  { %v765_v47 = vadd.f32 %v764_v12, %v5350_v14  ;;  %v836_v49 = vadd.f32 %v835_v21, %v5367_v0  ;;  %v6979_v21 = vld [vmem:[#allocation17_spill] sm:$0xff] }
 0x201   :  { %v4038_v46 = vpop.f32.mrf.mxu1  ;;  %v766_v37 = vpop.f32.mrf.mxu0 }
 0x202   :  { %v841_v11 = vrot.slane %v765_v47, 7  ;;  %v767_v40 = vadd.f32 %v766_v37, %v5359_v62  ;;  %v860_v12 = vrot.slane %v836_v49, 7  ;;  %v6978_v49 = vld [vmem:[#allocation19_spill] sm:$0xff] }
 0x204   :  { %v845_v24 = vadd.f32 %v841_v11, %v5354_v9  ;;  %v842_v35 = vrot.slane %v767_v40, 7 }
 0x206   :  { %v3624_v31 = vmul.f32 -1.442695, %v845_v24  ;;  %v846_v29 = vadd.f32 %v842_v35, %v5363_v1 }
 0x208   :  { %4589 = vpow2.f32 %v3624_v31  ;;  %v3625_v16 = vmul.f32 -1.442695, %v846_v29 }
 0x215   :  { %v4590_v27 = vpop.eup %4589 }
 0x216   :  { %v853_v44 = vadd.f32 1.0, %v4590_v27 }
 0x218   :  { %4591 = vrcp.f32 %v853_v44 }
 0x219   :  { %4593 = vpow2.f32 %v3625_v16 }
 0x225   :  { %v4592_v46 = vpop.eup %4591 }
 0x226   :  { %v862_v47 = vmul.f32 %v4592_v46, %v860_v12  ;;  %v4594_v24 = vpop.eup %4593  ;;  %v6980_v12 = vld [vmem:[#allocation18_spill] sm:$0xff]  ;;  %v6981_v46 = vld [vmem:[#allocation20_spill] sm:$0xff] }
 0x227   :  { %v854_v31 = vadd.f32 1.0, %v4594_v24 }
 0x228   :  { %v863_v11 = vadd.f32 %v862_v47, %v5371_v43  ;;  %v6982_v47 = vld [vmem:[#allocation14_spill] sm:$0xff] }
 0x22a   :  { %4595 = vtanh.f32 %v863_v11 }
 0x22b   :  { %4597 = vrcp.f32 %v854_v31 }
 0x237   :  { %v4596_v37 = vpop.eup %4595 }
 0x238   :  { %v866_v40 = vrot.slane %v4596_v37, 1  ;;  %v4598_v27 = vpop.eup %4597 }
 0x23a   :  { %v868_v35 = vsub.f32 %v5375_v18, %v866_v40  ;;  %v6977_v18 = vld [vmem:[#allocation16_spill] sm:$0xff] }
 0x23c   :  { %v870_v1 = vrot.slane %v868_v35, 7 }
 0x23e   :  { %v872_v44 = vmul.f32 %v4598_v27, %v870_v1  ;;  %v6976_v1 = vld [vmem:[#allocation15_spill] sm:$0xff] }
 0x240   :  { %v5453_v29 = vadd.f32 %v4596_v37, %v872_v44 }
 0x242   :  { %v875_v16 = vrot.slane %v5453_v29, 1 }
 0x244   :  { %942 = vmatmul.mubr.f32.vlgmr.msra.gmra.mxu0 %v875_v16  ;;  %4072 = vmatmul.mubr.f32.vlgmr.msra.gmra.mxu1 %v875_v16 }
 0x245   :  { %1057 = vmatpush1.msra.mxu0 %v5035_v2  ;;  %4075 = vmatpush3.msra.mxu1 %v5174_v45 }
 0x246   :  { %1058 = vmatprep.subr.mxu0 %v5037_v3  ;;  %4076 = vmatprep.subr.mxu1 %v6968_v63 }
 0x247   :  { %1059 = vmatpush1.msra.mxu0 %v5040_v4  ;;  %4077 = vmatpush3.msra.mxu1 %v5184_v48 }
 0x248   :  { %1060 = vmatprep.subr.mxu0 %v5043_v5  ;;  %4078 = vmatprep.subr.mxu1 %v6968_v63 }
 0x249   :  { %1061 = vmatpush1.msra.mxu0 %v5046_v6  ;;  %4079 = vmatpush3.msra.mxu1 %v5195_v50 }
 0x24a   :  { %1062 = vmatprep.subr.mxu0 %v5049_v7  ;;  %4080 = vmatprep.subr.mxu1 %v6968_v63 }
 0x24b   :  { %1063 = vmatpush1.msra.mxu0 %v5052_v8  ;;  %4081 = vmatpush3.msra.mxu1 %v5201_v51 }
 0x24c   :  { %1064 = vmatprep.subr.mxu0 %v5058_v10  ;;  %4082 = vmatprep.subr.mxu1 %v6968_v63 }
 0x24d   :  { %1065 = vmatpush1.msra.mxu0 %v5067_v13  ;;  %4083 = vmatpush3.msra.mxu1 %v5207_v52 }
 0x24e   :  { %1066 = vmatprep.subr.mxu0 %v5073_v15  ;;  %4084 = vmatprep.subr.mxu1 %v6968_v63 }
 0x24f   :  { %1067 = vmatpush1.msra.mxu0 %v5079_v17  ;;  %4085 = vmatpush3.msra.mxu1 %v5213_v53 }
 0x250   :  { %1068 = vmatprep.subr.mxu0 %v5085_v19  ;;  %4086 = vmatprep.subr.mxu1 %v6968_v63 }
 0x251   :  { %1069 = vmatpush1.msra.mxu0 %v5089_v20  ;;  %4087 = vmatpush3.msra.mxu1 %v5219_v54 }
 0x252   :  { %1070 = vmatprep.subr.mxu0 %v5096_v22  ;;  %4088 = vmatprep.subr.mxu1 %v6968_v63 }
 0x253   :  { %1071 = vmatpush1.msra.mxu0 %v5099_v23  ;;  %4089 = vmatpush3.msra.mxu1 %v5225_v55 }
 0x254   :  { %1072 = vmatprep.subr.mxu0 %v5106_v25  ;;  %4090 = vmatprep.subr.mxu1 %v6968_v63 }
 0x255   :  { %1073 = vmatpush1.msra.mxu0 %v5109_v26  ;;  %4091 = vmatpush3.msra.mxu1 %v5231_v56 }
 0x256   :  { %1074 = vmatprep.subr.mxu0 %v5117_v28  ;;  %4092 = vmatprep.subr.mxu1 %v6968_v63 }
 0x257   :  { %1075 = vmatpush1.msra.mxu0 %v5123_v30  ;;  %4093 = vmatpush3.msra.mxu1 %v5237_v57 }
 0x258   :  { %1076 = vmatprep.subr.mxu0 %v5130_v32  ;;  %4094 = vmatprep.subr.mxu1 %v6968_v63 }
 0x259   :  { %1077 = vmatpush1.msra.mxu0 %v5133_v33  ;;  %4095 = vmatpush3.msra.mxu1 %v5243_v58 }
 0x25a   :  { %1078 = vmatprep.subr.mxu0 %v5136_v34  ;;  %4096 = vmatprep.subr.mxu1 %v6968_v63 }
 0x25b   :  { %1079 = vmatpush1.msra.mxu0 %v5142_v36  ;;  %4097 = vmatpush3.msra.mxu1 %v5249_v59 }
 0x25c   :  { %1080 = vmatprep.subr.mxu0 %v5149_v38  ;;  %4098 = vmatprep.subr.mxu1 %v6968_v63 }
 0x25d   :  { %1081 = vmatpush1.msra.mxu0 %v5153_v39  ;;  %4099 = vmatpush3.msra.mxu1 %v5255_v60 }
 0x25e   :  { %1082 = vmatprep.subr.mxu0 %v5160_v41  ;;  %4100 = vmatprep.subr.mxu1 %v6968_v63 }
 0x25f   :  { %1083 = vmatpush1.msra.mxu0 %v5163_v42  ;;  %4101 = vmatpush3.msra.mxu1 %v5261_v61 }
 0x260   :  { %1084 = vmatprep.subr.mxu0 %v6976_v1  ;;  %4102 = vmatprep.subr.mxu1 %v6968_v63 }
 0x261   :  { %1085 = vmatpush1.msra.mxu0 %v6977_v18  ;;  %4103 = vmatpush3.msra.mxu1 %v6978_v49 }
 0x262   :  { %1086 = vmatprep.subr.mxu0 %v6979_v21  ;;  %4104 = vmatprep.subr.mxu1 %v6968_v63 }
 0x263   :  { %1087 = vmatpush1.msra.mxu0 %v6980_v12  ;;  %1120 = vmatprep.mubr.f32.mxu0 %v6968_v63  ;;  %v6983_v12 = vld [vmem:[#allocation27_spill] sm:$0xff] }
 0x264   :  { %4105 = vmatpush3.msra.mxu1 %v6981_v46  ;;  %4106 = vmatprep.mubr.msk.f32.mxu1 %vm4932_vm1, %v6968_v63 }
 0x265   :  { %1235 = vmatprep.subr.mxu0 %v6982_v47  ;;  %4109 = vmatprep.subr.mxu1 %v6968_v63 }
 0x304   :  { %v943_v11 = vpop.f32.mrf.mxu0  ;;  %v1014_v24 = vpop.f32.mrf.mxu1 }
 0x305   :  { %v944_v31 = vadd.f32 %v943_v11, %v5350_v14  ;;  %v1015_v1 = vadd.f32 %v1014_v24, %v5367_v0 }
 0x306   :  { %v4073_v37 = vpop.f32.mrf.mxu1  ;;  %v945_v44 = vpop.f32.mrf.mxu0 }
 0x307   :  { %v1020_v40 = vrot.slane %v944_v31, 6  ;;  %v946_v16 = vadd.f32 %v945_v44, %v5359_v62  ;;  %v1039_v11 = vrot.slane %v1015_v1, 6 }
 0x309   :  { %v1024_v35 = vadd.f32 %v1020_v40, %v5354_v9  ;;  %v1021_v46 = vrot.slane %v946_v16, 6 }
 0x30b   :  { %v3626_v27 = vmul.f32 -1.442695, %v1024_v35  ;;  %v1025_v21 = vadd.f32 %v1021_v46, %v6983_v12 }
 0x30d   :  { %4599 = vpow2.f32 %v3626_v27  ;;  %v3627_v18 = vmul.f32 -1.442695, %v1025_v21 }
 0x31a   :  { %v4600_v49 = vpop.eup %4599 }
 0x31b   :  { %v1032_v47 = vadd.f32 1.0, %v4600_v49 }
 0x31d   :  { %4601 = vrcp.f32 %v1032_v47 }
 0x31e   :  { %4603 = vpow2.f32 %v3627_v18 }
 0x32a   :  { %v4602_v37 = vpop.eup %4601 }
 0x32b   :  { %v1041_v31 = vmul.f32 %v4602_v37, %v1039_v11  ;;  %v4604_v35 = vpop.eup %4603 }
 0x32c   :  { %v1033_v27 = vadd.f32 1.0, %v4604_v35 }
 0x32d   :  { %v1042_v40 = vadd.f32 %v1041_v31, %v5371_v43 }
 0x32f   :  { %4605 = vtanh.f32 %v1042_v40 }
 0x330   :  { %4607 = vrcp.f32 %v1033_v27 }
 0x33c   :  { %v4606_v44 = vpop.eup %4605 }
 0x33d   :  { %v1045_v16 = vrot.slane %v4606_v44, 1  ;;  %v4608_v49 = vpop.eup %4607 }
 0x33f   :  { %v1047_v46 = vsub.f32 %v5453_v29, %v1045_v16  ;;  %v5616_v16 = vld [vmem:[#allocation2 + $0x158] sm:$0xff] }
 0x341   :  { %v1049_v12 = vrot.slane %v1047_v46, 7  ;;  %v5620_v46 = vld [vmem:[#allocation2 + $0x150] sm:$0xff] }
 0x343   :  { %v1051_v47 = vmul.f32 %v4608_v49, %v1049_v12  ;;  %v5624_v49 = vld [vmem:[#allocation2 + $0x140] sm:$0xff] }
 0x345   :  { %v5530_v21 = vadd.f32 %v4606_v44, %v1051_v47  ;;  %v5612_v44 = vld [vmem:[#allocation2 + $0x168] sm:$0xff]  ;;  %v5628_v47 = vld [vmem:[#allocation2 + $0x138] sm:$0xff] }
 0x347   :  { %v1054_v18 = vrot.slane %v5530_v21, 2 }
 0x349   :  { %1121 = vmatmul.mubr.f32.vlgmr.msra.gmra.mxu0 %v1054_v18  ;;  %4107 = vmatmul.mubr.f32.vlgmr.msra.gmra.mxu1 %v1054_v18  ;;  %v5644_v18 = vld [vmem:[#allocation2 + $0x108] sm:$0xff] }
 0x34a   :  { %1236 = vmatpush1.msra.mxu0 %v5035_v2  ;;  %4110 = vmatpush3.msra.mxu1 %v5174_v45  ;;  %v6984_v2 = vld [vmem:[#allocation15_spill] sm:$0xff] }
 0x34b   :  { %1237 = vmatprep.subr.mxu0 %v5037_v3  ;;  %4111 = vmatprep.subr.mxu1 %v6968_v63  ;;  %v6985_v3 = vld [vmem:[#allocation16_spill] sm:$0xff] }
 0x34c   :  { %1238 = vmatpush1.msra.mxu0 %v5040_v4  ;;  %4112 = vmatpush3.msra.mxu1 %v5184_v48  ;;  %v6986_v4 = vld [vmem:[#allocation19_spill] sm:$0xff] }
 0x34d   :  { %1239 = vmatprep.subr.mxu0 %v5043_v5  ;;  %4113 = vmatprep.subr.mxu1 %v6968_v63  ;;  %v6987_v5 = vld [vmem:[#allocation17_spill] sm:$0xff] }
 0x34e   :  { %1240 = vmatpush1.msra.mxu0 %v5046_v6  ;;  %4114 = vmatpush3.msra.mxu1 %v5195_v50  ;;  %v6988_v6 = vld [vmem:[#allocation18_spill] sm:$0xff] }
 0x34f   :  { %1241 = vmatprep.subr.mxu0 %v5049_v7  ;;  %4115 = vmatprep.subr.mxu1 %v6968_v63  ;;  %v6989_v7 = vld [vmem:[#allocation20_spill] sm:$0xff] }
 0x350   :  { %1242 = vmatpush1.msra.mxu0 %v5052_v8  ;;  %4116 = vmatpush3.msra.mxu1 %v5201_v51  ;;  %v5598_v8 = vld [vmem:[#allocation2 + $0x170] sm:$0xff] }
 0x351   :  { %1243 = vmatprep.subr.mxu0 %v5058_v10  ;;  %4117 = vmatprep.subr.mxu1 %v6968_v63 }
 0x352   :  { %1244 = vmatpush1.msra.mxu0 %v5067_v13  ;;  %4118 = vmatpush3.msra.mxu1 %v5207_v52 }
 0x353   :  { %1245 = vmatprep.subr.mxu0 %v5073_v15  ;;  %4119 = vmatprep.subr.mxu1 %v6968_v63 }
 0x354   :  { %1246 = vmatpush1.msra.mxu0 %v5079_v17  ;;  %4120 = vmatpush3.msra.mxu1 %v5213_v53 }
 0x355   :  { %1247 = vmatprep.subr.mxu0 %v5085_v19  ;;  %4121 = vmatprep.subr.mxu1 %v6968_v63 }
 0x356   :  { %1248 = vmatpush1.msra.mxu0 %v5089_v20  ;;  %4122 = vmatpush3.msra.mxu1 %v5219_v54 }
 0x357   :  { %1249 = vmatprep.subr.mxu0 %v5096_v22  ;;  %4123 = vmatprep.subr.mxu1 %v6968_v63 }
 0x358   :  { %1250 = vmatpush1.msra.mxu0 %v5099_v23  ;;  %4124 = vmatpush3.msra.mxu1 %v5225_v55 }
 0x359   :  { %1251 = vmatprep.subr.mxu0 %v5106_v25  ;;  %4125 = vmatprep.subr.mxu1 %v6968_v63 }
 0x35a   :  { %1252 = vmatpush1.msra.mxu0 %v5109_v26  ;;  %4126 = vmatpush3.msra.mxu1 %v5231_v56 }
 0x35b   :  { %1253 = vmatprep.subr.mxu0 %v5117_v28  ;;  %4127 = vmatprep.subr.mxu1 %v6968_v63  ;;  %v6990_v28 = vld [vmem:[#allocation27_spill] sm:$0xff] }
 0x35c   :  { %1254 = vmatpush1.msra.mxu0 %v5123_v30  ;;  %4128 = vmatpush3.msra.mxu1 %v5237_v57 }
 0x35d   :  { %1255 = vmatprep.subr.mxu0 %v5130_v32  ;;  %4129 = vmatprep.subr.mxu1 %v6968_v63 }
 0x35e   :  { %1256 = vmatpush1.msra.mxu0 %v5133_v33  ;;  %4130 = vmatpush3.msra.mxu1 %v5243_v58 }
 0x35f   :  { %1257 = vmatprep.subr.mxu0 %v5136_v34  ;;  %4131 = vmatprep.subr.mxu1 %v6968_v63 }
 0x360   :  { %1258 = vmatpush1.msra.mxu0 %v5142_v36  ;;  %4132 = vmatpush3.msra.mxu1 %v5249_v59 }
 0x361   :  { %1259 = vmatprep.subr.mxu0 %v5149_v38  ;;  %4133 = vmatprep.subr.mxu1 %v6968_v63 }
 0x362   :  { %1260 = vmatpush1.msra.mxu0 %v5153_v39  ;;  %4134 = vmatpush3.msra.mxu1 %v5255_v60 }
 0x363   :  { %1261 = vmatprep.subr.mxu0 %v5160_v41  ;;  %4135 = vmatprep.subr.mxu1 %v6968_v63 }
 0x364   :  { %1262 = vmatpush1.msra.mxu0 %v5163_v42  ;;  %4136 = vmatpush3.msra.mxu1 %v5261_v61 }
 0x365   :  { %1263 = vmatprep.subr.mxu0 %v6984_v2  ;;  %4137 = vmatprep.subr.mxu1 %v6968_v63  ;;  %v5652_v2 = vld [vmem:[#allocation2 + $0xf0] sm:$0xff] }
 0x366   :  { %1264 = vmatpush1.msra.mxu0 %v6985_v3  ;;  %4138 = vmatpush3.msra.mxu1 %v6986_v4  ;;  %v5660_v3 = vld [vmem:[#allocation2 + $0xd8] sm:$0xff] }
 0x367   :  { %1265 = vmatprep.subr.mxu0 %v6987_v5  ;;  %4139 = vmatprep.subr.mxu1 %v6968_v63  ;;  %v5668_v5 = vld [vmem:[#allocation2 + $0xc0] sm:$0xff] }
 0x368   :  { %1266 = vmatpush1.msra.mxu0 %v6988_v6  ;;  %1299 = vmatprep.mubr.f32.mxu0 %v6968_v63  ;;  %v5676_v6 = vld [vmem:[#allocation2 + $0xa8] sm:$0xff] }
 0x369   :  { %4140 = vmatpush3.msra.mxu1 %v6989_v7  ;;  %4141 = vmatprep.mubr.msk.f32.mxu1 %vm4932_vm1, %v6968_v63 }
 0x36a   :  { %1414 = vmatprep.subr.mxu0 %v5598_v8  ;;  %4144 = vmatprep.subr.mxu1 %v6968_v63 }
 0x409   :  { %v1122_v10 = vpop.f32.mrf.mxu0  ;;  %v1193_v13 = vpop.f32.mrf.mxu1 }
 0x40a   :  { %v1123_v15 = vadd.f32 %v1122_v10, %v5350_v14  ;;  %v1194_v36 = vadd.f32 %v1193_v13, %v5367_v0  ;;  %v5684_v10 = vld [vmem:[#allocation2 + $0x90] sm:$0xff]  ;;  %v5692_v13 = vld [vmem:[#allocation2 + $0x78] sm:$0xff] }
 0x40b   :  { %v4108_v17 = vpop.f32.mrf.mxu1  ;;  %v1124_v23 = vpop.f32.mrf.mxu0 }
 0x40c   :  { %v1199_v19 = vrot.slane %v1123_v15, 5  ;;  %v1125_v25 = vadd.f32 %v1124_v23, %v5359_v62  ;;  %v1218_v38 = vrot.slane %v1194_v36, 5  ;;  %v5700_v15 = vld [vmem:[#allocation2 + $0x60] sm:$0xff]  ;;  %v5708_v17 = vld [vmem:[#allocation2 + $0x48] sm:$0xff] }
 0x40e   :  { %v1203_v20 = vadd.f32 %v1199_v19, %v5354_v9  ;;  %v1200_v26 = vrot.slane %v1125_v25, 5  ;;  %v5716_v19 = vld [vmem:[#allocation2 + $0x30] sm:$0xff] }
 0x410   :  { %v3628_v22 = vmul.f32 -1.442695, %v1203_v20  ;;  %v1204_v30 = vadd.f32 %v1200_v26, %v6990_v28  ;;  %v5724_v20 = vld [vmem:[#allocation2 + $0x18] sm:$0xff] }
 0x411   :  { %6992 = vst [vmem:[#allocation15_spill] sm:$0xff] %v5724_v20 }
 0x412   :  { %4609 = vpow2.f32 %v3628_v22  ;;  %v3629_v34 = vmul.f32 -1.442695, %v1204_v30  ;;  %v5732_v22 = vld [vmem:[#allocation2] sm:$0xff] }
 0x413   :  { %6994 = vst [vmem:[#allocation19_spill] sm:$0xff] %v5732_v22 }
 0x41f   :  { %v4610_v32 = vpop.eup %4609 }
 0x420   :  { %v1211_v33 = vadd.f32 1.0, %v4610_v32 }
 0x422   :  { %4611 = vrcp.f32 %v1211_v33 }
 0x423   :  { %4613 = vpow2.f32 %v3629_v34 }
 0x42f   :  { %v4612_v39 = vpop.eup %4611 }
 0x430   :  { %v1220_v41 = vmul.f32 %v4612_v39, %v1218_v38  ;;  %v4614_v29 = vpop.eup %4613 }
 0x431   :  { %v1212_v1 = vadd.f32 1.0, %v4614_v29 }
 0x432   :  { %v1221_v42 = vadd.f32 %v1220_v41, %v5371_v43 }
 0x434   :  { %4615 = vtanh.f32 %v1221_v42 }
 0x435   :  { %4617 = vrcp.f32 %v1212_v1 }
 0x441   :  { %v4616_v12 = vpop.eup %4615 }
 0x442   :  { %v1224_v24 = vrot.slane %v4616_v12, 1  ;;  %v4618_v31 = vpop.eup %4617 }
 0x444   :  { %v1226_v11 = vsub.f32 %v5530_v21, %v1224_v24  ;;  %v5636_v21 = vld [vmem:[#allocation2 + $0x120] sm:$0xff] }
 0x446   :  { %v1228_v37 = vrot.slane %v1226_v11, 7 }
 0x448   :  { %v1230_v40 = vmul.f32 %v4618_v31, %v1228_v37 }
 0x44a   :  { %v5609_v35 = vadd.f32 %v4616_v12, %v1230_v40 }
 0x44c   :  { %v1233_v27 = vrot.slane %v5609_v35, 3 }
 0x44e   :  { %1300 = vmatmul.mubr.f32.vlgmr.msra.gmra.mxu0 %v1233_v27  ;;  %4142 = vmatmul.mubr.f32.vlgmr.msra.gmra.mxu1 %v1233_v27 }
 0x44f   :  { %1415 = vmatpush1.msra.mxu0 %v5612_v44  ;;  %4145 = vmatpush3.msra.mxu1 %v5174_v45  ;;  %v5632_v45 = vld [vmem:[#allocation2 + $0x128] sm:$0xff] }
 0x450   :  { %1416 = vmatprep.subr.mxu0 %v5616_v16  ;;  %4146 = vmatprep.subr.mxu1 %v6968_v63 }
 0x451   :  { %1417 = vmatpush1.msra.mxu0 %v5620_v46  ;;  %4147 = vmatpush3.msra.mxu1 %v5184_v48  ;;  %v5640_v48 = vld [vmem:[#allocation2 + $0x110] sm:$0xff] }
 0x452   :  { %1418 = vmatprep.subr.mxu0 %v5624_v49  ;;  %4148 = vmatprep.subr.mxu1 %v6968_v63 }
 0x453   :  { %1419 = vmatpush1.msra.mxu0 %v5628_v47  ;;  %4149 = vmatpush3.msra.mxu1 %v5195_v50  ;;  %v5648_v50 = vld [vmem:[#allocation2 + $0xf8] sm:$0xff] }
 0x454   :  { %1420 = vmatprep.subr.mxu0 %v5632_v45  ;;  %4150 = vmatprep.subr.mxu1 %v6968_v63 }
 0x455   :  { %1421 = vmatpush1.msra.mxu0 %v5636_v21  ;;  %4151 = vmatpush3.msra.mxu1 %v5201_v51  ;;  %v5656_v51 = vld [vmem:[#allocation2 + $0xe0] sm:$0xff] }
 0x456   :  { %1422 = vmatprep.subr.mxu0 %v5640_v48  ;;  %4152 = vmatprep.subr.mxu1 %v6968_v63 }
 0x457   :  { %1423 = vmatpush1.msra.mxu0 %v5644_v18  ;;  %4153 = vmatpush3.msra.mxu1 %v5207_v52  ;;  %v5664_v52 = vld [vmem:[#allocation2 + $0xc8] sm:$0xff] }
 0x458   :  { %1424 = vmatprep.subr.mxu0 %v5648_v50  ;;  %4154 = vmatprep.subr.mxu1 %v6968_v63 }
 0x459   :  { %1425 = vmatpush1.msra.mxu0 %v5652_v2  ;;  %4155 = vmatpush3.msra.mxu1 %v5213_v53  ;;  %v5672_v53 = vld [vmem:[#allocation2 + $0xb0] sm:$0xff] }
 0x45a   :  { %1426 = vmatprep.subr.mxu0 %v5656_v51  ;;  %4156 = vmatprep.subr.mxu1 %v6968_v63 }
 0x45b   :  { %1427 = vmatpush1.msra.mxu0 %v5660_v3  ;;  %4157 = vmatpush3.msra.mxu1 %v5219_v54  ;;  %v5680_v54 = vld [vmem:[#allocation2 + $0x98] sm:$0xff] }
 0x45c   :  { %1428 = vmatprep.subr.mxu0 %v5664_v52  ;;  %4158 = vmatprep.subr.mxu1 %v6968_v63 }
 0x45d   :  { %1429 = vmatpush1.msra.mxu0 %v5668_v5  ;;  %4159 = vmatpush3.msra.mxu1 %v5225_v55  ;;  %v5688_v55 = vld [vmem:[#allocation2 + $0x80] sm:$0xff] }
 0x45e   :  { %1430 = vmatprep.subr.mxu0 %v5672_v53  ;;  %4160 = vmatprep.subr.mxu1 %v6968_v63 }
 0x45f   :  { %1431 = vmatpush1.msra.mxu0 %v5676_v6  ;;  %4161 = vmatpush3.msra.mxu1 %v5231_v56  ;;  %v5696_v56 = vld [vmem:[#allocation2 + $0x68] sm:$0xff] }
 0x460   :  { %1432 = vmatprep.subr.mxu0 %v5680_v54  ;;  %4162 = vmatprep.subr.mxu1 %v6968_v63 }
 0x461   :  { %1433 = vmatpush1.msra.mxu0 %v5684_v10  ;;  %4163 = vmatpush3.msra.mxu1 %v5237_v57  ;;  %v5704_v57 = vld [vmem:[#allocation2 + $0x50] sm:$0xff] }
 0x462   :  { %1434 = vmatprep.subr.mxu0 %v5688_v55  ;;  %4164 = vmatprep.subr.mxu1 %v6968_v63 }
 0x463   :  { %1435 = vmatpush1.msra.mxu0 %v5692_v13  ;;  %4165 = vmatpush3.msra.mxu1 %v5243_v58  ;;  %v5712_v58 = vld [vmem:[#allocation2 + $0x38] sm:$0xff] }
 0x464   :  { %1436 = vmatprep.subr.mxu0 %v5696_v56  ;;  %4166 = vmatprep.subr.mxu1 %v6968_v63 }
 0x465   :  { %1437 = vmatpush1.msra.mxu0 %v5700_v15  ;;  %4167 = vmatpush3.msra.mxu1 %v5249_v59  ;;  %v5720_v59 = vld [vmem:[#allocation2 + $0x20] sm:$0xff] }
 0x466   :  { %1438 = vmatprep.subr.mxu0 %v5704_v57  ;;  %4168 = vmatprep.subr.mxu1 %v6968_v63  ;;  %6991 = vst [vmem:[#allocation14_spill] sm:$0xff] %v5720_v59 }
 0x467   :  { %1439 = vmatpush1.msra.mxu0 %v5708_v17  ;;  %4169 = vmatpush3.msra.mxu1 %v5255_v60  ;;  %v5728_v60 = vld [vmem:[#allocation2 + $0x8] sm:$0xff] }
 0x468   :  { %1440 = vmatprep.subr.mxu0 %v5712_v58  ;;  %4170 = vmatprep.subr.mxu1 %v6968_v63  ;;  %6993 = vst [vmem:[#allocation16_spill] sm:$0xff] %v5728_v60 }
 0x469   :  { %1441 = vmatpush1.msra.mxu0 %v5716_v19  ;;  %4171 = vmatpush3.msra.mxu1 %v5261_v61 }
 0x46a   :  { %1442 = vmatprep.subr.mxu0 %v5720_v59  ;;  %4172 = vmatprep.subr.mxu1 %v6968_v63 }
 0x46b   :  { %1443 = vmatpush1.msra.mxu0 %v5724_v20  ;;  %4173 = vmatpush3.msra.mxu1 %v6986_v4 }
 0x46c   :  { %1444 = vmatprep.subr.mxu0 %v5728_v60  ;;  %4174 = vmatprep.subr.mxu1 %v6968_v63 }
 0x46d   :  { %1445 = vmatpush1.msra.mxu0 %v5732_v22  ;;  %1478 = vmatprep.mubr.f32.mxu0 %v6968_v63 }
 0x46e   :  { %4175 = vmatpush3.msra.mxu1 %v6989_v7  ;;  %4176 = vmatprep.mubr.msk.f32.mxu1 %vm4932_vm1, %v6968_v63 }
 0x46f   :  { %1593 = vmatprep.subr.mxu0 %v5598_v8  ;;  %4179 = vmatprep.subr.mxu1 %v6968_v63 }
 0x50e   :  { %v1301_v61 = vpop.f32.mrf.mxu0  ;;  %v1372_v4 = vpop.f32.mrf.mxu1 }
 0x50f   :  { %v1302_v23 = vadd.f32 %v1301_v61, %v5350_v14  ;;  %v1373_v42 = vadd.f32 %v1372_v4, %v5367_v0 }
 0x510   :  { %v4143_v25 = vpop.f32.mrf.mxu1  ;;  %v1303_v33 = vpop.f32.mrf.mxu0 }
 0x511   :  { %v1378_v26 = vrot.slane %v1302_v23, 4  ;;  %v1304_v7 = vadd.f32 %v1303_v33, %v5359_v62  ;;  %v1397_v29 = vrot.slane %v1373_v42, 4  ;;  %v5770_v33 = vld [vmem:[#allocation2 + $0x130] sm:$0xff]  ;;  %v5812_v42 = vld [vmem:[#allocation2 + $0x88] sm:$0xff] }
 0x513   :  { %v1382_v30 = vadd.f32 %v1378_v26, %v5354_v9  ;;  %v1379_v34 = vrot.slane %v1304_v7, 4  ;;  %v5776_v7 = vld [vmem:[#allocation2 + $0x118] sm:$0xff] }
 0x515   :  { %v3630_v32 = vmul.f32 -1.442695, %v1382_v30  ;;  %v1383_v36 = vadd.f32 %v1379_v34, %v6990_v28  ;;  %v5752_v30 = vld [vmem:[#allocation2 + $0x178] sm:$0xff]  ;;  %v5782_v34 = vld [vmem:[#allocation2 + $0x100] sm:$0xff] }
 0x517   :  { %4619 = vpow2.f32 %v3630_v32  ;;  %v3631_v41 = vmul.f32 -1.442695, %v1383_v36  ;;  %v5764_v32 = vld [vmem:[#allocation2 + $0x148] sm:$0xff] }
 0x518   :  { %v5788_v36 = vld [vmem:[#allocation2 + $0xe8] sm:$0xff] }
 0x524   :  { %v4620_v38 = vpop.eup %4619 }
 0x525   :  { %v1390_v39 = vadd.f32 1.0, %v4620_v38  ;;  %v5794_v38 = vld [vmem:[#allocation2 + $0xd0] sm:$0xff] }
 0x527   :  { %4621 = vrcp.f32 %v1390_v39  ;;  %v5800_v39 = vld [vmem:[#allocation2 + $0xb8] sm:$0xff] }
 0x528   :  { %4623 = vpow2.f32 %v3631_v41  ;;  %v5806_v41 = vld [vmem:[#allocation2 + $0xa0] sm:$0xff] }
 0x534   :  { %v4622_v1 = vpop.eup %4621 }
 0x535   :  { %v1399_v12 = vmul.f32 %v4622_v1, %v1397_v29  ;;  %v4624_v11 = vpop.eup %4623  ;;  %v5818_v29 = vld [vmem:[#allocation2 + $0x70] sm:$0xff]  ;;  %v5824_v1 = vld [vmem:[#allocation2 + $0x58] sm:$0xff] }
 0x536   :  { %v1391_v37 = vadd.f32 1.0, %v4624_v11  ;;  %v5843_v11 = vld [vmem:[#allocation2 + $0x10] sm:$0xff] }
 0x537   :  { %v1400_v24 = vadd.f32 %v1399_v12, %v5371_v43  ;;  %v5830_v12 = vld [vmem:[#allocation2 + $0x40] sm:$0xff]  ;;  %6996 = vst [vmem:[#allocation18_spill] sm:$0xff] %v5843_v11 }
 0x539   :  { %4625 = vtanh.f32 %v1400_v24  ;;  %v5836_v24 = vld [vmem:[#allocation2 + $0x28] sm:$0xff] }
 0x53a   :  { %4627 = vrcp.f32 %v1391_v37  ;;  %6995 = vst [vmem:[#allocation17_spill] sm:$0xff] %v5836_v24 }
 0x546   :  { %v4626_v31 = vpop.eup %4625 }
 0x547   :  { %v1403_v40 = vrot.slane %v4626_v31, 1  ;;  %v4628_v23 = vpop.eup %4627 }
 0x549   :  { %v1405_v27 = vsub.f32 %v5609_v35, %v1403_v40  ;;  %v5758_v35 = vld [vmem:[#allocation2 + $0x160] sm:$0xff] }
 0x54b   :  { %v1407_v61 = vrot.slane %v1405_v27, 7 }
 0x54d   :  { %v1409_v25 = vmul.f32 %v4628_v23, %v1407_v61 }
 0x54f   :  { %v5748_v26 = vadd.f32 %v4626_v31, %v1409_v25 }
 0x551   :  { %v1412_v4 = vrot.slane %v5748_v26, 4 }
 0x553   :  { %1479 = vmatmul.mubr.f32.vlgmr.msra.gmra.mxu0 %v1412_v4  ;;  %4177 = vmatmul.mubr.f32.vlgmr.msra.gmra.mxu1 %v1412_v4 }
 0x554   :  { %1594 = vmatpush1.msra.mxu0 %v5612_v44  ;;  %4180 = vmatpush3.msra.mxu1 %v5752_v30 }
 0x555   :  { %1595 = vmatprep.subr.mxu0 %v5616_v16  ;;  %4181 = vmatprep.subr.mxu1 %v6968_v63 }
 0x556   :  { %1596 = vmatpush1.msra.mxu0 %v5620_v46  ;;  %4182 = vmatpush3.msra.mxu1 %v5758_v35 }
 0x557   :  { %1597 = vmatprep.subr.mxu0 %v5624_v49  ;;  %4183 = vmatprep.subr.mxu1 %v6968_v63 }
 0x558   :  { %1598 = vmatpush1.msra.mxu0 %v5628_v47  ;;  %4184 = vmatpush3.msra.mxu1 %v5764_v32 }
 0x559   :  { %1599 = vmatprep.subr.mxu0 %v5632_v45  ;;  %4185 = vmatprep.subr.mxu1 %v6968_v63 }
 0x55a   :  { %1600 = vmatpush1.msra.mxu0 %v5636_v21  ;;  %4186 = vmatpush3.msra.mxu1 %v5770_v33 }
 0x55b   :  { %1601 = vmatprep.subr.mxu0 %v5640_v48  ;;  %4187 = vmatprep.subr.mxu1 %v6968_v63 }
 0x55c   :  { %1602 = vmatpush1.msra.mxu0 %v5644_v18  ;;  %4188 = vmatpush3.msra.mxu1 %v5776_v7 }
 0x55d   :  { %1603 = vmatprep.subr.mxu0 %v5648_v50  ;;  %4189 = vmatprep.subr.mxu1 %v6968_v63 }
 0x55e   :  { %1604 = vmatpush1.msra.mxu0 %v5652_v2  ;;  %4190 = vmatpush3.msra.mxu1 %v5782_v34 }
 0x55f   :  { %1605 = vmatprep.subr.mxu0 %v5656_v51  ;;  %4191 = vmatprep.subr.mxu1 %v6968_v63 }
 0x560   :  { %1606 = vmatpush1.msra.mxu0 %v5660_v3  ;;  %4192 = vmatpush3.msra.mxu1 %v5788_v36 }
 0x561   :  { %1607 = vmatprep.subr.mxu0 %v5664_v52  ;;  %4193 = vmatprep.subr.mxu1 %v6968_v63 }
 0x562   :  { %1608 = vmatpush1.msra.mxu0 %v5668_v5  ;;  %4194 = vmatpush3.msra.mxu1 %v5794_v38 }
 0x563   :  { %1609 = vmatprep.subr.mxu0 %v5672_v53  ;;  %4195 = vmatprep.subr.mxu1 %v6968_v63 }
 0x564   :  { %1610 = vmatpush1.msra.mxu0 %v5676_v6  ;;  %4196 = vmatpush3.msra.mxu1 %v5800_v39 }
 0x565   :  { %1611 = vmatprep.subr.mxu0 %v5680_v54  ;;  %4197 = vmatprep.subr.mxu1 %v6968_v63 }
 0x566   :  { %1612 = vmatpush1.msra.mxu0 %v5684_v10  ;;  %4198 = vmatpush3.msra.mxu1 %v5806_v41 }
 0x567   :  { %1613 = vmatprep.subr.mxu0 %v5688_v55  ;;  %4199 = vmatprep.subr.mxu1 %v6968_v63 }
 0x568   :  { %1614 = vmatpush1.msra.mxu0 %v5692_v13  ;;  %4200 = vmatpush3.msra.mxu1 %v5812_v42 }
 0x569   :  { %1615 = vmatprep.subr.mxu0 %v5696_v56  ;;  %4201 = vmatprep.subr.mxu1 %v6968_v63 }
 0x56a   :  { %1616 = vmatpush1.msra.mxu0 %v5700_v15  ;;  %4202 = vmatpush3.msra.mxu1 %v5818_v29 }
 0x56b   :  { %1617 = vmatprep.subr.mxu0 %v5704_v57  ;;  %4203 = vmatprep.subr.mxu1 %v6968_v63 }
 0x56c   :  { %1618 = vmatpush1.msra.mxu0 %v5708_v17  ;;  %4204 = vmatpush3.msra.mxu1 %v5824_v1 }
 0x56d   :  { %1619 = vmatprep.subr.mxu0 %v5712_v58  ;;  %4205 = vmatprep.subr.mxu1 %v6968_v63 }
 0x56e   :  { %1620 = vmatpush1.msra.mxu0 %v5716_v19  ;;  %4206 = vmatpush3.msra.mxu1 %v5830_v12 }
 0x56f   :  { %1621 = vmatprep.subr.mxu0 %v5720_v59  ;;  %4207 = vmatprep.subr.mxu1 %v6968_v63 }
 0x570   :  { %1622 = vmatpush1.msra.mxu0 %v5724_v20  ;;  %4208 = vmatpush3.msra.mxu1 %v5836_v24 }
 0x571   :  { %1623 = vmatprep.subr.mxu0 %v5728_v60  ;;  %4209 = vmatprep.subr.mxu1 %v6968_v63 }
 0x572   :  { %1624 = vmatpush1.msra.mxu0 %v5732_v22  ;;  %1657 = vmatprep.mubr.f32.mxu0 %v6968_v63 }
 0x573   :  { %4210 = vmatpush3.msra.mxu1 %v5843_v11  ;;  %4211 = vmatprep.mubr.msk.f32.mxu1 %vm4932_vm1, %v6968_v63 }
 0x574   :  { %1772 = vmatprep.subr.mxu0 %v5598_v8  ;;  %4214 = vmatprep.subr.mxu1 %v6968_v63 }
 0x613   :  { %v1480_v37 = vpop.f32.mrf.mxu0  ;;  %v1551_v31 = vpop.f32.mrf.mxu1 }
 0x614   :  { %v1481_v40 = vadd.f32 %v1480_v37, %v5350_v14  ;;  %v1552_v59 = vadd.f32 %v1551_v31, %v5367_v0  ;;  %v5964_v31 = vld [vmem:[#allocation5 + $0x148] sm:$0xff] }
 0x615   :  { %v4178_v27 = vpop.f32.mrf.mxu1  ;;  %v1482_v4 = vpop.f32.mrf.mxu0 }
 0x616   :  { %v1557_v61 = vrot.slane %v1481_v40, 3  ;;  %v1483_v11 = vadd.f32 %v1482_v4, %v5359_v62  ;;  %v1576_v37 = vrot.slane %v1552_v59, 3 }
 0x618   :  { %v1561_v23 = vadd.f32 %v1557_v61, %v5354_v9  ;;  %v1558_v22 = vrot.slane %v1483_v11, 3 }
 0x61a   :  { %v3632_v25 = vmul.f32 -1.442695, %v1561_v23  ;;  %v1562_v60 = vadd.f32 %v1558_v22, %v6990_v28 }
 0x61c   :  { %4629 = vpow2.f32 %v3632_v25  ;;  %v3633_v20 = vmul.f32 -1.442695, %v1562_v60 }
 0x629   :  { %v4630_v24 = vpop.eup %4629 }
 0x62a   :  { %v1569_v8 = vadd.f32 1.0, %v4630_v24 }
 0x62c   :  { %4631 = vrcp.f32 %v1569_v8 }
 0x62d   :  { %4633 = vpow2.f32 %v3633_v20 }
 0x639   :  { %v4632_v27 = vpop.eup %4631 }
 0x63a   :  { %v1578_v40 = vmul.f32 %v4632_v27, %v1576_v37  ;;  %v4634_v23 = vpop.eup %4633  ;;  %v5968_v37 = vld [vmem:[#allocation5 + $0x128] sm:$0xff]  ;;  %v5972_v27 = vld [vmem:[#allocation5 + $0x120] sm:$0xff] }
 0x63b   :  { %v1570_v25 = vadd.f32 1.0, %v4634_v23  ;;  %v5980_v23 = vld [vmem:[#allocation5 + $0x108] sm:$0xff] }
 0x63c   :  { %v1579_v61 = vadd.f32 %v1578_v40, %v5371_v43  ;;  %v5974_v40 = vld [vmem:[#allocation5 + $0x130] sm:$0xff] }
 0x63e   :  { %4635 = vtanh.f32 %v1579_v61  ;;  %v5976_v61 = vld [vmem:[#allocation5 + $0x110] sm:$0xff] }
 0x63f   :  { %4637 = vrcp.f32 %v1570_v25  ;;  %v5982_v25 = vld [vmem:[#allocation5 + $0x118] sm:$0xff] }
 0x64b   :  { %v4636_v4 = vpop.eup %4635 }
 0x64c   :  { %v1582_v11 = vrot.slane %v4636_v4, 1  ;;  %v4638_v24 = vpop.eup %4637 }
 0x64e   :  { %v1584_v22 = vsub.f32 %v5748_v26, %v1582_v11  ;;  %v5988_v11 = vld [vmem:[#allocation5 + $0xf0] sm:$0xff] }
 0x650   :  { %v1586_v28 = vrot.slane %v1584_v22, 7  ;;  %v5990_v22 = vld [vmem:[#allocation5 + $0x100] sm:$0xff] }
 0x652   :  { %v1588_v8 = vmul.f32 %v4638_v24, %v1586_v28  ;;  %v6997_v28 = vld [vmem:[#allocation14_spill] sm:$0xff]  ;;  %v5994_v24 = vld [vmem:[#allocation5 + $0xe0] sm:$0xff] }
 0x654   :  { %v5857_v60 = vadd.f32 %v4636_v4, %v1588_v8  ;;  %v5984_v4 = vld [vmem:[#allocation5 + $0xf8] sm:$0xff] }
 0x655   :  { %v5998_v8 = vld [vmem:[#allocation5 + $0xd8] sm:$0xff] }
 0x656   :  { %v1591_v20 = vrot.slane %v5857_v60, 5 }
 0x658   :  { %1658 = vmatmul.mubr.f32.vlgmr.msra.gmra.mxu0 %v1591_v20  ;;  %4212 = vmatmul.mubr.f32.vlgmr.msra.gmra.mxu1 %v1591_v20  ;;  %v6004_v20 = vld [vmem:[#allocation5 + $0xc8] sm:$0xff] }
 0x659   :  { %1773 = vmatpush1.msra.mxu0 %v5612_v44  ;;  %4215 = vmatpush3.msra.mxu1 %v5752_v30  ;;  %v6998_v44 = vld [vmem:[#allocation15_spill] sm:$0xff] }
 0x65a   :  { %1774 = vmatprep.subr.mxu0 %v5616_v16  ;;  %4216 = vmatprep.subr.mxu1 %v6968_v63  ;;  %v6999_v16 = vld [vmem:[#allocation17_spill] sm:$0xff] }
 0x65b   :  { %1775 = vmatpush1.msra.mxu0 %v5620_v46  ;;  %4217 = vmatpush3.msra.mxu1 %v5758_v35  ;;  %v7000_v46 = vld [vmem:[#allocation16_spill] sm:$0xff] }
 0x65c   :  { %1776 = vmatprep.subr.mxu0 %v5624_v49  ;;  %4218 = vmatprep.subr.mxu1 %v6968_v63  ;;  %v7001_v49 = vld [vmem:[#allocation19_spill] sm:$0xff] }
 0x65d   :  { %1777 = vmatpush1.msra.mxu0 %v5628_v47  ;;  %4219 = vmatpush3.msra.mxu1 %v5764_v32  ;;  %v7002_v47 = vld [vmem:[#allocation18_spill] sm:$0xff] }
 0x65e   :  { %1778 = vmatprep.subr.mxu0 %v5632_v45  ;;  %4220 = vmatprep.subr.mxu1 %v6968_v63 }
 0x65f   :  { %1779 = vmatpush1.msra.mxu0 %v5636_v21  ;;  %4221 = vmatpush3.msra.mxu1 %v5770_v33 }
 0x660   :  { %1780 = vmatprep.subr.mxu0 %v5640_v48  ;;  %4222 = vmatprep.subr.mxu1 %v6968_v63 }
 0x661   :  { %1781 = vmatpush1.msra.mxu0 %v5644_v18  ;;  %4223 = vmatpush3.msra.mxu1 %v5776_v7 }
 0x662   :  { %1782 = vmatprep.subr.mxu0 %v5648_v50  ;;  %4224 = vmatprep.subr.mxu1 %v6968_v63 }
 0x663   :  { %1783 = vmatpush1.msra.mxu0 %v5652_v2  ;;  %4225 = vmatpush3.msra.mxu1 %v5782_v34 }
 0x664   :  { %1784 = vmatprep.subr.mxu0 %v5656_v51  ;;  %4226 = vmatprep.subr.mxu1 %v6968_v63 }
 0x665   :  { %1785 = vmatpush1.msra.mxu0 %v5660_v3  ;;  %4227 = vmatpush3.msra.mxu1 %v5788_v36  ;;  %v5939_v36 = vld [vmem:[#allocation5 + $0x170] sm:$0xff] }
 0x666   :  { %1786 = vmatprep.subr.mxu0 %v5664_v52  ;;  %4228 = vmatprep.subr.mxu1 %v6968_v63  ;;  %7004 = vst [vmem:[#allocation20_spill] sm:$0xff] %v5939_v36 }
 0x667   :  { %1787 = vmatpush1.msra.mxu0 %v5668_v5  ;;  %4229 = vmatpush3.msra.mxu1 %v5794_v38  ;;  %v5942_v38 = vld [vmem:[#allocation5 + $0x168] sm:$0xff] }
 0x668   :  { %1788 = vmatprep.subr.mxu0 %v5672_v53  ;;  %4230 = vmatprep.subr.mxu1 %v6968_v63  ;;  %v7003_v53 = vld [vmem:[#allocation27_spill] sm:$0xff] }
 0x669   :  { %1789 = vmatpush1.msra.mxu0 %v5676_v6  ;;  %4231 = vmatpush3.msra.mxu1 %v5800_v39  ;;  %v5944_v39 = vld [vmem:[#allocation5 + $0x178] sm:$0xff] }
 0x66a   :  { %1790 = vmatprep.subr.mxu0 %v5680_v54  ;;  %4232 = vmatprep.subr.mxu1 %v6968_v63 }
 0x66b   :  { %1791 = vmatpush1.msra.mxu0 %v5684_v10  ;;  %4233 = vmatpush3.msra.mxu1 %v5806_v41  ;;  %v5948_v41 = vld [vmem:[#allocation5 + $0x158] sm:$0xff] }
 0x66c   :  { %1792 = vmatprep.subr.mxu0 %v5688_v55  ;;  %4234 = vmatprep.subr.mxu1 %v6968_v63 }
 0x66d   :  { %1793 = vmatpush1.msra.mxu0 %v5692_v13  ;;  %4235 = vmatpush3.msra.mxu1 %v5812_v42  ;;  %v5952_v42 = vld [vmem:[#allocation5 + $0x150] sm:$0xff] }
 0x66e   :  { %1794 = vmatprep.subr.mxu0 %v5696_v56  ;;  %4236 = vmatprep.subr.mxu1 %v6968_v63 }
 0x66f   :  { %1795 = vmatpush1.msra.mxu0 %v5700_v15  ;;  %4237 = vmatpush3.msra.mxu1 %v5818_v29  ;;  %v5954_v29 = vld [vmem:[#allocation5 + $0x160] sm:$0xff] }
 0x670   :  { %1796 = vmatprep.subr.mxu0 %v5704_v57  ;;  %4238 = vmatprep.subr.mxu1 %v6968_v63 }
 0x671   :  { %1797 = vmatpush1.msra.mxu0 %v5708_v17  ;;  %4239 = vmatpush3.msra.mxu1 %v5824_v1  ;;  %v5958_v1 = vld [vmem:[#allocation5 + $0x140] sm:$0xff] }
 0x672   :  { %1798 = vmatprep.subr.mxu0 %v5712_v58  ;;  %4240 = vmatprep.subr.mxu1 %v6968_v63 }
 0x673   :  { %1799 = vmatpush1.msra.mxu0 %v5716_v19  ;;  %4241 = vmatpush3.msra.mxu1 %v5830_v12  ;;  %v5962_v12 = vld [vmem:[#allocation5 + $0x138] sm:$0xff] }
 0x674   :  { %1800 = vmatprep.subr.mxu0 %v6997_v28  ;;  %4242 = vmatprep.subr.mxu1 %v6968_v63  ;;  %v6008_v28 = vld [vmem:[#allocation5 + $0xc0] sm:$0xff] }
 0x675   :  { %1801 = vmatpush1.msra.mxu0 %v6998_v44  ;;  %4243 = vmatpush3.msra.mxu1 %v6999_v16  ;;  %v6010_v44 = vld [vmem:[#allocation5 + $0xd0] sm:$0xff] }
 0x676   :  { %1802 = vmatprep.subr.mxu0 %v7000_v46  ;;  %4244 = vmatprep.subr.mxu1 %v6968_v63  ;;  %v6014_v16 = vld [vmem:[#allocation5 + $0xb0] sm:$0xff]  ;;  %v6018_v46 = vld [vmem:[#allocation5 + $0xa8] sm:$0xff] }
 0x677   :  { %1803 = vmatpush1.msra.mxu0 %v7001_v49  ;;  %1836 = vmatprep.mubr.f32.mxu0 %v6968_v63  ;;  %v6020_v49 = vld [vmem:[#allocation5 + $0xb8] sm:$0xff] }
 0x678   :  { %4245 = vmatpush3.msra.mxu1 %v7002_v47  ;;  %4246 = vmatprep.mubr.msk.f32.mxu1 %vm4932_vm1, %v6968_v63  ;;  %v6024_v47 = vld [vmem:[#allocation5 + $0x98] sm:$0xff] }
 0x679   :  { %4249 = vmatprep.subr.mxu1 %v6968_v63  ;;  %1967 = vmatprep.subr.mxu0 %v5939_v36 }
 0x718   :  { %v1659_v45 = vpop.f32.mrf.mxu0  ;;  %v1730_v21 = vpop.f32.mrf.mxu1 }
 0x719   :  { %v1660_v48 = vadd.f32 %v1659_v45, %v5350_v14  ;;  %v1731_v13 = vadd.f32 %v1730_v21, %v5367_v0  ;;  %v6028_v45 = vld [vmem:[#allocation5 + $0x90] sm:$0xff]  ;;  %v6030_v21 = vld [vmem:[#allocation5 + $0xa0] sm:$0xff] }
 0x71a   :  { %v4213_v18 = vpop.f32.mrf.mxu1  ;;  %v1661_v3 = vpop.f32.mrf.mxu0 }
 0x71b   :  { %v1736_v50 = vrot.slane %v1660_v48, 2  ;;  %v1662_v52 = vadd.f32 %v1661_v3, %v5359_v62  ;;  %v1755_v56 = vrot.slane %v1731_v13, 2  ;;  %v6034_v48 = vld [vmem:[#allocation5 + $0x80] sm:$0xff]  ;;  %v6038_v18 = vld [vmem:[#allocation5 + $0x78] sm:$0xff]  ;;  %v6050_v3 = vld [vmem:[#allocation5 + $0x70] sm:$0xff] }
 0x71c   :  { %v6074_v13 = vld [vmem:[#allocation5 + $0x20] sm:$0xff] }
 0x71d   :  { %v1740_v2 = vadd.f32 %v1736_v50, %v5354_v9  ;;  %v1737_v5 = vrot.slane %v1662_v52, 2  ;;  %v6040_v50 = vld [vmem:[#allocation5 + $0x88] sm:$0xff]  ;;  %v6054_v52 = vld [vmem:[#allocation5 + $0x50] sm:$0xff]  ;;  %7005 = vst [vmem:[#allocation14_spill] sm:$0xff] %v6074_v13 }
 0x71f   :  { %v3634_v51 = vmul.f32 -1.442695, %v1740_v2  ;;  %v1741_v6 = vadd.f32 %v1737_v5, %v7003_v53  ;;  %v6044_v2 = vld [vmem:[#allocation5 + $0x68] sm:$0xff] }
 0x720   :  { %v6058_v5 = vld [vmem:[#allocation5 + $0x48] sm:$0xff] }
 0x721   :  { %4639 = vpow2.f32 %v3634_v51  ;;  %v3635_v55 = vmul.f32 -1.442695, %v1741_v6  ;;  %v6048_v51 = vld [vmem:[#allocation5 + $0x60] sm:$0xff]  ;;  %v6060_v6 = vld [vmem:[#allocation5 + $0x58] sm:$0xff] }
 0x72e   :  { %v4640_v54 = vpop.eup %4639 }
 0x72f   :  { %v1748_v10 = vadd.f32 1.0, %v4640_v54  ;;  %v6064_v54 = vld [vmem:[#allocation5 + $0x38] sm:$0xff] }
 0x731   :  { %4641 = vrcp.f32 %v1748_v10  ;;  %v6068_v10 = vld [vmem:[#allocation5 + $0x30] sm:$0xff] }
 0x732   :  { %4643 = vpow2.f32 %v3635_v55  ;;  %v6070_v55 = vld [vmem:[#allocation5 + $0x40] sm:$0xff] }
 0x73e   :  { %v4642_v15 = vpop.eup %4641 }
 0x73f   :  { %v1757_v57 = vmul.f32 %v4642_v15, %v1755_v56  ;;  %v4644_v58 = vpop.eup %4643  ;;  %v6078_v56 = vld [vmem:[#allocation5 + $0x18] sm:$0xff]  ;;  %v6080_v15 = vld [vmem:[#allocation5 + $0x28] sm:$0xff] }
 0x740   :  { %v1749_v19 = vadd.f32 1.0, %v4644_v58  ;;  %7006 = vst [vmem:[#allocation15_spill] sm:$0xff] %v6078_v56  ;;  %7007 = vst [vmem:[#allocation17_spill] sm:$0xff] %v6080_v15  ;;  %v6090_v58 = vld [vmem:[#allocation5 + $0x10] sm:$0xff] }
 0x741   :  { %v1758_v17 = vadd.f32 %v1757_v57, %v5371_v43  ;;  %v6084_v57 = vld [vmem:[#allocation5 + $0x8] sm:$0xff]  ;;  %7010 = vst [vmem:[#allocation18_spill] sm:$0xff] %v6090_v58 }
 0x742   :  { %7008 = vst [vmem:[#allocation16_spill] sm:$0xff] %v6084_v57 }
 0x743   :  { %4645 = vtanh.f32 %v1758_v17  ;;  %v6088_v17 = vld [vmem:[#allocation5] sm:$0xff] }
 0x744   :  { %4647 = vrcp.f32 %v1749_v19  ;;  %7009 = vst [vmem:[#allocation19_spill] sm:$0xff] %v6088_v17 }
 0x750   :  { %v4646_v59 = vpop.eup %4645 }
 0x751   :  { %v1761_v26 = vrot.slane %v4646_v59, 1  ;;  %v4648_v32 = vpop.eup %4647 }
 0x753   :  { %v1763_v30 = vsub.f32 %v5857_v60, %v1761_v26  ;;  %v6000_v60 = vld [vmem:[#allocation5 + $0xe8] sm:$0xff] }
 0x755   :  { %v1765_v35 = vrot.slane %v1763_v30, 7 }
 0x757   :  { %v1767_v33 = vmul.f32 %v4648_v32, %v1765_v35 }
 0x759   :  { %v5933_v7 = vadd.f32 %v4646_v59, %v1767_v33 }
 0x75b   :  { %v1770_v34 = vrot.slane %v5933_v7, 6 }
 0x75d   :  { %1837 = vmatmul.mubr.f32.vlgmr.msra.gmra.mxu0 %v1770_v34  ;;  %4247 = vmatmul.mubr.f32.vlgmr.msra.gmra.mxu1 %v1770_v34 }
 0x75e   :  { %2031 = vmatprep.mubr.f32.mxu0 %v6968_v63  ;;  %4281 = vmatprep.mubr.msk.f32.mxu1 %vm4932_vm1, %v6968_v63 }
 0x75f   :  { %1968 = vmatpush1.msra.mxu0 %v5942_v38  ;;  %4250 = vmatpush3.msra.mxu1 %v5944_v39 }
 0x760   :  { %1969 = vmatprep.subr.mxu0 %v5948_v41  ;;  %4251 = vmatprep.subr.mxu1 %v6968_v63 }
 0x761   :  { %1970 = vmatpush1.msra.mxu0 %v5952_v42  ;;  %4252 = vmatpush3.msra.mxu1 %v5954_v29 }
 0x762   :  { %1971 = vmatprep.subr.mxu0 %v5958_v1  ;;  %4253 = vmatprep.subr.mxu1 %v6968_v63 }
 0x763   :  { %1972 = vmatpush1.msra.mxu0 %v5962_v12  ;;  %4254 = vmatpush3.msra.mxu1 %v5964_v31 }
 0x764   :  { %1973 = vmatprep.subr.mxu0 %v5968_v37  ;;  %4255 = vmatprep.subr.mxu1 %v6968_v63 }
 0x765   :  { %1974 = vmatpush1.msra.mxu0 %v5972_v27  ;;  %4256 = vmatpush3.msra.mxu1 %v5974_v40 }
 0x766   :  { %1975 = vmatprep.subr.mxu0 %v5976_v61  ;;  %4257 = vmatprep.subr.mxu1 %v6968_v63 }
 0x767   :  { %1976 = vmatpush1.msra.mxu0 %v5980_v23  ;;  %4258 = vmatpush3.msra.mxu1 %v5982_v25 }
 0x768   :  { %1977 = vmatprep.subr.mxu0 %v5984_v4  ;;  %4259 = vmatprep.subr.mxu1 %v6968_v63 }
 0x769   :  { %1978 = vmatpush1.msra.mxu0 %v5988_v11  ;;  %4260 = vmatpush3.msra.mxu1 %v5990_v22 }
 0x76a   :  { %1979 = vmatprep.subr.mxu0 %v5994_v24  ;;  %4261 = vmatprep.subr.mxu1 %v6968_v63 }
 0x76b   :  { %1980 = vmatpush1.msra.mxu0 %v5998_v8  ;;  %4262 = vmatpush3.msra.mxu1 %v6000_v60 }
 0x76c   :  { %1981 = vmatprep.subr.mxu0 %v6004_v20  ;;  %4263 = vmatprep.subr.mxu1 %v6968_v63 }
 0x76d   :  { %1982 = vmatpush1.msra.mxu0 %v6008_v28  ;;  %4264 = vmatpush3.msra.mxu1 %v6010_v44 }
 0x76e   :  { %1983 = vmatprep.subr.mxu0 %v6014_v16  ;;  %4265 = vmatprep.subr.mxu1 %v6968_v63 }
 0x76f   :  { %1984 = vmatpush1.msra.mxu0 %v6018_v46  ;;  %4266 = vmatpush3.msra.mxu1 %v6020_v49 }
 0x770   :  { %1985 = vmatprep.subr.mxu0 %v6024_v47  ;;  %4267 = vmatprep.subr.mxu1 %v6968_v63 }
 0x771   :  { %1986 = vmatpush1.msra.mxu0 %v6028_v45  ;;  %4268 = vmatpush3.msra.mxu1 %v6030_v21 }
 0x772   :  { %1987 = vmatprep.subr.mxu0 %v6034_v48  ;;  %4269 = vmatprep.subr.mxu1 %v6968_v63 }
 0x773   :  { %1988 = vmatpush1.msra.mxu0 %v6038_v18  ;;  %4270 = vmatpush3.msra.mxu1 %v6040_v50 }
 0x774   :  { %1989 = vmatprep.subr.mxu0 %v6044_v2  ;;  %4271 = vmatprep.subr.mxu1 %v6968_v63 }
 0x775   :  { %1990 = vmatpush1.msra.mxu0 %v6048_v51  ;;  %4272 = vmatpush3.msra.mxu1 %v6050_v3 }
 0x776   :  { %1991 = vmatprep.subr.mxu0 %v6054_v52  ;;  %4273 = vmatprep.subr.mxu1 %v6968_v63 }
 0x777   :  { %1992 = vmatpush1.msra.mxu0 %v6058_v5  ;;  %4274 = vmatpush3.msra.mxu1 %v6060_v6 }
 0x778   :  { %1993 = vmatprep.subr.mxu0 %v6064_v54  ;;  %4275 = vmatprep.subr.mxu1 %v6968_v63 }
 0x779   :  { %1994 = vmatpush1.msra.mxu0 %v6068_v10  ;;  %4276 = vmatpush3.msra.mxu1 %v6070_v55 }
 0x77a   :  { %1995 = vmatprep.subr.mxu0 %v6074_v13  ;;  %4277 = vmatprep.subr.mxu1 %v6968_v63 }
 0x77b   :  { %1996 = vmatpush1.msra.mxu0 %v6078_v56  ;;  %4278 = vmatpush3.msra.mxu1 %v6080_v15 }
 0x77c   :  { %1997 = vmatprep.subr.mxu0 %v6084_v57  ;;  %4279 = vmatprep.subr.mxu1 %v6968_v63 }
 0x77d   :  { %1998 = vmatpush1.msra.mxu0 %v6088_v17  ;;  %4280 = vmatpush3.msra.mxu1 %v6090_v58 }
 0x77e   :  { %2134 = vmatprep.subr.mxu0 %v5939_v36  ;;  %4284 = vmatprep.subr.mxu1 %v6968_v63 }
 0x81d   :  { %v1838_v19 = vpop.f32.mrf.mxu0  ;;  %v1909_v59 = vpop.f32.mrf.mxu1 }
 0x81e   :  { %v1839_v26 = vadd.f32 %v1838_v19, %v5350_v14  ;;  %v1910_v13 = vadd.f32 %v1909_v59, %v5367_v0  ;;  %v7015_v59 = vld [vmem:[#allocation19_spill] sm:$0xff] }
 0x81f   :  { %v4248_v30 = vpop.f32.mrf.mxu1  ;;  %v1840_v34 = vpop.f32.mrf.mxu0 }
 0x820   :  { %v1915_v35 = vrot.slane %v1839_v26, 1  ;;  %v1841_v57 = vadd.f32 %v1840_v34, %v5359_v62  ;;  %v1934_v14 = vrot.slane %v1910_v13, 1  ;;  %v7013_v13 = vld [vmem:[#allocation17_spill] sm:$0xff] }
 0x821   :  { %v182_v34 = vld [vmem:[%s6876_s11] sm:$0x7] }
 0x822   :  { %v1919_v32 = vadd.f32 %v1915_v35, %v5354_v9  ;;  %v1916_v17 = vrot.slane %v1841_v57, 1 }
 0x824   :  { %v3636_v33 = vmul.f32 -1.442695, %v1919_v32  ;;  %v1920_v58 = vadd.f32 %v1916_v17, %v7003_v53  ;;  %v7016_v32 = vld [vmem:[#allocation18_spill] sm:$0xff] }
 0x826   :  { %4649 = vpow2.f32 %v3636_v33  ;;  %v3637_v56 = vmul.f32 -1.442695, %v1920_v58  ;;  %v7017_v33 = vld [vmem:[#allocation20_spill] sm:$0xff] }
 0x833   :  { %v4650_v15 = vpop.eup %4649 }
 0x834   :  { %v1927_v36 = vadd.f32 1.0, %v4650_v15 }
 0x836   :  { %4651 = vrcp.f32 %v1927_v36 }
 0x837   :  { %4653 = vpow2.f32 %v3637_v56  ;;  %v7014_v56 = vld [vmem:[#allocation16_spill] sm:$0xff] }
 0x843   :  { %v4652_v19 = vpop.eup %4651 }
 0x844   :  { %v1936_v26 = vmul.f32 %v4652_v19, %v1934_v14  ;;  %v4654_v30 = vpop.eup %4653  ;;  %v7018_v14 = vld [vmem:[#allocation21_spill] sm:$0xff] }
 0x845   :  { %v1928_v35 = vadd.f32 1.0, %v4654_v30  ;;  %v6181_v19 = vrot.slane %v182_v34, %v7018_v14 }
 0x846   :  { %v1937_v9 = vadd.f32 %v1936_v26, %v5371_v43  ;;  %v7011_v43 = vld [vmem:[#allocation14_spill] sm:$0xff] }
 0x847   :  { %7019 = vst [vmem:[#allocation27_spill] sm:$0xff] %v6181_v19 }
 0x848   :  { %4655 = vtanh.f32 %v1937_v9 }
 0x849   :  { %4657 = vrcp.f32 %v1928_v35 }
 0x855   :  { %v4656_v62 = vpop.eup %4655 }
 0x856   :  { %v1940_v57 = vrot.slane %v4656_v62, 1  ;;  %v4658_v15 = vpop.eup %4657 }
 0x858   :  { %v1942_v53 = vsub.f32 %v5933_v7, %v1940_v57  ;;  %v7012_v7 = vld [vmem:[#allocation15_spill] sm:$0xff] }
 0x85a   :  { %v1944_v17 = vrot.slane %v1942_v53, 7 }
 0x85c   :  { %v1946_v36 = vmul.f32 %v4658_v15, %v1944_v17  ;;  %v7021_v17 = vld [vmem:[#allocation22_spill] sm:$0xff] }
 0x85d   :  { %v6186_v15 = vrot.slane %v182_v34, %v7021_v17 }
 0x85e   :  { %v6107_v58 = vadd.f32 %v4656_v62, %v1946_v36  ;;  %v7020_v62 = vld [vmem:[#allocation24_spill] sm:$0xff] }
 0x860   :  { %v1949_v0 = vrot.slane %v6107_v58, 7 }
 0x862   :  { %2032 = vmatmul.mubr.f32.vlgmr.msra.gmra.mxu0 %v1949_v0  ;;  %4282 = vmatmul.mubr.f32.vlgmr.msra.gmra.mxu1 %v1949_v0 }
 0x863   :  { %2135 = vmatpush1.msra.mxu0 %v5942_v38  ;;  %4285 = vmatpush3.msra.mxu1 %v5944_v39 }
 0x864   :  { %2136 = vmatprep.subr.mxu0 %v5948_v41  ;;  %4286 = vmatprep.subr.mxu1 %v6968_v63 }
 0x865   :  { %2137 = vmatpush1.msra.mxu0 %v5952_v42  ;;  %4287 = vmatpush3.msra.mxu1 %v5954_v29 }
 0x866   :  { %2138 = vmatprep.subr.mxu0 %v5958_v1  ;;  %4288 = vmatprep.subr.mxu1 %v6968_v63 }
 0x867   :  { %2139 = vmatpush1.msra.mxu0 %v5962_v12  ;;  %4289 = vmatpush3.msra.mxu1 %v5964_v31 }
 0x868   :  { %2140 = vmatprep.subr.mxu0 %v5968_v37  ;;  %4290 = vmatprep.subr.mxu1 %v6968_v63 }
 0x869   :  { %2141 = vmatpush1.msra.mxu0 %v5972_v27  ;;  %4291 = vmatpush3.msra.mxu1 %v5974_v40 }
 0x86a   :  { %2142 = vmatprep.subr.mxu0 %v5976_v61  ;;  %4292 = vmatprep.subr.mxu1 %v6968_v63 }
 0x86b   :  { %2143 = vmatpush1.msra.mxu0 %v5980_v23  ;;  %4293 = vmatpush3.msra.mxu1 %v5982_v25 }
 0x86c   :  { %2144 = vmatprep.subr.mxu0 %v5984_v4  ;;  %4294 = vmatprep.subr.mxu1 %v6968_v63 }
 0x86d   :  { %2145 = vmatpush1.msra.mxu0 %v5988_v11  ;;  %4295 = vmatpush3.msra.mxu1 %v5990_v22 }
 0x86e   :  { %2146 = vmatprep.subr.mxu0 %v5994_v24  ;;  %4296 = vmatprep.subr.mxu1 %v6968_v63 }
 0x86f   :  { %2147 = vmatpush1.msra.mxu0 %v5998_v8  ;;  %4297 = vmatpush3.msra.mxu1 %v6000_v60 }
 0x870   :  { %2148 = vmatprep.subr.mxu0 %v6004_v20  ;;  %4298 = vmatprep.subr.mxu1 %v6968_v63 }
 0x871   :  { %2149 = vmatpush1.msra.mxu0 %v6008_v28  ;;  %4299 = vmatpush3.msra.mxu1 %v6010_v44 }
 0x872   :  { %2150 = vmatprep.subr.mxu0 %v6014_v16  ;;  %4300 = vmatprep.subr.mxu1 %v6968_v63 }
 0x873   :  { %2151 = vmatpush1.msra.mxu0 %v6018_v46  ;;  %4301 = vmatpush3.msra.mxu1 %v6020_v49 }
 0x874   :  { %2152 = vmatprep.subr.mxu0 %v6024_v47  ;;  %4302 = vmatprep.subr.mxu1 %v6968_v63 }
 0x875   :  { %2153 = vmatpush1.msra.mxu0 %v6028_v45  ;;  %4303 = vmatpush3.msra.mxu1 %v6030_v21 }
 0x876   :  { %2154 = vmatprep.subr.mxu0 %v6034_v48  ;;  %4304 = vmatprep.subr.mxu1 %v6968_v63 }
 0x877   :  { %2155 = vmatpush1.msra.mxu0 %v6038_v18  ;;  %4305 = vmatpush3.msra.mxu1 %v6040_v50 }
 0x878   :  { %2156 = vmatprep.subr.mxu0 %v6044_v2  ;;  %4306 = vmatprep.subr.mxu1 %v6968_v63 }
 0x879   :  { %2157 = vmatpush1.msra.mxu0 %v6048_v51  ;;  %4307 = vmatpush3.msra.mxu1 %v6050_v3 }
 0x87a   :  { %2158 = vmatprep.subr.mxu0 %v6054_v52  ;;  %4308 = vmatprep.subr.mxu1 %v6968_v63 }
 0x87b   :  { %2159 = vmatpush1.msra.mxu0 %v6058_v5  ;;  %4309 = vmatpush3.msra.mxu1 %v6060_v6 }
 0x87c   :  { %2160 = vmatprep.subr.mxu0 %v6064_v54  ;;  %4310 = vmatprep.subr.mxu1 %v6968_v63 }
 0x87d   :  { %2161 = vmatpush1.msra.mxu0 %v6068_v10  ;;  %4311 = vmatpush3.msra.mxu1 %v6070_v55 }
 0x87e   :  { %2162 = vmatprep.subr.mxu0 %v7011_v43  ;;  %4312 = vmatprep.subr.mxu1 %v6968_v63 }
 0x87f   :  { %2163 = vmatpush1.msra.mxu0 %v7012_v7  ;;  %4313 = vmatpush3.msra.mxu1 %v7013_v13  ;;  %v7023_v13 = vld [vmem:[#allocation23_spill] sm:$0xff] }
 0x880   :  { %2164 = vmatprep.subr.mxu0 %v7014_v56  ;;  %4314 = vmatprep.subr.mxu1 %v6968_v63 }
 0x881   :  { %2165 = vmatpush1.msra.mxu0 %v7015_v59  ;;  %2198 = vmatprep.mubr.f32.mxu0 %v6968_v63 }
 0x882   :  { %4315 = vmatpush3.msra.mxu1 %v7016_v32  ;;  %4316 = vmatprep.mubr.msk.f32.mxu1 %vm4932_vm1, %v6968_v63 }
 0x883   :  { %2313 = vmatprep.subr.mxu0 %v7017_v33  ;;  %4319 = vmatprep.subr.mxu1 %v6968_v63  ;;  %v7022_v33 = vld [vmem:[#allocation25_spill] sm:$0xff] }
 0x922   :  { %v2033_v26 = vpop.f32.mrf.mxu0  ;;  %v2104_v9 = vpop.f32.mrf.mxu1 }
 0x923   :  { %v2034_v30 = vadd.f32 %v2033_v26, %v6181_v19  ;;  %v6191_v26 = vrot.slane %v182_v34, %v7023_v13  ;;  %v7027_v13 = vld [vmem:[#allocation16_spill] sm:$0xff]  ;;  %v7028_v34 = vld [vmem:[#allocation19_spill] sm:$0xff] }
 0x924   :  { %v4283_v35 = vpop.f32.mrf.mxu1  ;;  %v2035_v36 = vpop.f32.mrf.mxu0 }
 0x925   :  { %v2108_v57 = vadd.f32 %v2034_v30, %v7020_v62  ;;  %v2036_v0 = vadd.f32 %v2035_v36, %v6186_v15  ;;  %v2105_v30 = vadd.f32 %v2104_v9, %v6191_v26  ;;  %v7030_v9 = vld [vmem:[#allocation20_spill] sm:$0xff] }
 0x927   :  { %v3638_v53 = vmul.f32 -1.442695, %v2108_v57  ;;  %v2109_v32 = vadd.f32 %v2036_v0, %v7022_v33 }
 0x929   :  { %4659 = vpow2.f32 %v3638_v53  ;;  %v3639_v56 = vmul.f32 -1.442695, %v2109_v32  ;;  %v7024_v53 = vld [vmem:[#allocation26_spill] sm:$0xff] }
 0x936   :  { %v4660_v59 = vpop.eup %4659 }
 0x937   :  { %v2116_v14 = vadd.f32 1.0, %v4660_v59 }
 0x939   :  { %4661 = vrcp.f32 %v2116_v14 }
 0x93a   :  { %4663 = vpow2.f32 %v3639_v56 }
 0x946   :  { %v4662_v35 = vpop.eup %4661 }
 0x947   :  { %v2122_v57 = vmul.f32 %v4662_v35, %v2105_v30  ;;  %v4664_v62 = vpop.eup %4663  ;;  %v7031_v35 = vld [vmem:[#allocation27_spill] sm:$0xff] }
 0x948   :  { %v2117_v19 = vadd.f32 1.0, %v4664_v62 }
 0x949   :  { %v2123_v17 = vadd.f32 %v2122_v57, %v7024_v53 }
 0x94b   :  { %4665 = vtanh.f32 %v2123_v17 }
 0x94c   :  { %4667 = vrcp.f32 %v2117_v19  ;;  %v7029_v19 = vld [vmem:[#allocation18_spill] sm:$0xff] }
 0x958   :  { %v4666_v36 = vpop.eup %4665 }
 0x959   :  { %v2126_v0 = vrot.slane %v4666_v36, 1  ;;  %v4668_v32 = vpop.eup %4667 }
 0x95b   :  { %v2128_v59 = vsub.f32 %v6107_v58, %v2126_v0  ;;  %v7026_v58 = vld [vmem:[#allocation17_spill] sm:$0xff]  ;;  %v7032_v0 = vld [vmem:[#allocation24_spill] sm:$0xff] }
 0x95d   :  { %v2130_v14 = vrot.slane %v2128_v59, 7 }
 0x95f   :  { %v2132_v56 = vmul.f32 %v4668_v32, %v2130_v14 }
 0x961   :  { %v6196_v33 = vadd.f32 %v4666_v36, %v2132_v56 }
 0x963   :  { %7025 = vst [vmem:[#allocation21_spill] sm:$0xff] %v6196_v33  ;;  %2199 = vmatmul.mubr.f32.vlgmr.msra.gmra.mxu0 %v6196_v33  ;;  %4317 = vmatmul.mubr.f32.vlgmr.msra.gmra.mxu1 %v6196_v33 }
 0x964   :  { %2314 = vmatpush1.msra.mxu0 %v5942_v38  ;;  %4320 = vmatpush3.msra.mxu1 %v5944_v39 }
 0x965   :  { %2315 = vmatprep.subr.mxu0 %v5948_v41  ;;  %4321 = vmatprep.subr.mxu1 %v6968_v63 }
 0x966   :  { %2316 = vmatpush1.msra.mxu0 %v5952_v42  ;;  %4322 = vmatpush3.msra.mxu1 %v5954_v29 }
 0x967   :  { %2317 = vmatprep.subr.mxu0 %v5958_v1  ;;  %4323 = vmatprep.subr.mxu1 %v6968_v63 }
 0x968   :  { %2318 = vmatpush1.msra.mxu0 %v5962_v12  ;;  %4324 = vmatpush3.msra.mxu1 %v5964_v31 }
 0x969   :  { %2319 = vmatprep.subr.mxu0 %v5968_v37  ;;  %4325 = vmatprep.subr.mxu1 %v6968_v63 }
 0x96a   :  { %2320 = vmatpush1.msra.mxu0 %v5972_v27  ;;  %4326 = vmatpush3.msra.mxu1 %v5974_v40 }
 0x96b   :  { %2321 = vmatprep.subr.mxu0 %v5976_v61  ;;  %4327 = vmatprep.subr.mxu1 %v6968_v63 }
 0x96c   :  { %2322 = vmatpush1.msra.mxu0 %v5980_v23  ;;  %4328 = vmatpush3.msra.mxu1 %v5982_v25 }
 0x96d   :  { %2323 = vmatprep.subr.mxu0 %v5984_v4  ;;  %4329 = vmatprep.subr.mxu1 %v6968_v63 }
 0x96e   :  { %2324 = vmatpush1.msra.mxu0 %v5988_v11  ;;  %4330 = vmatpush3.msra.mxu1 %v5990_v22 }
 0x96f   :  { %2325 = vmatprep.subr.mxu0 %v5994_v24  ;;  %4331 = vmatprep.subr.mxu1 %v6968_v63 }
 0x970   :  { %2326 = vmatpush1.msra.mxu0 %v5998_v8  ;;  %4332 = vmatpush3.msra.mxu1 %v6000_v60 }
 0x971   :  { %2327 = vmatprep.subr.mxu0 %v6004_v20  ;;  %4333 = vmatprep.subr.mxu1 %v6968_v63 }
 0x972   :  { %2328 = vmatpush1.msra.mxu0 %v6008_v28  ;;  %4334 = vmatpush3.msra.mxu1 %v6010_v44 }
 0x973   :  { %2329 = vmatprep.subr.mxu0 %v6014_v16  ;;  %4335 = vmatprep.subr.mxu1 %v6968_v63 }
 0x974   :  { %2330 = vmatpush1.msra.mxu0 %v6018_v46  ;;  %4336 = vmatpush3.msra.mxu1 %v6020_v49 }
 0x975   :  { %2331 = vmatprep.subr.mxu0 %v6024_v47  ;;  %4337 = vmatprep.subr.mxu1 %v6968_v63 }
 0x976   :  { %2332 = vmatpush1.msra.mxu0 %v6028_v45  ;;  %4338 = vmatpush3.msra.mxu1 %v6030_v21 }
 0x977   :  { %2333 = vmatprep.subr.mxu0 %v6034_v48  ;;  %4339 = vmatprep.subr.mxu1 %v6968_v63 }
 0x978   :  { %2334 = vmatpush1.msra.mxu0 %v6038_v18  ;;  %4340 = vmatpush3.msra.mxu1 %v6040_v50 }
 0x979   :  { %2335 = vmatprep.subr.mxu0 %v6044_v2  ;;  %4341 = vmatprep.subr.mxu1 %v6968_v63 }
 0x97a   :  { %2336 = vmatpush1.msra.mxu0 %v6048_v51  ;;  %4342 = vmatpush3.msra.mxu1 %v6050_v3 }
 0x97b   :  { %2337 = vmatprep.subr.mxu0 %v6054_v52  ;;  %4343 = vmatprep.subr.mxu1 %v6968_v63 }
 0x97c   :  { %2338 = vmatpush1.msra.mxu0 %v6058_v5  ;;  %4344 = vmatpush3.msra.mxu1 %v6060_v6 }
 0x97d   :  { %2339 = vmatprep.subr.mxu0 %v6064_v54  ;;  %4345 = vmatprep.subr.mxu1 %v6968_v63 }
 0x97e   :  { %2340 = vmatpush1.msra.mxu0 %v6068_v10  ;;  %4346 = vmatpush3.msra.mxu1 %v6070_v55 }
 0x97f   :  { %2341 = vmatprep.subr.mxu0 %v7011_v43  ;;  %4347 = vmatprep.subr.mxu1 %v6968_v63 }
 0x980   :  { %2342 = vmatpush1.msra.mxu0 %v7012_v7  ;;  %4348 = vmatpush3.msra.mxu1 %v7026_v58 }
 0x981   :  { %2343 = vmatprep.subr.mxu0 %v7027_v13  ;;  %4349 = vmatprep.subr.mxu1 %v6968_v63 }
 0x982   :  { %2344 = vmatpush1.msra.mxu0 %v7028_v34  ;;  %2377 = vmatprep.mubr.f32.mxu0 %v6968_v63  ;;  %v7033_v34 = vld [vmem:[#allocation25_spill] sm:$0xff] }
 0x983   :  { %4350 = vmatpush3.msra.mxu1 %v7029_v19  ;;  %4351 = vmatprep.mubr.msk.f32.mxu1 %vm4932_vm1, %v6968_v63 }
 0x984   :  { %2492 = vmatprep.subr.mxu0 %v7030_v9  ;;  %4354 = vmatprep.subr.mxu1 %v6968_v63 }
 0xa23   :  { %v2200_v62 = vpop.f32.mrf.mxu0  ;;  %v2271_v30 = vpop.f32.mrf.mxu1 }
 0xa24   :  { %v2201_v57 = vadd.f32 %v2200_v62, %v7031_v35  ;;  %v2272_v43 = vadd.f32 %v2271_v30, %v6191_v26  ;;  %v7037_v30 = vld [vmem:[#allocation17_spill] sm:$0xff] }
 0xa25   :  { %v4318_v17 = vpop.f32.mrf.mxu1  ;;  %v2202_v32 = vpop.f32.mrf.mxu0 }
 0xa26   :  { %v2277_v36 = vrot.slane %v2201_v57, 7  ;;  %v2203_v56 = vadd.f32 %v2202_v32, %v6186_v15  ;;  %v2296_v62 = vrot.slane %v2272_v43, 7  ;;  %v7035_v43 = vld [vmem:[#allocation14_spill] sm:$0xff] }
 0xa28   :  { %v2281_v59 = vadd.f32 %v2277_v36, %v7032_v0  ;;  %v2278_v19 = vrot.slane %v2203_v56, 7 }
 0xa2a   :  { %v3640_v14 = vmul.f32 -1.442695, %v2281_v59  ;;  %v2282_v13 = vadd.f32 %v2278_v19, %v7033_v34 }
 0xa2c   :  { %4669 = vpow2.f32 %v3640_v14  ;;  %v3641_v7 = vmul.f32 -1.442695, %v2282_v13 }
 0xa39   :  { %v4670_v58 = vpop.eup %4669 }
 0xa3a   :  { %v2289_v9 = vadd.f32 1.0, %v4670_v58 }
 0xa3c   :  { %4671 = vrcp.f32 %v2289_v9 }
 0xa3d   :  { %4673 = vpow2.f32 %v3641_v7 }
 0xa49   :  { %v4672_v17 = vpop.eup %4671 }
 0xa4a   :  { %v2298_v57 = vmul.f32 %v4672_v17, %v2296_v62  ;;  %v4674_v59 = vpop.eup %4673  ;;  %v7038_v62 = vld [vmem:[#allocation16_spill] sm:$0xff]  ;;  %v7039_v17 = vld [vmem:[#allocation19_spill] sm:$0xff] }
 0xa4b   :  { %v2290_v14 = vadd.f32 1.0, %v4674_v59 }
 0xa4c   :  { %v2299_v36 = vadd.f32 %v2298_v57, %v7024_v53  ;;  %v7040_v57 = vld [vmem:[#allocation18_spill] sm:$0xff] }
 0xa4e   :  { %4675 = vtanh.f32 %v2299_v36  ;;  %v7041_v36 = vld [vmem:[#allocation20_spill] sm:$0xff] }
 0xa4f   :  { %4677 = vrcp.f32 %v2290_v14 }
 0xa5b   :  { %v4676_v32 = vpop.eup %4675 }
 0xa5c   :  { %v2302_v56 = vrot.slane %v4676_v32, 1  ;;  %v4678_v58 = vpop.eup %4677 }
 0xa5e   :  { %v2304_v19 = vsub.f32 %v6196_v33, %v2302_v56 }
 0xa60   :  { %v2306_v34 = vrot.slane %v2304_v19, 7 }
 0xa62   :  { %v2308_v9 = vmul.f32 %v4678_v58, %v2306_v34  ;;  %v7036_v34 = vld [vmem:[#allocation15_spill] sm:$0xff] }
 0xa64   :  { %v6274_v13 = vadd.f32 %v4676_v32, %v2308_v9 }
 0xa66   :  { %7034 = vst [vmem:[#allocation22_spill] sm:$0xff] %v6274_v13  ;;  %v2311_v7 = vrot.slane %v6274_v13, 1 }
 0xa68   :  { %2378 = vmatmul.mubr.f32.vlgmr.msra.gmra.mxu0 %v2311_v7  ;;  %4352 = vmatmul.mubr.f32.vlgmr.msra.gmra.mxu1 %v2311_v7 }
 0xa69   :  { %2493 = vmatpush1.msra.mxu0 %v5942_v38  ;;  %4355 = vmatpush3.msra.mxu1 %v5944_v39 }
 0xa6a   :  { %2494 = vmatprep.subr.mxu0 %v5948_v41  ;;  %4356 = vmatprep.subr.mxu1 %v6968_v63 }
 0xa6b   :  { %2495 = vmatpush1.msra.mxu0 %v5952_v42  ;;  %4357 = vmatpush3.msra.mxu1 %v5954_v29 }
 0xa6c   :  { %2496 = vmatprep.subr.mxu0 %v5958_v1  ;;  %4358 = vmatprep.subr.mxu1 %v6968_v63 }
 0xa6d   :  { %2497 = vmatpush1.msra.mxu0 %v5962_v12  ;;  %4359 = vmatpush3.msra.mxu1 %v5964_v31 }
 0xa6e   :  { %2498 = vmatprep.subr.mxu0 %v5968_v37  ;;  %4360 = vmatprep.subr.mxu1 %v6968_v63 }
 0xa6f   :  { %2499 = vmatpush1.msra.mxu0 %v5972_v27  ;;  %4361 = vmatpush3.msra.mxu1 %v5974_v40 }
 0xa70   :  { %2500 = vmatprep.subr.mxu0 %v5976_v61  ;;  %4362 = vmatprep.subr.mxu1 %v6968_v63 }
 0xa71   :  { %2501 = vmatpush1.msra.mxu0 %v5980_v23  ;;  %4363 = vmatpush3.msra.mxu1 %v5982_v25 }
 0xa72   :  { %2502 = vmatprep.subr.mxu0 %v5984_v4  ;;  %4364 = vmatprep.subr.mxu1 %v6968_v63 }
 0xa73   :  { %2503 = vmatpush1.msra.mxu0 %v5988_v11  ;;  %4365 = vmatpush3.msra.mxu1 %v5990_v22 }
 0xa74   :  { %2504 = vmatprep.subr.mxu0 %v5994_v24  ;;  %4366 = vmatprep.subr.mxu1 %v6968_v63 }
 0xa75   :  { %2505 = vmatpush1.msra.mxu0 %v5998_v8  ;;  %4367 = vmatpush3.msra.mxu1 %v6000_v60 }
 0xa76   :  { %2506 = vmatprep.subr.mxu0 %v6004_v20  ;;  %4368 = vmatprep.subr.mxu1 %v6968_v63 }
 0xa77   :  { %2507 = vmatpush1.msra.mxu0 %v6008_v28  ;;  %4369 = vmatpush3.msra.mxu1 %v6010_v44 }
 0xa78   :  { %2508 = vmatprep.subr.mxu0 %v6014_v16  ;;  %4370 = vmatprep.subr.mxu1 %v6968_v63 }
 0xa79   :  { %2509 = vmatpush1.msra.mxu0 %v6018_v46  ;;  %4371 = vmatpush3.msra.mxu1 %v6020_v49 }
 0xa7a   :  { %2510 = vmatprep.subr.mxu0 %v6024_v47  ;;  %4372 = vmatprep.subr.mxu1 %v6968_v63 }
 0xa7b   :  { %2511 = vmatpush1.msra.mxu0 %v6028_v45  ;;  %4373 = vmatpush3.msra.mxu1 %v6030_v21 }
 0xa7c   :  { %2512 = vmatprep.subr.mxu0 %v6034_v48  ;;  %4374 = vmatprep.subr.mxu1 %v6968_v63 }
 0xa7d   :  { %2513 = vmatpush1.msra.mxu0 %v6038_v18  ;;  %4375 = vmatpush3.msra.mxu1 %v6040_v50 }
 0xa7e   :  { %2514 = vmatprep.subr.mxu0 %v6044_v2  ;;  %4376 = vmatprep.subr.mxu1 %v6968_v63 }
 0xa7f   :  { %2515 = vmatpush1.msra.mxu0 %v6048_v51  ;;  %4377 = vmatpush3.msra.mxu1 %v6050_v3 }
 0xa80   :  { %2516 = vmatprep.subr.mxu0 %v6054_v52  ;;  %4378 = vmatprep.subr.mxu1 %v6968_v63 }
 0xa81   :  { %2517 = vmatpush1.msra.mxu0 %v6058_v5  ;;  %4379 = vmatpush3.msra.mxu1 %v6060_v6 }
 0xa82   :  { %2518 = vmatprep.subr.mxu0 %v6064_v54  ;;  %4380 = vmatprep.subr.mxu1 %v6968_v63 }
 0xa83   :  { %2519 = vmatpush1.msra.mxu0 %v6068_v10  ;;  %4381 = vmatpush3.msra.mxu1 %v6070_v55 }
 0xa84   :  { %2520 = vmatprep.subr.mxu0 %v7035_v43  ;;  %4382 = vmatprep.subr.mxu1 %v6968_v63 }
 0xa85   :  { %2521 = vmatpush1.msra.mxu0 %v7036_v34  ;;  %4383 = vmatpush3.msra.mxu1 %v7037_v30 }
 0xa86   :  { %2522 = vmatprep.subr.mxu0 %v7038_v62  ;;  %4384 = vmatprep.subr.mxu1 %v6968_v63 }
 0xa87   :  { %2523 = vmatpush1.msra.mxu0 %v7039_v17  ;;  %2556 = vmatprep.mubr.f32.mxu0 %v6968_v63  ;;  %v7042_v17 = vld [vmem:[#allocation25_spill] sm:$0xff] }
 0xa88   :  { %4385 = vmatpush3.msra.mxu1 %v7040_v57  ;;  %4386 = vmatprep.mubr.msk.f32.mxu1 %vm4932_vm1, %v6968_v63 }
 0xa89   :  { %2671 = vmatprep.subr.mxu0 %v7041_v36  ;;  %4389 = vmatprep.subr.mxu1 %v6968_v63 }
 0xb28   :  { %v2379_v59 = vpop.f32.mrf.mxu0  ;;  %v2450_v14 = vpop.f32.mrf.mxu1 }
 0xb29   :  { %v2380_v32 = vadd.f32 %v2379_v59, %v7031_v35  ;;  %v2451_v43 = vadd.f32 %v2450_v14, %v6191_v26  ;;  %v6453_v14 = vld [vmem:[#allocation5 + $0x138] sm:$0xff] }
 0xb2a   :  { %v4353_v56 = vpop.f32.mrf.mxu1  ;;  %v2381_v7 = vpop.f32.mrf.mxu0 }
 0xb2b   :  { %v2456_v19 = vrot.slane %v2380_v32, 6  ;;  %v2382_v33 = vadd.f32 %v2381_v7, %v6186_v15  ;;  %v2475_v59 = vrot.slane %v2451_v43, 6  ;;  %v6446_v43 = vld [vmem:[#allocation5 + $0x160] sm:$0xff] }
 0xb2d   :  { %v2460_v58 = vadd.f32 %v2456_v19, %v7032_v0  ;;  %v2457_v57 = vrot.slane %v2382_v33, 6 }
 0xb2f   :  { %v3642_v9 = vmul.f32 -1.442695, %v2460_v58  ;;  %v2461_v62 = vadd.f32 %v2457_v57, %v7042_v17 }
 0xb31   :  { %4679 = vpow2.f32 %v3642_v9  ;;  %v3643_v34 = vmul.f32 -1.442695, %v2461_v62 }
 0xb3e   :  { %v4680_v30 = vpop.eup %4679 }
 0xb3f   :  { %v2468_v36 = vadd.f32 1.0, %v4680_v30 }
 0xb41   :  { %4681 = vrcp.f32 %v2468_v36 }
 0xb42   :  { %4683 = vpow2.f32 %v3643_v34 }
 0xb4e   :  { %v4682_v56 = vpop.eup %4681 }
 0xb4f   :  { %v2477_v32 = vmul.f32 %v4682_v56, %v2475_v59  ;;  %v4684_v58 = vpop.eup %4683  ;;  %v6456_v59 = vld [vmem:[#allocation5 + $0x148] sm:$0xff] }
 0xb50   :  { %v2469_v9 = vadd.f32 1.0, %v4684_v58  ;;  %v6459_v56 = vld [vmem:[#allocation5 + $0x128] sm:$0xff]  ;;  %v6469_v58 = vld [vmem:[#allocation5 + $0x110] sm:$0xff] }
 0xb51   :  { %v2478_v19 = vadd.f32 %v2477_v32, %v7024_v53  ;;  %v6463_v32 = vld [vmem:[#allocation5 + $0x120] sm:$0xff] }
 0xb53   :  { %4685 = vtanh.f32 %v2478_v19  ;;  %v6466_v19 = vld [vmem:[#allocation5 + $0x130] sm:$0xff] }
 0xb54   :  { %4687 = vrcp.f32 %v2469_v9  ;;  %v6473_v9 = vld [vmem:[#allocation5 + $0x108] sm:$0xff] }
 0xb60   :  { %v4686_v7 = vpop.eup %4685 }
 0xb61   :  { %v2481_v33 = vrot.slane %v4686_v7, 1  ;;  %v4688_v30 = vpop.eup %4687 }
 0xb63   :  { %v2483_v57 = vsub.f32 %v6274_v13, %v2481_v33  ;;  %v6479_v33 = vld [vmem:[#allocation5 + $0xf8] sm:$0xff] }
 0xb65   :  { %v2485_v17 = vrot.slane %v2483_v57, 7  ;;  %v6483_v57 = vld [vmem:[#allocation5 + $0xf0] sm:$0xff] }
 0xb67   :  { %v2487_v36 = vmul.f32 %v4688_v30, %v2485_v17  ;;  %v6449_v17 = vld [vmem:[#allocation5 + $0x140] sm:$0xff] }
 0xb68   :  { %v6486_v30 = vld [vmem:[#allocation5 + $0x100] sm:$0xff] }
 0xb69   :  { %v6351_v62 = vadd.f32 %v4686_v7, %v2487_v36  ;;  %v6476_v7 = vld [vmem:[#allocation5 + $0x118] sm:$0xff]  ;;  %v6489_v36 = vld [vmem:[#allocation5 + $0xe0] sm:$0xff] }
 0xb6b   :  { %7043 = vst [vmem:[#allocation23_spill] sm:$0xff] %v6351_v62  ;;  %v2490_v34 = vrot.slane %v6351_v62, 2 }
 0xb6d   :  { %2557 = vmatmul.mubr.f32.vlgmr.msra.gmra.mxu0 %v2490_v34  ;;  %4387 = vmatmul.mubr.f32.vlgmr.msra.gmra.mxu1 %v2490_v34  ;;  %v6493_v34 = vld [vmem:[#allocation5 + $0xd8] sm:$0xff] }
 0xb6e   :  { %2672 = vmatpush1.msra.mxu0 %v5942_v38  ;;  %4390 = vmatpush3.msra.mxu1 %v5944_v39  ;;  %v7044_v38 = vld [vmem:[#allocation14_spill] sm:$0xff]  ;;  %v7045_v39 = vld [vmem:[#allocation15_spill] sm:$0xff] }
 0xb6f   :  { %2673 = vmatprep.subr.mxu0 %v5948_v41  ;;  %4391 = vmatprep.subr.mxu1 %v6968_v63  ;;  %v7046_v41 = vld [vmem:[#allocation17_spill] sm:$0xff] }
 0xb70   :  { %2674 = vmatpush1.msra.mxu0 %v5952_v42  ;;  %4392 = vmatpush3.msra.mxu1 %v5954_v29  ;;  %v7047_v42 = vld [vmem:[#allocation16_spill] sm:$0xff]  ;;  %v7048_v29 = vld [vmem:[#allocation19_spill] sm:$0xff] }
 0xb71   :  { %2675 = vmatprep.subr.mxu0 %v5958_v1  ;;  %4393 = vmatprep.subr.mxu1 %v6968_v63  ;;  %v7049_v1 = vld [vmem:[#allocation18_spill] sm:$0xff] }
 0xb72   :  { %2676 = vmatpush1.msra.mxu0 %v5962_v12  ;;  %4394 = vmatpush3.msra.mxu1 %v5964_v31  ;;  %v6419_v12 = vld [vmem:[#allocation5 + $0x170] sm:$0xff] }
 0xb73   :  { %2677 = vmatprep.subr.mxu0 %v5968_v37  ;;  %4395 = vmatprep.subr.mxu1 %v6968_v63  ;;  %7050 = vst [vmem:[#allocation26_spill] sm:$0xff] %v6419_v12 }
 0xb74   :  { %2678 = vmatpush1.msra.mxu0 %v5972_v27  ;;  %4396 = vmatpush3.msra.mxu1 %v5974_v40 }
 0xb75   :  { %2679 = vmatprep.subr.mxu0 %v5976_v61  ;;  %4397 = vmatprep.subr.mxu1 %v6968_v63 }
 0xb76   :  { %2680 = vmatpush1.msra.mxu0 %v5980_v23  ;;  %4398 = vmatpush3.msra.mxu1 %v5982_v25 }
 0xb77   :  { %2681 = vmatprep.subr.mxu0 %v5984_v4  ;;  %4399 = vmatprep.subr.mxu1 %v6968_v63 }
 0xb78   :  { %2682 = vmatpush1.msra.mxu0 %v5988_v11  ;;  %4400 = vmatpush3.msra.mxu1 %v5990_v22 }
 0xb79   :  { %2683 = vmatprep.subr.mxu0 %v5994_v24  ;;  %4401 = vmatprep.subr.mxu1 %v6968_v63  ;;  %v7051_v24 = vld [vmem:[#allocation25_spill] sm:$0xff] }
 0xb7a   :  { %2684 = vmatpush1.msra.mxu0 %v5998_v8  ;;  %4402 = vmatpush3.msra.mxu1 %v6000_v60 }
 0xb7b   :  { %2685 = vmatprep.subr.mxu0 %v6004_v20  ;;  %4403 = vmatprep.subr.mxu1 %v6968_v63 }
 0xb7c   :  { %2686 = vmatpush1.msra.mxu0 %v6008_v28  ;;  %4404 = vmatpush3.msra.mxu1 %v6010_v44 }
 0xb7d   :  { %2687 = vmatprep.subr.mxu0 %v6014_v16  ;;  %4405 = vmatprep.subr.mxu1 %v6968_v63 }
 0xb7e   :  { %2688 = vmatpush1.msra.mxu0 %v6018_v46  ;;  %4406 = vmatpush3.msra.mxu1 %v6020_v49 }
 0xb7f   :  { %2689 = vmatprep.subr.mxu0 %v6024_v47  ;;  %4407 = vmatprep.subr.mxu1 %v6968_v63 }
 0xb80   :  { %2690 = vmatpush1.msra.mxu0 %v6028_v45  ;;  %4408 = vmatpush3.msra.mxu1 %v6030_v21 }
 0xb81   :  { %2691 = vmatprep.subr.mxu0 %v6034_v48  ;;  %4409 = vmatprep.subr.mxu1 %v6968_v63 }
 0xb82   :  { %2692 = vmatpush1.msra.mxu0 %v6038_v18  ;;  %4410 = vmatpush3.msra.mxu1 %v6040_v50 }
 0xb83   :  { %2693 = vmatprep.subr.mxu0 %v6044_v2  ;;  %4411 = vmatprep.subr.mxu1 %v6968_v63 }
 0xb84   :  { %2694 = vmatpush1.msra.mxu0 %v6048_v51  ;;  %4412 = vmatpush3.msra.mxu1 %v6050_v3 }
 0xb85   :  { %2695 = vmatprep.subr.mxu0 %v6054_v52  ;;  %4413 = vmatprep.subr.mxu1 %v6968_v63 }
 0xb86   :  { %2696 = vmatpush1.msra.mxu0 %v6058_v5  ;;  %4414 = vmatpush3.msra.mxu1 %v6060_v6  ;;  %v6433_v6 = vld [vmem:[#allocation5 + $0x168] sm:$0xff] }
 0xb87   :  { %2697 = vmatprep.subr.mxu0 %v6064_v54  ;;  %4415 = vmatprep.subr.mxu1 %v6968_v63  ;;  %v6436_v54 = vld [vmem:[#allocation5 + $0x178] sm:$0xff] }
 0xb88   :  { %2698 = vmatpush1.msra.mxu0 %v6068_v10  ;;  %4416 = vmatpush3.msra.mxu1 %v6070_v55  ;;  %v6439_v10 = vld [vmem:[#allocation5 + $0x158] sm:$0xff]  ;;  %v6443_v55 = vld [vmem:[#allocation5 + $0x150] sm:$0xff] }
 0xb89   :  { %2699 = vmatprep.subr.mxu0 %v7044_v38  ;;  %4417 = vmatprep.subr.mxu1 %v6968_v63  ;;  %v6496_v38 = vld [vmem:[#allocation5 + $0xe8] sm:$0xff] }
 0xb8a   :  { %2700 = vmatpush1.msra.mxu0 %v7045_v39  ;;  %4418 = vmatpush3.msra.mxu1 %v7046_v41  ;;  %v6499_v39 = vld [vmem:[#allocation5 + $0xc8] sm:$0xff]  ;;  %v6503_v41 = vld [vmem:[#allocation5 + $0xc0] sm:$0xff] }
 0xb8b   :  { %2701 = vmatprep.subr.mxu0 %v7047_v42  ;;  %4419 = vmatprep.subr.mxu1 %v6968_v63  ;;  %v6506_v42 = vld [vmem:[#allocation5 + $0xd0] sm:$0xff] }
 0xb8c   :  { %2702 = vmatpush1.msra.mxu0 %v7048_v29  ;;  %2735 = vmatprep.mubr.f32.mxu0 %v6968_v63  ;;  %v6509_v29 = vld [vmem:[#allocation5 + $0xb0] sm:$0xff] }
 0xb8d   :  { %4420 = vmatpush3.msra.mxu1 %v7049_v1  ;;  %4421 = vmatprep.mubr.msk.f32.mxu1 %vm4932_vm1, %v6968_v63  ;;  %v6513_v1 = vld [vmem:[#allocation5 + $0xa8] sm:$0xff] }
 0xb8e   :  { %2850 = vmatprep.subr.mxu0 %v6419_v12  ;;  %4424 = vmatprep.subr.mxu1 %v6968_v63 }
 0xc2d   :  { %v2558_v31 = vpop.f32.mrf.mxu0  ;;  %v2629_v37 = vpop.f32.mrf.mxu1 }
 0xc2e   :  { %v2559_v27 = vadd.f32 %v2558_v31, %v7031_v35  ;;  %v2630_v44 = vadd.f32 %v2629_v37, %v6191_v26  ;;  %v6516_v31 = vld [vmem:[#allocation5 + $0xb8] sm:$0xff] }
 0xc2f   :  { %v4388_v40 = vpop.f32.mrf.mxu1  ;;  %v2560_v4 = vpop.f32.mrf.mxu0  ;;  %v6519_v37 = vld [vmem:[#allocation5 + $0x98] sm:$0xff] }
 0xc30   :  { %v2635_v61 = vrot.slane %v2559_v27, 5  ;;  %v2561_v11 = vadd.f32 %v2560_v4, %v6186_v15  ;;  %v2654_v16 = vrot.slane %v2630_v44, 5  ;;  %v6523_v27 = vld [vmem:[#allocation5 + $0x90] sm:$0xff]  ;;  %v6526_v40 = vld [vmem:[#allocation5 + $0xa0] sm:$0xff]  ;;  %v6539_v4 = vld [vmem:[#allocation5 + $0x68] sm:$0xff] }
 0xc31   :  { %v6563_v44 = vld [vmem:[#allocation5 + $0x30] sm:$0xff] }
 0xc32   :  { %v2639_v23 = vadd.f32 %v2635_v61, %v7032_v0  ;;  %v2636_v22 = vrot.slane %v2561_v11, 5  ;;  %v6529_v61 = vld [vmem:[#allocation5 + $0x80] sm:$0xff] }
 0xc33   :  { %v6543_v11 = vld [vmem:[#allocation5 + $0x60] sm:$0xff] }
 0xc34   :  { %v3644_v25 = vmul.f32 -1.442695, %v2639_v23  ;;  %v2640_v8 = vadd.f32 %v2636_v22, %v7051_v24  ;;  %v6533_v23 = vld [vmem:[#allocation5 + $0x78] sm:$0xff]  ;;  %v6546_v22 = vld [vmem:[#allocation5 + $0x70] sm:$0xff] }
 0xc36   :  { %4689 = vpow2.f32 %v3644_v25  ;;  %v3645_v28 = vmul.f32 -1.442695, %v2640_v8  ;;  %v6536_v25 = vld [vmem:[#allocation5 + $0x88] sm:$0xff]  ;;  %v6549_v8 = vld [vmem:[#allocation5 + $0x50] sm:$0xff] }
 0xc43   :  { %v4690_v60 = vpop.eup %4689 }
 0xc44   :  { %v2647_v20 = vadd.f32 1.0, %v4690_v60  ;;  %v6553_v60 = vld [vmem:[#allocation5 + $0x48] sm:$0xff] }
 0xc46   :  { %4691 = vrcp.f32 %v2647_v20  ;;  %v6556_v20 = vld [vmem:[#allocation5 + $0x58] sm:$0xff] }
 0xc47   :  { %4693 = vpow2.f32 %v3645_v28  ;;  %v6559_v28 = vld [vmem:[#allocation5 + $0x38] sm:$0xff] }
 0xc53   :  { %v4692_v46 = vpop.eup %4691 }
 0xc54   :  { %v2656_v49 = vmul.f32 %v4692_v46, %v2654_v16  ;;  %v4694_v45 = vpop.eup %4693  ;;  %v6566_v16 = vld [vmem:[#allocation5 + $0x40] sm:$0xff] }
 0xc55   :  { %v2648_v21 = vadd.f32 1.0, %v4694_v45  ;;  %v6569_v46 = vld [vmem:[#allocation5 + $0x20] sm:$0xff]  ;;  %v6579_v45 = vld [vmem:[#allocation5 + $0x8] sm:$0xff] }
 0xc56   :  { %v2657_v47 = vadd.f32 %v2656_v49, %v7024_v53  ;;  %7053 = vst [vmem:[#allocation24_spill] sm:$0xff] %v6569_v46  ;;  %v6573_v49 = vld [vmem:[#allocation5 + $0x18] sm:$0xff]  ;;  %7056 = vst [vmem:[#allocation15_spill] sm:$0xff] %v6579_v45 }
 0xc57   :  { %7054 = vst [vmem:[#allocation20_spill] sm:$0xff] %v6573_v49 }
 0xc58   :  { %4695 = vtanh.f32 %v2657_v47  ;;  %v6576_v47 = vld [vmem:[#allocation5 + $0x28] sm:$0xff] }
 0xc59   :  { %4697 = vrcp.f32 %v2648_v21  ;;  %7055 = vst [vmem:[#allocation14_spill] sm:$0xff] %v6576_v47  ;;  %v6583_v21 = vld [vmem:[#allocation5] sm:$0xff] }
 0xc5a   :  { %7057 = vst [vmem:[#allocation17_spill] sm:$0xff] %v6583_v21 }
 0xc65   :  { %v4696_v48 = vpop.eup %4695 }
 0xc66   :  { %v2660_v18 = vrot.slane %v4696_v48, 1  ;;  %v4698_v51 = vpop.eup %4697 }
 0xc68   :  { %v2662_v50 = vsub.f32 %v6351_v62, %v2660_v18 }
 0xc6a   :  { %v2664_v2 = vrot.slane %v2662_v50, 7 }
 0xc6c   :  { %v2666_v3 = vmul.f32 %v4698_v51, %v2664_v2 }
 0xc6e   :  { %v6430_v52 = vadd.f32 %v4696_v48, %v2666_v3  ;;  %v6587_v48 = vld [vmem:[#allocation5 + $0x10] sm:$0xff] }
 0xc6f   :  { %7058 = vst [vmem:[#allocation16_spill] sm:$0xff] %v6587_v48 }
 0xc70   :  { %7052 = vst [vmem:[#allocation27_spill] sm:$0xff] %v6430_v52  ;;  %v2669_v5 = vrot.slane %v6430_v52, 3 }
 0xc72   :  { %2736 = vmatmul.mubr.f32.vlgmr.msra.gmra.mxu0 %v2669_v5  ;;  %4422 = vmatmul.mubr.f32.vlgmr.msra.gmra.mxu1 %v2669_v5 }
 0xc73   :  { %2851 = vmatpush1.msra.mxu0 %v6433_v6  ;;  %4425 = vmatpush3.msra.mxu1 %v6436_v54 }
 0xc74   :  { %2852 = vmatprep.subr.mxu0 %v6439_v10  ;;  %4426 = vmatprep.subr.mxu1 %v6968_v63 }
 0xc75   :  { %2853 = vmatpush1.msra.mxu0 %v6443_v55  ;;  %4427 = vmatpush3.msra.mxu1 %v6446_v43 }
 0xc76   :  { %2854 = vmatprep.subr.mxu0 %v6449_v17  ;;  %4428 = vmatprep.subr.mxu1 %v6968_v63 }
 0xc77   :  { %2855 = vmatpush1.msra.mxu0 %v6453_v14  ;;  %4429 = vmatpush3.msra.mxu1 %v6456_v59 }
 0xc78   :  { %2856 = vmatprep.subr.mxu0 %v6459_v56  ;;  %4430 = vmatprep.subr.mxu1 %v6968_v63 }
 0xc79   :  { %2857 = vmatpush1.msra.mxu0 %v6463_v32  ;;  %4431 = vmatpush3.msra.mxu1 %v6466_v19 }
 0xc7a   :  { %2858 = vmatprep.subr.mxu0 %v6469_v58  ;;  %4432 = vmatprep.subr.mxu1 %v6968_v63 }
 0xc7b   :  { %2859 = vmatpush1.msra.mxu0 %v6473_v9  ;;  %4433 = vmatpush3.msra.mxu1 %v6476_v7 }
 0xc7c   :  { %2860 = vmatprep.subr.mxu0 %v6479_v33  ;;  %4434 = vmatprep.subr.mxu1 %v6968_v63 }
 0xc7d   :  { %2861 = vmatpush1.msra.mxu0 %v6483_v57  ;;  %4435 = vmatpush3.msra.mxu1 %v6486_v30 }
 0xc7e   :  { %2862 = vmatprep.subr.mxu0 %v6489_v36  ;;  %4436 = vmatprep.subr.mxu1 %v6968_v63 }
 0xc7f   :  { %2863 = vmatpush1.msra.mxu0 %v6493_v34  ;;  %4437 = vmatpush3.msra.mxu1 %v6496_v38 }
 0xc80   :  { %2864 = vmatprep.subr.mxu0 %v6499_v39  ;;  %4438 = vmatprep.subr.mxu1 %v6968_v63 }
 0xc81   :  { %2865 = vmatpush1.msra.mxu0 %v6503_v41  ;;  %4439 = vmatpush3.msra.mxu1 %v6506_v42 }
 0xc82   :  { %2866 = vmatprep.subr.mxu0 %v6509_v29  ;;  %4440 = vmatprep.subr.mxu1 %v6968_v63 }
 0xc83   :  { %2867 = vmatpush1.msra.mxu0 %v6513_v1  ;;  %4441 = vmatpush3.msra.mxu1 %v6516_v31 }
 0xc84   :  { %2868 = vmatprep.subr.mxu0 %v6519_v37  ;;  %4442 = vmatprep.subr.mxu1 %v6968_v63 }
 0xc85   :  { %2869 = vmatpush1.msra.mxu0 %v6523_v27  ;;  %4443 = vmatpush3.msra.mxu1 %v6526_v40 }
 0xc86   :  { %2870 = vmatprep.subr.mxu0 %v6529_v61  ;;  %4444 = vmatprep.subr.mxu1 %v6968_v63 }
 0xc87   :  { %2871 = vmatpush1.msra.mxu0 %v6533_v23  ;;  %4445 = vmatpush3.msra.mxu1 %v6536_v25 }
 0xc88   :  { %2872 = vmatprep.subr.mxu0 %v6539_v4  ;;  %4446 = vmatprep.subr.mxu1 %v6968_v63 }
 0xc89   :  { %2873 = vmatpush1.msra.mxu0 %v6543_v11  ;;  %4447 = vmatpush3.msra.mxu1 %v6546_v22 }
 0xc8a   :  { %2874 = vmatprep.subr.mxu0 %v6549_v8  ;;  %4448 = vmatprep.subr.mxu1 %v6968_v63 }
 0xc8b   :  { %2875 = vmatpush1.msra.mxu0 %v6553_v60  ;;  %4449 = vmatpush3.msra.mxu1 %v6556_v20 }
 0xc8c   :  { %2876 = vmatprep.subr.mxu0 %v6559_v28  ;;  %4450 = vmatprep.subr.mxu1 %v6968_v63 }
 0xc8d   :  { %2877 = vmatpush1.msra.mxu0 %v6563_v44  ;;  %4451 = vmatpush3.msra.mxu1 %v6566_v16 }
 0xc8e   :  { %2878 = vmatprep.subr.mxu0 %v6569_v46  ;;  %4452 = vmatprep.subr.mxu1 %v6968_v63 }
 0xc8f   :  { %2879 = vmatpush1.msra.mxu0 %v6573_v49  ;;  %4453 = vmatpush3.msra.mxu1 %v6576_v47 }
 0xc90   :  { %2880 = vmatprep.subr.mxu0 %v6579_v45  ;;  %4454 = vmatprep.subr.mxu1 %v6968_v63 }
 0xc91   :  { %2881 = vmatpush1.msra.mxu0 %v6583_v21  ;;  %2914 = vmatprep.mubr.f32.mxu0 %v6968_v63 }
 0xc92   :  { %4455 = vmatpush3.msra.mxu1 %v6587_v48  ;;  %4456 = vmatprep.mubr.msk.f32.mxu1 %vm4932_vm1, %v6968_v63 }
 0xc93   :  { %3029 = vmatprep.subr.mxu0 %v6419_v12  ;;  %4459 = vmatprep.subr.mxu1 %v6968_v63 }
 0xd32   :  { %v2737_v18 = vpop.f32.mrf.mxu0  ;;  %v2808_v50 = vpop.f32.mrf.mxu1 }
 0xd33   :  { %v2738_v2 = vadd.f32 %v2737_v18, %v7031_v35  ;;  %v2809_v46 = vadd.f32 %v2808_v50, %v6191_v26  ;;  %v7061_v50 = vld [vmem:[#allocation14_spill] sm:$0xff] }
 0xd34   :  { %v4423_v51 = vpop.f32.mrf.mxu1  ;;  %v2739_v13 = vpop.f32.mrf.mxu0 }
 0xd35   :  { %v2814_v3 = vrot.slane %v2738_v2, 4  ;;  %v2740_v48 = vadd.f32 %v2739_v13, %v6186_v15  ;;  %v2833_v18 = vrot.slane %v2809_v46, 4  ;;  %v7060_v46 = vld [vmem:[#allocation20_spill] sm:$0xff] }
 0xd37   :  { %v2818_v5 = vadd.f32 %v2814_v3, %v7032_v0  ;;  %v2815_v21 = vrot.slane %v2740_v48, 4 }
 0xd39   :  { %v3646_v62 = vmul.f32 -1.442695, %v2818_v5  ;;  %v2819_v45 = vadd.f32 %v2815_v21, %v7051_v24 }
 0xd3b   :  { %4699 = vpow2.f32 %v3646_v62  ;;  %v3647_v49 = vmul.f32 -1.442695, %v2819_v45 }
 0xd48   :  { %v4700_v47 = vpop.eup %4699 }
 0xd49   :  { %v2826_v12 = vadd.f32 1.0, %v4700_v47 }
 0xd4b   :  { %4701 = vrcp.f32 %v2826_v12 }
 0xd4c   :  { %4703 = vpow2.f32 %v3647_v49 }
 0xd58   :  { %v4702_v51 = vpop.eup %4701 }
 0xd59   :  { %v2835_v2 = vmul.f32 %v4702_v51, %v2833_v18  ;;  %v4704_v5 = vpop.eup %4703  ;;  %v7062_v18 = vld [vmem:[#allocation15_spill] sm:$0xff]  ;;  %v7063_v51 = vld [vmem:[#allocation17_spill] sm:$0xff] }
 0xd5a   :  { %v2827_v62 = vadd.f32 1.0, %v4704_v5 }
 0xd5b   :  { %v2836_v3 = vadd.f32 %v2835_v2, %v7024_v53  ;;  %v7064_v2 = vld [vmem:[#allocation16_spill] sm:$0xff] }
 0xd5d   :  { %4705 = vtanh.f32 %v2836_v3  ;;  %v7065_v3 = vld [vmem:[#allocation26_spill] sm:$0xff] }
 0xd5e   :  { %4707 = vrcp.f32 %v2827_v62 }
 0xd6a   :  { %v4706_v13 = vpop.eup %4705 }
 0xd6b   :  { %v2839_v48 = vrot.slane %v4706_v13, 1  ;;  %v4708_v47 = vpop.eup %4707 }
 0xd6d   :  { %v2841_v21 = vsub.f32 %v6430_v52, %v2839_v48 }
 0xd6f   :  { %v2843_v24 = vrot.slane %v2841_v21, 7 }
 0xd71   :  { %v2845_v12 = vmul.f32 %v4708_v47, %v2843_v24  ;;  %v7059_v24 = vld [vmem:[#allocation24_spill] sm:$0xff] }
 0xd73   :  { %v6601_v45 = vadd.f32 %v4706_v13, %v2845_v12 }
 0xd75   :  { %v2848_v49 = vrot.slane %v6601_v45, 4 }
 0xd77   :  { %2915 = vmatmul.mubr.f32.vlgmr.msra.gmra.mxu0 %v2848_v49  ;;  %4457 = vmatmul.mubr.f32.vlgmr.msra.gmra.mxu1 %v2848_v49 }
 0xd78   :  { %3030 = vmatpush1.msra.mxu0 %v6433_v6  ;;  %4460 = vmatpush3.msra.mxu1 %v6436_v54 }
 0xd79   :  { %3031 = vmatprep.subr.mxu0 %v6439_v10  ;;  %4461 = vmatprep.subr.mxu1 %v6968_v63 }
 0xd7a   :  { %3032 = vmatpush1.msra.mxu0 %v6443_v55  ;;  %4462 = vmatpush3.msra.mxu1 %v6446_v43 }
 0xd7b   :  { %3033 = vmatprep.subr.mxu0 %v6449_v17  ;;  %4463 = vmatprep.subr.mxu1 %v6968_v63 }
 0xd7c   :  { %3034 = vmatpush1.msra.mxu0 %v6453_v14  ;;  %4464 = vmatpush3.msra.mxu1 %v6456_v59 }
 0xd7d   :  { %3035 = vmatprep.subr.mxu0 %v6459_v56  ;;  %4465 = vmatprep.subr.mxu1 %v6968_v63 }
 0xd7e   :  { %3036 = vmatpush1.msra.mxu0 %v6463_v32  ;;  %4466 = vmatpush3.msra.mxu1 %v6466_v19 }
 0xd7f   :  { %3037 = vmatprep.subr.mxu0 %v6469_v58  ;;  %4467 = vmatprep.subr.mxu1 %v6968_v63 }
 0xd80   :  { %3038 = vmatpush1.msra.mxu0 %v6473_v9  ;;  %4468 = vmatpush3.msra.mxu1 %v6476_v7 }
 0xd81   :  { %3039 = vmatprep.subr.mxu0 %v6479_v33  ;;  %4469 = vmatprep.subr.mxu1 %v6968_v63 }
 0xd82   :  { %3040 = vmatpush1.msra.mxu0 %v6483_v57  ;;  %4470 = vmatpush3.msra.mxu1 %v6486_v30 }
 0xd83   :  { %3041 = vmatprep.subr.mxu0 %v6489_v36  ;;  %4471 = vmatprep.subr.mxu1 %v6968_v63 }
 0xd84   :  { %3042 = vmatpush1.msra.mxu0 %v6493_v34  ;;  %4472 = vmatpush3.msra.mxu1 %v6496_v38 }
 0xd85   :  { %3043 = vmatprep.subr.mxu0 %v6499_v39  ;;  %4473 = vmatprep.subr.mxu1 %v6968_v63 }
 0xd86   :  { %3044 = vmatpush1.msra.mxu0 %v6503_v41  ;;  %4474 = vmatpush3.msra.mxu1 %v6506_v42 }
 0xd87   :  { %3045 = vmatprep.subr.mxu0 %v6509_v29  ;;  %4475 = vmatprep.subr.mxu1 %v6968_v63 }
 0xd88   :  { %3046 = vmatpush1.msra.mxu0 %v6513_v1  ;;  %4476 = vmatpush3.msra.mxu1 %v6516_v31 }
 0xd89   :  { %3047 = vmatprep.subr.mxu0 %v6519_v37  ;;  %4477 = vmatprep.subr.mxu1 %v6968_v63 }
 0xd8a   :  { %3048 = vmatpush1.msra.mxu0 %v6523_v27  ;;  %4478 = vmatpush3.msra.mxu1 %v6526_v40 }
 0xd8b   :  { %3049 = vmatprep.subr.mxu0 %v6529_v61  ;;  %4479 = vmatprep.subr.mxu1 %v6968_v63 }
 0xd8c   :  { %3050 = vmatpush1.msra.mxu0 %v6533_v23  ;;  %4480 = vmatpush3.msra.mxu1 %v6536_v25 }
 0xd8d   :  { %3051 = vmatprep.subr.mxu0 %v6539_v4  ;;  %4481 = vmatprep.subr.mxu1 %v6968_v63 }
 0xd8e   :  { %3052 = vmatpush1.msra.mxu0 %v6543_v11  ;;  %4482 = vmatpush3.msra.mxu1 %v6546_v22 }
 0xd8f   :  { %3053 = vmatprep.subr.mxu0 %v6549_v8  ;;  %4483 = vmatprep.subr.mxu1 %v6968_v63 }
 0xd90   :  { %3054 = vmatpush1.msra.mxu0 %v6553_v60  ;;  %4484 = vmatpush3.msra.mxu1 %v6556_v20 }
 0xd91   :  { %3055 = vmatprep.subr.mxu0 %v6559_v28  ;;  %4485 = vmatprep.subr.mxu1 %v6968_v63 }
 0xd92   :  { %3056 = vmatpush1.msra.mxu0 %v6563_v44  ;;  %4486 = vmatpush3.msra.mxu1 %v6566_v16 }
 0xd93   :  { %3057 = vmatprep.subr.mxu0 %v7059_v24  ;;  %4487 = vmatprep.subr.mxu1 %v6968_v63 }
 0xd94   :  { %3058 = vmatpush1.msra.mxu0 %v7060_v46  ;;  %4488 = vmatpush3.msra.mxu1 %v7061_v50 }
 0xd95   :  { %3059 = vmatprep.subr.mxu0 %v7062_v18  ;;  %4489 = vmatprep.subr.mxu1 %v6968_v63 }
 0xd96   :  { %3060 = vmatpush1.msra.mxu0 %v7063_v51  ;;  %3093 = vmatprep.mubr.f32.mxu0 %v6968_v63  ;;  %v7066_v51 = vld [vmem:[#allocation25_spill] sm:$0xff] }
 0xd97   :  { %4490 = vmatpush3.msra.mxu1 %v7064_v2  ;;  %4491 = vmatprep.mubr.msk.f32.mxu1 %vm4932_vm1, %v6968_v63 }
 0xd98   :  { %3208 = vmatprep.subr.mxu0 %v7065_v3  ;;  %4494 = vmatprep.subr.mxu1 %v6968_v63 }
 0xe37   :  { %v2916_v5 = vpop.f32.mrf.mxu0  ;;  %v2987_v62 = vpop.f32.mrf.mxu1 }
 0xe38   :  { %v2917_v13 = vadd.f32 %v2916_v5, %v7031_v35  ;;  %v2988_v24 = vadd.f32 %v2987_v62, %v6191_v26  ;;  %v3407_v62 = vld [vmem:[%s6877_s12 + $0x40] sm:$0xff] }
 0xe39   :  { %v4458_v48 = vpop.f32.mrf.mxu1  ;;  %v2918_v49 = vpop.f32.mrf.mxu0 }
 0xe3a   :  { %v2993_v21 = vrot.slane %v2917_v13, 3  ;;  %v2919_v52 = vadd.f32 %v2918_v49, %v6186_v15  ;;  %v3012_v5 = vrot.slane %v2988_v24, 3  ;;  %v3409_v24 = vld [vmem:[%s6877_s12 + $0x50] sm:$0xff] }
 0xe3c   :  { %v2997_v47 = vadd.f32 %v2993_v21, %v7032_v0  ;;  %v2994_v2 = vrot.slane %v2919_v52, 3 }
 0xe3e   :  { %v3648_v12 = vmul.f32 -1.442695, %v2997_v47  ;;  %v2998_v18 = vadd.f32 %v2994_v2, %v7066_v51 }
 0xe40   :  { %4709 = vpow2.f32 %v3648_v12  ;;  %v3649_v46 = vmul.f32 -1.442695, %v2998_v18 }
 0xe4d   :  { %v4710_v50 = vpop.eup %4709 }
 0xe4e   :  { %v3005_v3 = vadd.f32 1.0, %v4710_v50 }
 0xe50   :  { %4711 = vrcp.f32 %v3005_v3 }
 0xe51   :  { %4713 = vpow2.f32 %v3649_v46 }
 0xe5d   :  { %v4712_v48 = vpop.eup %4711 }
 0xe5e   :  { %v3014_v13 = vmul.f32 %v4712_v48, %v3012_v5  ;;  %v4714_v47 = vpop.eup %4713  ;;  %v3406_v5 = vld [vmem:[%s6877_s12 + $0x38] sm:$0xff]  ;;  %v3405_v48 = vld [vmem:[%s6877_s12 + $0x30] sm:$0xff] }
 0xe5f   :  { %v3006_v12 = vadd.f32 1.0, %v4714_v47  ;;  %v3402_v47 = vld [vmem:[%s6877_s12 + $0x18] sm:$0xff] }
 0xe60   :  { %v3015_v21 = vadd.f32 %v3014_v13, %v7024_v53  ;;  %v3404_v13 = vld [vmem:[%s6877_s12 + $0x28] sm:$0xff] }
 0xe62   :  { %4715 = vtanh.f32 %v3015_v21  ;;  %v3403_v21 = vld [vmem:[%s6877_s12 + $0x20] sm:$0xff] }
 0xe63   :  { %4717 = vrcp.f32 %v3006_v12  ;;  %v3401_v12 = vld [vmem:[%s6877_s12 + $0x10] sm:$0xff] }
 0xe6f   :  { %v4716_v49 = vpop.eup %4715 }
 0xe70   :  { %v3018_v52 = vrot.slane %v4716_v49, 1  ;;  %v4718_v50 = vpop.eup %4717 }
 0xe72   :  { %v3020_v2 = vsub.f32 %v6601_v45, %v3018_v52  ;;  %v3399_v52 = vld [vmem:[%s6877_s12] sm:$0xff] }
 0xe74   :  { %v3022_v51 = vrot.slane %v3020_v2, 7 }
 0xe76   :  { %v3024_v3 = vmul.f32 %v4718_v50, %v3022_v51  ;;  %v3408_v51 = vld [vmem:[%s6877_s12 + $0x48] sm:$0xff] }
 0xe78   :  { %v6678_v18 = vadd.f32 %v4716_v49, %v3024_v3  ;;  %v3400_v49 = vld [vmem:[%s6877_s12 + $0x8] sm:$0xff] }
 0xe7a   :  { %v3027_v46 = vrot.slane %v6678_v18, 5 }
 0xe7c   :  { %3094 = vmatmul.mubr.f32.vlgmr.msra.gmra.mxu0 %v3027_v46  ;;  %4492 = vmatmul.mubr.f32.vlgmr.msra.gmra.mxu1 %v3027_v46 }
 0xe7d   :  { %3209 = vmatpush1.msra.mxu0 %v6433_v6  ;;  %4495 = vmatpush3.msra.mxu1 %v6436_v54  ;;  %v7067_v6 = vld [vmem:[#allocation24_spill] sm:$0xff] }
 0xe7e   :  { %3210 = vmatprep.subr.mxu0 %v6439_v10  ;;  %4496 = vmatprep.subr.mxu1 %v6968_v63  ;;  %v7068_v54 = vld [vmem:[#allocation20_spill] sm:$0xff]  ;;  %v7069_v10 = vld [vmem:[#allocation14_spill] sm:$0xff] }
 0xe7f   :  { %3211 = vmatpush1.msra.mxu0 %v6443_v55  ;;  %4497 = vmatpush3.msra.mxu1 %v6446_v43  ;;  %v7070_v55 = vld [vmem:[#allocation15_spill] sm:$0xff]  ;;  %v7071_v43 = vld [vmem:[#allocation17_spill] sm:$0xff] }
 0xe80   :  { %3212 = vmatprep.subr.mxu0 %v6449_v17  ;;  %4498 = vmatprep.subr.mxu1 %v6968_v63  ;;  %v7072_v17 = vld [vmem:[#allocation16_spill] sm:$0xff] }
 0xe81   :  { %3213 = vmatpush1.msra.mxu0 %v6453_v14  ;;  %4499 = vmatpush3.msra.mxu1 %v6456_v59 }
 0xe82   :  { %3214 = vmatprep.subr.mxu0 %v6459_v56  ;;  %4500 = vmatprep.subr.mxu1 %v6968_v63 }
 0xe83   :  { %3215 = vmatpush1.msra.mxu0 %v6463_v32  ;;  %4501 = vmatpush3.msra.mxu1 %v6466_v19 }
 0xe84   :  { %3216 = vmatprep.subr.mxu0 %v6469_v58  ;;  %4502 = vmatprep.subr.mxu1 %v6968_v63 }
 0xe85   :  { %3217 = vmatpush1.msra.mxu0 %v6473_v9  ;;  %4503 = vmatpush3.msra.mxu1 %v6476_v7 }
 0xe86   :  { %3218 = vmatprep.subr.mxu0 %v6479_v33  ;;  %4504 = vmatprep.subr.mxu1 %v6968_v63 }
 0xe87   :  { %3219 = vmatpush1.msra.mxu0 %v6483_v57  ;;  %4505 = vmatpush3.msra.mxu1 %v6486_v30  ;;  %v7073_v30 = vld [vmem:[#allocation25_spill] sm:$0xff] }
 0xe88   :  { %3220 = vmatprep.subr.mxu0 %v6489_v36  ;;  %4506 = vmatprep.subr.mxu1 %v6968_v63 }
 0xe89   :  { %3221 = vmatpush1.msra.mxu0 %v6493_v34  ;;  %4507 = vmatpush3.msra.mxu1 %v6496_v38 }
 0xe8a   :  { %3222 = vmatprep.subr.mxu0 %v6499_v39  ;;  %4508 = vmatprep.subr.mxu1 %v6968_v63 }
 0xe8b   :  { %3223 = vmatpush1.msra.mxu0 %v6503_v41  ;;  %4509 = vmatpush3.msra.mxu1 %v6506_v42 }
 0xe8c   :  { %3224 = vmatprep.subr.mxu0 %v6509_v29  ;;  %4510 = vmatprep.subr.mxu1 %v6968_v63 }
 0xe8d   :  { %3225 = vmatpush1.msra.mxu0 %v6513_v1  ;;  %4511 = vmatpush3.msra.mxu1 %v6516_v31 }
 0xe8e   :  { %3226 = vmatprep.subr.mxu0 %v6519_v37  ;;  %4512 = vmatprep.subr.mxu1 %v6968_v63 }
 0xe8f   :  { %3227 = vmatpush1.msra.mxu0 %v6523_v27  ;;  %4513 = vmatpush3.msra.mxu1 %v6526_v40 }
 0xe90   :  { %3228 = vmatprep.subr.mxu0 %v6529_v61  ;;  %4514 = vmatprep.subr.mxu1 %v6968_v63 }
 0xe91   :  { %3229 = vmatpush1.msra.mxu0 %v6533_v23  ;;  %4515 = vmatpush3.msra.mxu1 %v6536_v25 }
 0xe92   :  { %3230 = vmatprep.subr.mxu0 %v6539_v4  ;;  %4516 = vmatprep.subr.mxu1 %v6968_v63 }
 0xe93   :  { %3231 = vmatpush1.msra.mxu0 %v6543_v11  ;;  %4517 = vmatpush3.msra.mxu1 %v6546_v22 }
 0xe94   :  { %3232 = vmatprep.subr.mxu0 %v6549_v8  ;;  %4518 = vmatprep.subr.mxu1 %v6968_v63 }
 0xe95   :  { %3233 = vmatpush1.msra.mxu0 %v6553_v60  ;;  %4519 = vmatpush3.msra.mxu1 %v6556_v20  ;;  %v3414_v60 = vld [vmem:[%s6877_s12 + $0x78] sm:$0xff]  ;;  %v3413_v20 = vld [vmem:[%s6877_s12 + $0x70] sm:$0xff] }
 0xe96   :  { %3234 = vmatprep.subr.mxu0 %v6559_v28  ;;  %4520 = vmatprep.subr.mxu1 %v6968_v63  ;;  %v3412_v28 = vld [vmem:[%s6877_s12 + $0x68] sm:$0xff] }
 0xe97   :  { %3235 = vmatpush1.msra.mxu0 %v6563_v44  ;;  %4521 = vmatpush3.msra.mxu1 %v6566_v16  ;;  %v3411_v44 = vld [vmem:[%s6877_s12 + $0x60] sm:$0xff]  ;;  %v3410_v16 = vld [vmem:[%s6877_s12 + $0x58] sm:$0xff] }
 0xe98   :  { %3236 = vmatprep.subr.mxu0 %v7067_v6  ;;  %4522 = vmatprep.subr.mxu1 %v6968_v63 }
 0xe99   :  { %3237 = vmatpush1.msra.mxu0 %v7068_v54  ;;  %4523 = vmatpush3.msra.mxu1 %v7069_v10 }
 0xe9a   :  { %3238 = vmatprep.subr.mxu0 %v7070_v55  ;;  %4524 = vmatprep.subr.mxu1 %v6968_v63 }
 0xe9b   :  { %3239 = vmatpush1.msra.mxu0 %v7071_v43  ;;  %3272 = vmatprep.mubr.f32.mxu0 %v6968_v63 }
 0xe9c   :  { %4525 = vmatpush3.msra.mxu1 %v7072_v17  ;;  %4526 = vmatprep.mubr.msk.f32.mxu1 %vm4932_vm1, %v6968_v63 }
 0xe9d   :  { %4529 = vmatprep.subr.mxu0 %v6968_v63  ;;  %4564 = vmatprep.subr.mxu1 %v6968_v63 }
 0xf3c   :  { %v3095_v14 = vpop.f32.mrf.mxu0  ;;  %v3166_v59 = vpop.f32.mrf.mxu1 }
 0xf3d   :  { %v3096_v56 = vadd.f32 %v3095_v14, %v7031_v35  ;;  %v3167_v41 = vadd.f32 %v3166_v59, %v6191_v26 }
 0xf3e   :  { %v4493_v32 = vpop.f32.mrf.mxu1  ;;  %v3097_v7 = vpop.f32.mrf.mxu0 }
 0xf3f   :  { %v3172_v19 = vrot.slane %v3096_v56, 2  ;;  %v3098_v33 = vadd.f32 %v3097_v7, %v6186_v15  ;;  %v3191_v42 = vrot.slane %v3167_v41, 2  ;;  %v7076_v41 = vld [vmem:[#allocation23_spill] sm:$0xff] }
 0xf41   :  { %v3176_v58 = vadd.f32 %v3172_v19, %v7032_v0  ;;  %v3173_v57 = vrot.slane %v3098_v33, 2 }
 0xf43   :  { %v3650_v9 = vmul.f32 -1.442695, %v3176_v58  ;;  %v3177_v36 = vadd.f32 %v3173_v57, %v7073_v30 }
 0xf45   :  { %4719 = vpow2.f32 %v3650_v9  ;;  %v3651_v39 = vmul.f32 -1.442695, %v3177_v36  ;;  %v7074_v36 = vld [vmem:[#allocation22_spill] sm:$0xff] }
 0xf52   :  { %v4720_v34 = vpop.eup %4719 }
 0xf53   :  { %v3184_v38 = vadd.f32 1.0, %v4720_v34  ;;  %v7075_v34 = vld [vmem:[#allocation21_spill] sm:$0xff] }
 0xf55   :  { %4721 = vrcp.f32 %v3184_v38  ;;  %v3386_v38 = vsel %vm3385_vm2, %v7075_v34, %v7074_v36 }
 0xf56   :  { %4723 = vpow2.f32 %v3651_v39 }
 0xf62   :  { %v4722_v29 = vpop.eup %4721 }
 0xf63   :  { %v3193_v1 = vmul.f32 %v4722_v29, %v3191_v42  ;;  %v4724_v37 = vpop.eup %4723  ;;  %v3388_v42 = vsel %vm3387_vm3, %v3386_v38, %v7076_v41  ;;  %v7077_v29 = vld [vmem:[#allocation27_spill] sm:$0xff] }
 0xf64   :  { %v3185_v27 = vadd.f32 1.0, %v4724_v37 }
 0xf65   :  { %v3194_v31 = vadd.f32 %v3193_v1, %v7024_v53  ;;  %v3390_v1 = vsel %vm3389_vm4, %v3388_v42, %v7077_v29 }
 0xf67   :  { %4725 = vtanh.f32 %v3194_v31  ;;  %v3392_v31 = vsel %vm3391_vm5, %v3390_v1, %v6601_v45 }
 0xf68   :  { %4727 = vrcp.f32 %v3185_v27  ;;  %v3394_v27 = vsel %vm3393_vm6, %v3392_v31, %v6678_v18 }
 0xf74   :  { %v4726_v40 = vpop.eup %4725 }
 0xf75   :  { %v3197_v61 = vrot.slane %v4726_v40, 1  ;;  %v4728_v4 = vpop.eup %4727 }
 0xf77   :  { %v3199_v23 = vsub.f32 %v6678_v18, %v3197_v61 }
 0xf79   :  { %v3201_v25 = vrot.slane %v3199_v23, 7  ;;  %v3654_v23 = vld [vmem:[%s6878_s13] ss:$0 sm:$0xff] }
 0xf7b   :  { %v3203_v11 = vmul.f32 %v4728_v4, %v3201_v25 }
 0xf7d   :  { %v6755_v22 = vadd.f32 %v4726_v40, %v3203_v11 }
 0xf7f   :  { %v3206_v8 = vrot.slane %v6755_v22, 6  ;;  %v3396_v40 = vsel %vm3395_vm7, %v3394_v27, %v6755_v22 }
 0xf81   :  { %3273 = vmatmul.mubr.f32.vlgmr.msra.gmra.mxu0 %v3206_v8  ;;  %4527 = vmatmul.mubr.f32.vlgmr.msra.gmra.mxu1 %v3206_v8 }
 0xf82   :  { %4561 = vmatprep.mubr.msk.f32.mxu0 %vm4932_vm1, %v6968_v63  ;;  %4568 = vmatprep.mubr.msk.f32.mxu1 %vm4932_vm1, %v6968_v63 }
 0xf83   :  { %4530 = vmatpush3.msra.mxu0 %v3414_v60 }
 0xf84   :  { %4531 = vmatprep.subr.mxu0 %v6968_v63 }
 0xf85   :  { %4532 = vmatpush3.msra.mxu0 %v3413_v20 }
 0xf86   :  { %4533 = vmatprep.subr.mxu0 %v6968_v63 }
 0xf87   :  { %4534 = vmatpush3.msra.mxu0 %v3412_v28  ;;  %v3506_v28 = vld [vmem:[%s6879_s14 + $0x8] sm:$0xff] }
 0xf88   :  { %4535 = vmatprep.subr.mxu0 %v6968_v63  ;;  %4565 = vmatpush3.msra.mxu1 %v3506_v28 }
 0xf89   :  { %4536 = vmatpush3.msra.mxu0 %v3411_v44  ;;  %v3505_v44 = vld [vmem:[%s6879_s14] sm:$0xff]  ;;  %4566 = vmatprep.subr.mxu1 %v6968_v63  ;;  %s4883_s14 = scalar_lea.vmem %s3605_s30, 32 }
 0xf8a   :  { %4537 = vmatprep.subr.mxu0 %v6968_v63  ;;  %4567 = vmatpush3.msra.mxu1 %v3505_v44  ;;  %p4885_p12 = scmp.lt.s32.totalorder %s4883_s14, %s4879_s3 }
 0xf8b   :  { %4538 = vmatpush3.msra.mxu0 %v3410_v16 }
 0xf8c   :  { %4539 = vmatprep.subr.mxu0 %v6968_v63  ;;  %p4886_p13 = por %p4885_p12, %p4884_p11 }
 0xf8d   :  { %4540 = vmatpush3.msra.mxu0 %v3409_v24 }
 0xf8e   :  { %4541 = vmatprep.subr.mxu0 %v6968_v63  ;;  %p4887_p0 = pnand %p4886_p13, %p4880_p10 }
 0xf8f   :  { %4542 = vmatpush3.msra.mxu0 %v3408_v51  ;;  %v3503_v51 = vld [vmem:[%s6867_s2] sm:$0xff] }
 0xf90   :  { %4543 = vmatprep.subr.mxu0 %v6968_v63 }
 0xf91   :  { %4544 = vmatpush3.msra.mxu0 %v3407_v62 }
 0xf92   :  { %4545 = vmatprep.subr.mxu0 %v6968_v63 }
 0xf93   :  { %4546 = vmatpush3.msra.mxu0 %v3406_v5 }
 0xf94   :  { %4547 = vmatprep.subr.mxu0 %v6968_v63 }
 0xf95   :  { %4548 = vmatpush3.msra.mxu0 %v3405_v48 }
 0xf96   :  { %4549 = vmatprep.subr.mxu0 %v6968_v63 }
 0xf97   :  { %4550 = vmatpush3.msra.mxu0 %v3404_v13 }
 0xf98   :  { %4551 = vmatprep.subr.mxu0 %v6968_v63 }
 0xf99   :  { %4552 = vmatpush3.msra.mxu0 %v3403_v21 }
 0xf9a   :  { %4553 = vmatprep.subr.mxu0 %v6968_v63 }
 0xf9b   :  { %4554 = vmatpush3.msra.mxu0 %v3402_v47 }
 0xf9c   :  { %4555 = vmatprep.subr.mxu0 %v6968_v63 }
 0xf9d   :  { %4556 = vmatpush3.msra.mxu0 %v3401_v12 }
 0xf9e   :  { %4557 = vmatprep.subr.mxu0 %v6968_v63 }
 0xf9f   :  { %4558 = vmatpush3.msra.mxu0 %v3400_v49 }
 0xfa0   :  { %4559 = vmatprep.subr.mxu0 %v6968_v63 }
 0xfa1   :  { %4560 = vmatpush3.msra.mxu0 %v3399_v52 }
0x1041   :  { %v3274_v2 = vpop.f32.mrf.mxu0  ;;  %v3345_v50 = vpop.f32.mrf.mxu1 }
0x1042   :  { %v3275_v3 = vadd.f32 %v3274_v2, %v7031_v35  ;;  %v3346_v19 = vadd.f32 %v3345_v50, %v6191_v26 }
0x1043   :  { %v4528_v46 = vpop.f32.mrf.mxu1  ;;  %v3276_v55 = vpop.f32.mrf.mxu0 }
0x1044   :  { %v3351_v6 = vrot.slane %v3275_v3, 1  ;;  %v3277_v43 = vadd.f32 %v3276_v55, %v6186_v15  ;;  %v3370_v35 = vrot.slane %v3346_v19, 1 }
0x1046   :  { %v3355_v54 = vadd.f32 %v3351_v6, %v7032_v0  ;;  %v3352_v17 = vrot.slane %v3277_v43, 1 }
0x1048   :  { %v3652_v10 = vmul.f32 -1.442695, %v3355_v54  ;;  %v3356_v14 = vadd.f32 %v3352_v17, %v7073_v30 }
0x104a   :  { %4729 = vpow2.f32 %v3652_v10  ;;  %v3653_v32 = vmul.f32 -1.442695, %v3356_v14 }
0x1057   :  { %v4730_v59 = vpop.eup %4729 }
0x1058   :  { %v3363_v56 = vadd.f32 1.0, %v4730_v59 }
0x105a   :  { %4731 = vrcp.f32 %v3363_v56 }
0x105b   :  { %4733 = vpow2.f32 %v3653_v32 }
0x1067   :  { %v4732_v58 = vpop.eup %4731 }
0x1068   :  { %v3372_v9 = vmul.f32 %v4732_v58, %v3370_v35  ;;  %v4734_v7 = vpop.eup %4733 }
0x1069   :  { %v3364_v33 = vadd.f32 1.0, %v4734_v7 }
0x106a   :  { %v3373_v0 = vadd.f32 %v3372_v9, %v7024_v53 }
0x106c   :  { %4735 = vtanh.f32 %v3373_v0 }
0x106d   :  { %4737 = vrcp.f32 %v3364_v33 }
0x1079   :  { %v4736_v15 = vpop.eup %4735 }
0x107a   :  { %v3376_v57 = vrot.slane %v4736_v15, 1  ;;  %v4738_v39 = vpop.eup %4737 }
0x107c   :  { %v3378_v30 = vsub.f32 %v6755_v22, %v3376_v57 }
0x107e   :  { %v3380_v26 = vrot.slane %v3378_v30, 7 }
0x1080   :  { %v3382_v53 = vmul.f32 %v4738_v39, %v3380_v26 }
0x1082   :  { %v3383_v37 = vadd.f32 %v4736_v15, %v3382_v53 }
0x1084   :  { %v3398_v61 = vsel %vm3397_vm8, %v3396_v40, %v3383_v37  ;;  %3384 = vst [vmem:[#allocation8 - $0x7] sm:$0x80] %v3383_v37 }
0x1085   :  { %4562 = vmatmul.mubr.f32.vlgmr.msra.gmra.mxu0 %v3398_v61 }
0x1145   :  { %v3488_v25 = vpop.f32.mrf.mxu0 }
0x1146   :  { %v3489_v4 = vadd.f32 %v3654_v23, %v3488_v25 }
0x1147   :  { %v4563_v11 = vpop.f32.mrf.mxu0 }
0x1148   :  { %v3492_v8 = vsel %vm207_vm0, %v3489_v4, -inf }
0x1149   :  { %3493 = vmax.xlane.f32.xlu0 %v3492_v8 }
0x11d2   :  { %v3494_v45 = vpop.xlane.xlu0 %3493 }
0x11d3   :  { %v3495_v60 = vsub.f32 %v3489_v4, %v3494_v45 }
0x11d5   :  { %v3496_v20 = vmul.f32 1.442695, %v3495_v60 }
0x11d7   :  { %4739 = vpow2.f32 %v3496_v20 }
0x11e4   :  { %v4740_v18 = vpop.eup %4739 }
0x11e5   :  { %v3498_v22 = vsel %vm207_vm0, %v4740_v18, 0.0 }
0x11e6   :  { %3499 = vadd.xlane.f32.xlu0 %v3498_v22 }
0x126f   :  { %v3500_v16 = vpop.xlane.xlu0 %3499 }
0x1270   :  { %4741 = vrcp.f32 %v3500_v16 }
0x127d   :  { %v4742_v24 = vpop.eup %4741 }
0x127e   :  { %v3502_v62 = vmul.f32 %v4742_v24, %v4740_v18 }
0x1280   :  { %v3504_v5 = vadd.f32 %v3503_v51, %v3502_v62 }
0x1282   :  { %4569 = vmatmul.mubr.msk.f32.vlgmr.msra.gmra.mxu1 %vm207_vm0, %v3504_v5 }
0x1283   :  { %4890 = shalt.err (!%p4887_p0)
}
0x1284   :  { %3607 = dma.vmem_to_hbm [thread:$0]  %s3605_s30, 16, %s6882_s17, [#allocation9]   ;;  %v3655_v63 = vld [vmem:[%s6880_s15] ss:$0 sm:$0xff] }
0x1285   :  { %s4934_s1 = smov [#allocation7]  }
0x1286   :  { %s3594_s20 = sshll.u32 %s4934_s1, 4  ;;  %s3595_s20 = int_to_ptr.vmem [resolvable:$true] %s3594_s20 }
0x1287   :  { %s4899_s6 = scalar_lea.vmem %s3595_s20, 128  ;;  %p4904_p2 = scmp.lt.s32.totalorder %s3595_s20, %s3595_s20 }
0x1288   :  { %p4900_p1 = scmp.ne.s32.totalorder %s3595_s20, %s4899_s6  ;;  %p4905_p3 = scmp.lt.s32.totalorder %s4899_s6, %s4899_s6 }
0x128a   :  { %p4906_p4 = por %p4905_p3, %p4904_p2 }
0x128c   :  { %p4907_p5 = pnand %p4906_p4, %p4900_p1 }
0x1342   :  { %v3583_v48 = vpop.f32.mrf.mxu1 }
0x1343   :  { %v3584_v13 = vadd.f32 %v3655_v63, %v3583_v48 }
0x1344   :  { %v4570_v21 = vpop.f32.mrf.mxu1 }
0x1345   :  { %3587 = vst.msk [vmem:[#allocation7] sm:$0xff] %vm207_vm0, %v3584_v13 }
0x1346   :  { %4910 = shalt.err (!%p4907_p5)
}
0x1347   :  { %3597 = dma.vmem_to_hbm [thread:$0]  %s3595_s20, 128, %s6881_s16, [#allocation4]  }
0x1348   :  { %4923 = dma.done.wait [#allocation4], 128  }
0x1349   :  { %4924 = vsyncadd [#allocation4], 4294967168 }
0x134a   :  { %4925 = dma.done.wait [#allocation9], 16  }
0x134b   :  { %4926 = vsyncadd [#allocation9], 4294967280 }
0x134c   :  { %3614 = vsyncpa [#allocation3], 1 }
0x134d   :  { %3615 = vsyncpa [#allocation6], 1 }
0x134e   :  { %3616 = vsyncpa [#allocation4], 1 }
0x134f   :  { %3617 = vsyncpa [#allocation9], 1 }

</bundles_post_ra>
